<compile_context>
chip_gen: v5e
topology: v5e:2x2
jax: 0.10.0
libtpu: 0.0.40
codegen_flags: <defaults>
</compile_context>

<pallas_src>
import math

import jax
import jax.numpy as jnp
from jax.experimental import pallas as pl
from jax.experimental.pallas import tpu as pltpu

_EPS = 1e-5                      # PyTorch InstanceNorm2d default (affine=False)
_ACT_DTYPE = jnp.bfloat16        # inter-layer activations / MXU inputs
_VMEM_LIMIT = 48 * 1024 * 1024   # explicit scoped-VMEM budget (headroom on v7x 64 MiB)
_LANE = 128
_SUBLANE = 8


def _round_up(x, m):
    return (x + m - 1) // m * m


def _choose_tp(P, K):
    """Rows per spatial tile so the (tp, K) bf16 patch buffer stays <= ~4 MiB."""
    p8 = _round_up(P, _SUBLANE)
    if p8 <= 1024:
        return p8
    budget = 4 * 1024 * 1024
    for tp in (1024, 512, 256, 128):
        if tp * K * 2 <= budget:
            return tp
    return 128


def _compiler_params():
    return pltpu.CompilerParams(
        dimension_semantics=("parallel", "parallel"),
        vmem_limit_bytes=_VMEM_LIMIT,
    )


# ---------------------------------------------------------------------------
# Pallas kernels
# ---------------------------------------------------------------------------
def _make_gemm_stats_kernel(tp, p_real, need_mask):
    """GEMM + bias; also emits per-tile per-channel sum and sum-of-squares."""
    def kernel(p_ref, w_ref, b_ref, y_ref, s_ref, sq_ref):
        y = jnp.dot(p_ref[0], w_ref[...], preferred_element_type=jnp.float32)
        y = y + b_ref[...]
        y_ref[0] = y.astype(y_ref.dtype)
        if need_mask:  # exclude zero-padded spatial rows from the statistics
            row = pl.program_id(1) * tp + jax.lax.broadcasted_iota(
                jnp.int32, y.shape, 0)
            y = jnp.where(row < p_real, y, 0.0)
        s_ref[0, 0] = jnp.sum(y, axis=0, keepdims=True)
        sq_ref[0, 0] = jnp.sum(y * y, axis=0, keepdims=True)
    return kernel


def _norm_relu_kernel(y_ref, m_ref, v_ref, o_ref):
    inv = jax.lax.rsqrt(v_ref[0] + _EPS)                       # EUP
    yhat = (y_ref[0].astype(jnp.float32) - m_ref[0]) * inv     # f32 epilogue
    o_ref[0] = jnp.maximum(yhat, 0.0).astype(o_ref.dtype)


def _norm_residual_kernel(y_ref, m_ref, v_ref, r_ref, o_ref):
    inv = jax.lax.rsqrt(v_ref[0] + _EPS)
    yhat = (y_ref[0].astype(jnp.float32) - m_ref[0]) * inv
    o_ref[0] = (r_ref[0].astype(jnp.float32) + yhat).astype(o_ref.dtype)


def _gemm_tanh_kernel(p_ref, w_ref, b_ref, o_ref):
    y = jnp.dot(p_ref[0], w_ref[...], preferred_element_type=jnp.float32)
    o_ref[0] = jnp.tanh(y + b_ref[...]).astype(o_ref.dtype)


# ---------------------------------------------------------------------------
# GEMM-layer wrappers (tiling, padding, bf16 casts)
# ---------------------------------------------------------------------------
def _pad_gemm_operands(patches, w2d, bias):
    """Pad K to a lane multiple, P to the chosen tile; cast MXU inputs to bf16."""
    N, P, K = patches.shape
    Kp = _round_up(K, _LANE)
    if Kp != K:
        patches = jnp.pad(patches, ((0, 0), (0, 0), (0, Kp - K)))
        w2d = jnp.pad(w2d, ((0, Kp - K), (0, 0)))
    tp = _choose_tp(P, Kp)
    Pp = _round_up(P, tp)
    if Pp != P:
        patches = jnp.pad(patches, ((0, 0), (0, Pp - P), (0, 0)))
    return (patches.astype(_ACT_DTYPE), w2d.astype(_ACT_DTYPE),
            bias.reshape(1, -1).astype(jnp.float32), tp, Pp)


def _conv_in_act(patches, w2d, bias, residual=None):
    """Conv-as-GEMM + bias + InstanceNorm + (ReLU | residual add)."""
    N, P, _ = patches.shape
    C = w2d.shape[1]
    patches, w_bf, b2, tp, Pp = _pad_gemm_operands(patches, w2d, bias)
    Kp = patches.shape[2]
    n_pt = Pp // tp

    # Pass 1: tiled GEMM + per-tile statistics.
    y, s, sq = pl.pallas_call(
        _make_gemm_stats_kernel(tp, P, Pp != P),
        out_shape=(jax.ShapeDtypeStruct((N, Pp, C), _ACT_DTYPE),
                   jax.ShapeDtypeStruct((N, n_pt, 1, C), jnp.float32),
                   jax.ShapeDtypeStruct((N, n_pt, 1, C), jnp.float32)),
        grid=(N, n_pt),
        in_specs=[pl.BlockSpec((1, tp, Kp), lambda n, p: (n, p, 0)),
                  pl.BlockSpec((Kp, C), lambda n, p: (0, 0)),
                  pl.BlockSpec((1, C), lambda n, p: (0, 0))],
        out_specs=(pl.BlockSpec((1, tp, C), lambda n, p: (n, p, 0)),
                   pl.BlockSpec((1, 1, 1, C), lambda n, p: (n, p, 0, 0)),
                   pl.BlockSpec((1, 1, 1, C), lambda n, p: (n, p, 0, 0))),
        compiler_params=_compiler_params(),
    )(patches, w_bf, b2)

    # Finalize InstanceNorm statistics over the full spatial extent (tiny).
    mean = s.sum(axis=1) / P                                  # (N, 1, C)
    var = sq.sum(axis=1) / P - mean * mean                    # biased variance
    var = jnp.maximum(var, 0.0)

    # Pass 2: tiled normalize + activation (+ residual).
    in_specs = [pl.BlockSpec((1, tp, C), lambda n, p: (n, p, 0)),
                pl.BlockSpec((1, 1, C), lambda n, p: (n, 0, 0)),
                pl.BlockSpec((1, 1, C), lambda n, p: (n, 0, 0))]
    args = [y, mean, var]
    if residual is None:
        kernel = _norm_relu_kernel
    else:
        kernel = _norm_residual_kernel
        if Pp != P:
            residual = jnp.pad(residual, ((0, 0), (0, Pp - P), (0, 0)))
        in_specs.append(pl.BlockSpec((1, tp, C), lambda n, p: (n, p, 0)))
        args.append(residual.astype(_ACT_DTYPE))
    out = pl.pallas_call(
        kernel,
        out_shape=jax.ShapeDtypeStruct((N, Pp, C), _ACT_DTYPE),
        grid=(N, n_pt),
        in_specs=in_specs,
        out_specs=pl.BlockSpec((1, tp, C), lambda n, p: (n, p, 0)),
        compiler_params=_compiler_params(),
    )(*args)
    return out[:, :P, :] if Pp != P else out


def _conv_tanh(patches, w2d, bias):
    """Final conv + tanh; Cout padded to a lane multiple for dense stores."""
    N, P, _ = patches.shape
    C = w2d.shape[1]
    Cp = _round_up(C, _LANE)
    if Cp != C:
        w2d = jnp.pad(w2d, ((0, 0), (0, Cp - C)))
        bias = jnp.pad(bias, (0, Cp - C))
    patches, w_bf, b2, tp, Pp = _pad_gemm_operands(patches, w2d, bias)
    Kp = patches.shape[2]
    out = pl.pallas_call(
        _gemm_tanh_kernel,
        out_shape=jax.ShapeDtypeStruct((N, Pp, Cp), jnp.float32),
        grid=(N, Pp // tp),
        in_specs=[pl.BlockSpec((1, tp, Kp), lambda n, p: (n, p, 0)),
                  pl.BlockSpec((Kp, Cp), lambda n, p: (0, 0)),
                  pl.BlockSpec((1, Cp), lambda n, p: (0, 0))],
        out_specs=pl.BlockSpec((1, tp, Cp), lambda n, p: (n, p, 0)),
        compiler_params=_compiler_params(),
    )(patches, w_bf, b2)
    return out[:, :P, :C]


# ---------------------------------------------------------------------------
# Glue: padding / im2col / transposed-conv lowering (plain JAX)
# ---------------------------------------------------------------------------
def _im2col(x, k, stride):
    # TODO(synk): fuse patch extraction into the kernel (manual halo DMA over
    # padded row bands) to remove the k^2 HBM amplification of im2col.
    N, Hp, Wp, C = x.shape
    Hout = (Hp - k) // stride + 1
    Wout = (Wp - k) // stride + 1
    cols = []
    for dy in range(k):
        for dx in range(k):
            cols.append(
                x[:, dy:dy + (Hout - 1) * stride + 1:stride,
                     dx:dx + (Wout - 1) * stride + 1:stride, :])
    patches = jnp.concatenate(cols, axis=-1)              # (N, Hout, Wout, k*k*C)
    return patches.reshape(N, Hout * Wout, k * k * C), Hout, Wout


def _conv_block(x, params, stride, pad, pad_mode, mode, residual=None):
    w4, b = params["w"], params["b"]
    k, _, cin, cout = w4.shape            # static (taken from the array shape)
    if pad > 0:
        jmode = "reflect" if pad_mode == "reflect" else "constant"
        x = jnp.pad(x, ((0, 0), (pad, pad), (pad, pad), (0, 0)), mode=jmode)
    patches, Hout, Wout = _im2col(x, k, stride)
    w2d = w4.reshape(k * k * cin, cout)
    N = patches.shape[0]
    if mode == "tanh":
        y = _conv_tanh(patches, w2d, b)
    else:
        res = None
        if residual is not None:
            res = residual.reshape(N, Hout * Wout, cout)
        y = _conv_in_act(patches, w2d, b, residual=res)
    return y.reshape(N, Hout, Wout, cout)


def _conv_transpose_block(x, params):
    # ConvTranspose2d(k=3, stride=2, padding=1, output_padding=1) lowered to
    # zero-interleave + asymmetric pad + stride-1 conv. Weights are generated
    # directly in the equivalent flipped-conv GEMM layout.
    # TODO(synk): subpixel (4-phase) decomposition would skip the 75%-zero taps.
    w4, b = params["w"], params["b"]
    k, _, cin, cout = w4.shape
    stride, pad, out_pad = 2, 1, 1
    N, H, W, C = x.shape
    xd = jnp.zeros((N, (H - 1) * stride + 1, (W - 1) * stride + 1, C), x.dtype)
    xd = xd.at[:, ::stride, ::stride, :].set(x)
    lo, hi = k - 1 - pad, k - 1 - pad + out_pad
    xd = jnp.pad(xd, ((0, 0), (lo, hi), (lo, hi), (0, 0)))
    patches, Hout, Wout = _im2col(xd, k, 1)
    y = _conv_in_act(patches, w4.reshape(k * k * cin, cout), b)
    return y.reshape(N, Hout, Wout, cout)


# ---------------------------------------------------------------------------
# Parameters (PyTorch-like uniform init, bound = 1/sqrt(fan_in))
# ---------------------------------------------------------------------------
def _conv_params(key, cin, cout, k, fan_in=None):
    kw, kb = jax.random.split(key)
    bound = 1.0 / math.sqrt(fan_in if fan_in is not None else cin * k * k)
    # Weight layout (dy, dx, cin, cout) matches the im2col patch ordering.
    # `k` is recovered from the (static) array shape in the forward pass, so
    # params contain only arrays and can be passed through jax.jit.
    w = jax.random.uniform(kw, (k, k, cin, cout), jnp.float32, -bound, bound)
    b = jax.random.uniform(kb, (cout,), jnp.float32, -bound, bound)
    return {"w": w, "b": b}


def init_generator_params(key, input_nc, output_nc, n_residual_blocks=9, ndf=64):
    keys = jax.random.split(key, 6 + 2 * n_residual_blocks)
    ki = iter(keys)
    params = {}
    # head: ReflPad3+Conv7 + 2x (Conv3 s2 p1), each with InstanceNorm+ReLU
    params["head"] = [
        _conv_params(next(ki), input_nc, ndf, 7),
        _conv_params(next(ki), ndf, ndf * 2, 3),
        _conv_params(next(ki), ndf * 2, ndf * 4, 3),
    ]
    # body: residual blocks (ReflPad1+Conv3+IN+ReLU, ReflPad1+Conv3+IN, +x)
    params["body"] = [
        (_conv_params(next(ki), ndf * 4, ndf * 4, 3),
         _conv_params(next(ki), ndf * 4, ndf * 4, 3))
        for _ in range(n_residual_blocks)
    ]
    # tail: 2x ConvTranspose3 s2 p1 op1 (+IN+ReLU), ReflPad3+Conv7+Tanh.
    # PyTorch ConvTranspose2d fan_in = out_channels * k * k.
    params["tail"] = [
        _conv_params(next(ki), ndf * 4, ndf * 2, 3, fan_in=ndf * 2 * 9),
        _conv_params(next(ki), ndf * 2, ndf, 3, fan_in=ndf * 9),
        _conv_params(next(ki), ndf, output_nc, 7),
    ]
    return params


def generator_forward(params, x_nchw):
    x = jnp.transpose(x_nchw, (0, 2, 3, 1)).astype(jnp.float32)  # NCHW -> NHWC
    h0, h1, h2 = params["head"]
    x = _conv_block(x, h0, stride=1, pad=3, pad_mode="reflect", mode="in_relu")
    x = _conv_block(x, h1, stride=2, pad=1, pad_mode="zero", mode="in_relu")
    x = _conv_block(x, h2, stride=2, pad=1, pad_mode="zero", mode="in_relu")
    for c1, c2 in params["body"]:
        r = x
        h = _conv_block(x, c1, stride=1, pad=1, pad_mode="reflect", mode="in_relu")
        x = _conv_block(h, c2, stride=1, pad=1, pad_mode="reflect",
                        mode="in_residual", residual=r)
    t0, t1, t2 = params["tail"]
    x = _conv_transpose_block(x, t0)
    x = _conv_transpose_block(x, t1)
    x = _conv_block(x, t2, stride=1, pad=3, pad_mode="reflect", mode="tanh")
    return jnp.transpose(x, (0, 3, 1, 2))  # back to NCHW


if __name__ == "__main__":
    key = jax.random.PRNGKey(0)
    pkey, xkey = jax.random.split(key)
    input_nc, output_nc, ndf, n_blocks = 3, 3, 8, 2
    N, H, W = 2, 16, 16
    params = init_generator_params(pkey, input_nc, output_nc, n_blocks, ndf)
    x = jax.random.normal(xkey, (N, input_nc, H, W), jnp.float32)
    fwd = jax.jit(generator_forward)
    y = fwd(params, x)
    jax.block_until_ready(y)
    assert y.shape == (N, output_nc, H, W), y.shape
    assert bool(jnp.all(jnp.isfinite(y)))
    assert bool(jnp.all(jnp.abs(y) <= 1.0))  # tanh output range
    print("KERNEL_OK")
</pallas_src>

<mosaic_0001>
module attributes {stable_mosaic.version = 11 : i64} {
  func.func @kernel(%arg0: i32, %arg1: i32, %arg2: memref<1x256x256xbf16, #tpu.memory_space<vmem>>, %arg3: memref<256x8xbf16, #tpu.memory_space<vmem>>, %arg4: memref<1x8xf32, #tpu.memory_space<vmem>>, %arg5: memref<1x256x8xbf16, #tpu.memory_space<vmem>>, %arg6: memref<1x1x1x8xf32, #tpu.memory_space<vmem>>, %arg7: memref<1x1x1x8xf32, #tpu.memory_space<vmem>>) attributes {dimension_semantics = [#tpu.dimension_semantics<parallel>, #tpu.dimension_semantics<parallel>], iteration_bounds = array<i64: 2, 1>, scalar_prefetch = 0 : i64, scratch_operands = 0 : i64, tpu.core_type = #tpu.core_type<tc>, window_params = [{transform_indices = @transform_0, window_bounds = array<i64: 1, 256, 256>}, {pipeline_mode = #tpu.pipeline_mode<synchronous>, transform_indices = @transform_1, window_bounds = array<i64: 256, 8>}, {pipeline_mode = #tpu.pipeline_mode<synchronous>, transform_indices = @transform_2, window_bounds = array<i64: 1, 8>}, {transform_indices = @transform_3, window_bounds = array<i64: 1, 256, 8>}, {transform_indices = @transform_4, window_bounds = array<i64: 1, 1, 1, 8>}, {transform_indices = @transform_5, window_bounds = array<i64: 1, 1, 1, 8>}]} {
    %c0 = arith.constant 0 : index
    %c0_0 = arith.constant 0 : index
    %c0_1 = arith.constant 0 : index
    %0 = vector.load %arg2[%c0, %c0_0, %c0_1] : memref<1x256x256xbf16, #tpu.memory_space<vmem>>, vector<1x256x256xbf16>
    %1 = vector.shape_cast %0 : vector<1x256x256xbf16> to vector<256x256xbf16>
    %c0_2 = arith.constant 0 : index
    %c0_3 = arith.constant 0 : index
    %2 = vector.load %arg3[%c0_2, %c0_3] : memref<256x8xbf16, #tpu.memory_space<vmem>>, vector<256x8xbf16>
    %cst = arith.constant dense<0.000000e+00> : vector<256x8xf32>
    %3 = tpu.matmul %1, %2, %cst {dimension_numbers = #tpu.dot_dimension_numbers<[1], [0], [0], [1], [0, 0, 1, 1], [], []>} : vector<256x256xbf16>, vector<256x8xbf16>, vector<256x8xf32> -> vector<256x8xf32>
    %c0_4 = arith.constant 0 : index
    %c0_5 = arith.constant 0 : index
    %4 = vector.load %arg4[%c0_4, %c0_5] : memref<1x8xf32, #tpu.memory_space<vmem>>, vector<1x8xf32>
    %5 = vector.broadcast %4 : vector<1x8xf32> to vector<256x8xf32>
    %6 = arith.addf %3, %5 : vector<256x8xf32>
    %7 = arith.truncf %6 : vector<256x8xf32> to vector<256x8xbf16>
    %c0_6 = arith.constant 0 : index
    %c0_7 = arith.constant 0 : index
    %c0_8 = arith.constant 0 : index
    %8 = vector.load %arg5[%c0_6, %c0_7, %c0_8] : memref<1x256x8xbf16, #tpu.memory_space<vmem>>, vector<1x256x8xbf16>
    %9 = vector.shape_cast %8 : vector<1x256x8xbf16> to vector<256x8xbf16>
    %10 = vector.shape_cast %7 : vector<256x8xbf16> to vector<1x256x8xbf16>
    tpu.vector_store %arg5[%c0_6, %c0_7, %c0_8], %10 {strides = array<i32>} : memref<1x256x8xbf16, #tpu.memory_space<vmem>>, vector<1x256x8xbf16>,
    %cst_9 = arith.constant dense<0.000000e+00> : vector<8xf32>
    %11 = vector.multi_reduction <add>, %6, %cst_9 [0] : vector<256x8xf32> to vector<8xf32>
    %12 = vector.shape_cast %11 : vector<8xf32> to vector<1x8xf32>
    %c0_10 = arith.constant 0 : index
    %c0_11 = arith.constant 0 : index
    %c0_12 = arith.constant 0 : index
    %c0_13 = arith.constant 0 : index
    %13 = vector.load %arg6[%c0_10, %c0_11, %c0_12, %c0_13] : memref<1x1x1x8xf32, #tpu.memory_space<vmem>>, vector<1x1x1x8xf32>
    %14 = vector.shape_cast %13 : vector<1x1x1x8xf32> to vector<1x8xf32>
    %15 = vector.shape_cast %12 : vector<1x8xf32> to vector<1x1x1x8xf32>
    tpu.vector_store %arg6[%c0_10, %c0_11, %c0_12, %c0_13], %15 {strides = array<i32>} : memref<1x1x1x8xf32, #tpu.memory_space<vmem>>, vector<1x1x1x8xf32>,
    %16 = arith.mulf %6, %6 : vector<256x8xf32>
    %cst_14 = arith.constant dense<0.000000e+00> : vector<8xf32>
    %17 = vector.multi_reduction <add>, %16, %cst_14 [0] : vector<256x8xf32> to vector<8xf32>
    %18 = vector.shape_cast %17 : vector<8xf32> to vector<1x8xf32>
    %c0_15 = arith.constant 0 : index
    %c0_16 = arith.constant 0 : index
    %c0_17 = arith.constant 0 : index
    %c0_18 = arith.constant 0 : index
    %19 = vector.load %arg7[%c0_15, %c0_16, %c0_17, %c0_18] : memref<1x1x1x8xf32, #tpu.memory_space<vmem>>, vector<1x1x1x8xf32>
    %20 = vector.shape_cast %19 : vector<1x1x1x8xf32> to vector<1x8xf32>
    %21 = vector.shape_cast %18 : vector<1x8xf32> to vector<1x1x1x8xf32>
    tpu.vector_store %arg7[%c0_15, %c0_16, %c0_17, %c0_18], %21 {strides = array<i32>} : memref<1x1x1x8xf32, #tpu.memory_space<vmem>>, vector<1x1x1x8xf32>,
    return
  }
  func.func @transform_0(%arg0: i32, %arg1: i32) -> (i32, i32, i32) {
    %c0_i32 = arith.constant 0 : i32
    %c0_i32_0 = arith.constant 0 : i32
    return %arg0, %arg1, %c0_i32 : i32, i32, i32
  }
  func.func @transform_1(%arg0: i32, %arg1: i32) -> (i32, i32) {
    %c0_i32 = arith.constant 0 : i32
    %c0_i32_0 = arith.constant 0 : i32
    %c0_i32_1 = arith.constant 0 : i32
    return %c0_i32, %c0_i32_0 : i32, i32
  }
  func.func @transform_2(%arg0: i32, %arg1: i32) -> (i32, i32) {
    %c0_i32 = arith.constant 0 : i32
    %c0_i32_0 = arith.constant 0 : i32
    %c0_i32_1 = arith.constant 0 : i32
    return %c0_i32, %c0_i32_0 : i32, i32
  }
  func.func @transform_3(%arg0: i32, %arg1: i32) -> (i32, i32, i32) {
    %c0_i32 = arith.constant 0 : i32
    %c0_i32_0 = arith.constant 0 : i32
    return %arg0, %arg1, %c0_i32 : i32, i32, i32
  }
  func.func @transform_4(%arg0: i32, %arg1: i32) -> (i32, i32, i32, i32) {
    %c0_i32 = arith.constant 0 : i32
    %c0_i32_0 = arith.constant 0 : i32
    %c0_i32_1 = arith.constant 0 : i32
    return %arg0, %arg1, %c0_i32, %c0_i32_0 : i32, i32, i32, i32
  }
  func.func @transform_5(%arg0: i32, %arg1: i32) -> (i32, i32, i32, i32) {
    %c0_i32 = arith.constant 0 : i32
    %c0_i32_0 = arith.constant 0 : i32
    %c0_i32_1 = arith.constant 0 : i32
    return %arg0, %arg1, %c0_i32, %c0_i32_0 : i32, i32, i32, i32
  }
}

module attributes {stable_mosaic.version = 11 : i64} {
  func.func @_norm_relu_kernel(%arg0: i32, %arg1: i32, %arg2: memref<1x256x8xbf16, #tpu.memory_space<vmem>>, %arg3: memref<1x1x8xf32, #tpu.memory_space<vmem>>, %arg4: memref<1x1x8xf32, #tpu.memory_space<vmem>>, %arg5: memref<1x256x8xbf16, #tpu.memory_space<vmem>>) attributes {dimension_semantics = [#tpu.dimension_semantics<parallel>, #tpu.dimension_semantics<parallel>], iteration_bounds = array<i64: 2, 1>, scalar_prefetch = 0 : i64, scratch_operands = 0 : i64, tpu.core_type = #tpu.core_type<tc>, window_params = [{transform_indices = @transform_0, window_bounds = array<i64: 1, 256, 8>}, {transform_indices = @transform_1, window_bounds = array<i64: 1, 1, 8>}, {transform_indices = @transform_2, window_bounds = array<i64: 1, 1, 8>}, {transform_indices = @transform_3, window_bounds = array<i64: 1, 256, 8>}]} {
    %c0 = arith.constant 0 : index
    %c0_0 = arith.constant 0 : index
    %c0_1 = arith.constant 0 : index
    %0 = vector.load %arg4[%c0, %c0_0, %c0_1] : memref<1x1x8xf32, #tpu.memory_space<vmem>>, vector<1x1x8xf32>
    %1 = vector.shape_cast %0 : vector<1x1x8xf32> to vector<1x8xf32>
    %cst = arith.constant 9.99999974E-6 : f32
    %2 = vector.broadcast %cst : f32 to vector<1x8xf32>
    %3 = arith.addf %1, %2 : vector<1x8xf32>
    %4 = math.rsqrt %3 : vector<1x8xf32>
    %c0_2 = arith.constant 0 : index
    %c0_3 = arith.constant 0 : index
    %c0_4 = arith.constant 0 : index
    %5 = vector.load %arg2[%c0_2, %c0_3, %c0_4] : memref<1x256x8xbf16, #tpu.memory_space<vmem>>, vector<1x256x8xbf16>
    %6 = vector.shape_cast %5 : vector<1x256x8xbf16> to vector<256x8xbf16>
    %7 = arith.extf %6 : vector<256x8xbf16> to vector<256x8xf32>
    %c0_5 = arith.constant 0 : index
    %c0_6 = arith.constant 0 : index
    %c0_7 = arith.constant 0 : index
    %8 = vector.load %arg3[%c0_5, %c0_6, %c0_7] : memref<1x1x8xf32, #tpu.memory_space<vmem>>, vector<1x1x8xf32>
    %9 = vector.shape_cast %8 : vector<1x1x8xf32> to vector<1x8xf32>
    %10 = vector.broadcast %9 : vector<1x8xf32> to vector<256x8xf32>
    %11 = arith.subf %7, %10 : vector<256x8xf32>
    %12 = vector.broadcast %4 : vector<1x8xf32> to vector<256x8xf32>
    %13 = arith.mulf %11, %12 : vector<256x8xf32>
    %cst_8 = arith.constant 0.000000e+00 : f32
    %14 = vector.broadcast %cst_8 : f32 to vector<256x8xf32>
    %15 = arith.maximumf %13, %14 : vector<256x8xf32>
    %16 = arith.truncf %15 : vector<256x8xf32> to vector<256x8xbf16>
    %c0_9 = arith.constant 0 : index
    %c0_10 = arith.constant 0 : index
    %c0_11 = arith.constant 0 : index
    %17 = vector.load %arg5[%c0_9, %c0_10, %c0_11] : memref<1x256x8xbf16, #tpu.memory_space<vmem>>, vector<1x256x8xbf16>
    %18 = vector.shape_cast %17 : vector<1x256x8xbf16> to vector<256x8xbf16>
    %19 = vector.shape_cast %16 : vector<256x8xbf16> to vector<1x256x8xbf16>
    tpu.vector_store %arg5[%c0_9, %c0_10, %c0_11], %19 {strides = array<i32>} : memref<1x256x8xbf16, #tpu.memory_space<vmem>>, vector<1x256x8xbf16>,
    return
  }
  func.func @transform_0(%arg0: i32, %arg1: i32) -> (i32, i32, i32) {
    %c0_i32 = arith.constant 0 : i32
    %c0_i32_0 = arith.constant 0 : i32
    return %arg0, %arg1, %c0_i32 : i32, i32, i32
  }
  func.func @transform_1(%arg0: i32, %arg1: i32) -> (i32, i32, i32) {
    %c0_i32 = arith.constant 0 : i32
    %c0_i32_0 = arith.constant 0 : i32
    %c0_i32_1 = arith.constant 0 : i32
    return %arg0, %c0_i32, %c0_i32_0 : i32, i32, i32
  }
  func.func @transform_2(%arg0: i32, %arg1: i32) -> (i32, i32, i32) {
    %c0_i32 = arith.constant 0 : i32
    %c0_i32_0 = arith.constant 0 : i32
    %c0_i32_1 = arith.constant 0 : i32
    return %arg0, %c0_i32, %c0_i32_0 : i32, i32, i32
  }
  func.func @transform_3(%arg0: i32, %arg1: i32) -> (i32, i32, i32) {
    %c0_i32 = arith.constant 0 : i32
    %c0_i32_0 = arith.constant 0 : i32
    return %arg0, %arg1, %c0_i32 : i32, i32, i32
  }
}

module attributes {stable_mosaic.version = 11 : i64} {
  func.func @_norm_relu_kernel(%arg0: i32, %arg1: i32, %arg2: memref<1x64x16xbf16, #tpu.memory_space<vmem>>, %arg3: memref<1x1x16xf32, #tpu.memory_space<vmem>>, %arg4: memref<1x1x16xf32, #tpu.memory_space<vmem>>, %arg5: memref<1x64x16xbf16, #tpu.memory_space<vmem>>) attributes {dimension_semantics = [#tpu.dimension_semantics<parallel>, #tpu.dimension_semantics<parallel>], iteration_bounds = array<i64: 2, 1>, scalar_prefetch = 0 : i64, scratch_operands = 0 : i64, tpu.core_type = #tpu.core_type<tc>, window_params = [{transform_indices = @transform_0, window_bounds = array<i64: 1, 64, 16>}, {transform_indices = @transform_1, window_bounds = array<i64: 1, 1, 16>}, {transform_indices = @transform_2, window_bounds = array<i64: 1, 1, 16>}, {transform_indices = @transform_3, window_bounds = array<i64: 1, 64, 16>}]} {
    %c0 = arith.constant 0 : index
    %c0_0 = arith.constant 0 : index
    %c0_1 = arith.constant 0 : index
    %0 = vector.load %arg4[%c0, %c0_0, %c0_1] : memref<1x1x16xf32, #tpu.memory_space<vmem>>, vector<1x1x16xf32>
    %1 = vector.shape_cast %0 : vector<1x1x16xf32> to vector<1x16xf32>
    %cst = arith.constant 9.99999974E-6 : f32
    %2 = vector.broadcast %cst : f32 to vector<1x16xf32>
    %3 = arith.addf %1, %2 : vector<1x16xf32>
    %4 = math.rsqrt %3 : vector<1x16xf32>
    %c0_2 = arith.constant 0 : index
    %c0_3 = arith.constant 0 : index
    %c0_4 = arith.constant 0 : index
    %5 = vector.load %arg2[%c0_2, %c0_3, %c0_4] : memref<1x64x16xbf16, #tpu.memory_space<vmem>>, vector<1x64x16xbf16>
    %6 = vector.shape_cast %5 : vector<1x64x16xbf16> to vector<64x16xbf16>
    %7 = arith.extf %6 : vector<64x16xbf16> to vector<64x16xf32>
    %c0_5 = arith.constant 0 : index
    %c0_6 = arith.constant 0 : index
    %c0_7 = arith.constant 0 : index
    %8 = vector.load %arg3[%c0_5, %c0_6, %c0_7] : memref<1x1x16xf32, #tpu.memory_space<vmem>>, vector<1x1x16xf32>
    %9 = vector.shape_cast %8 : vector<1x1x16xf32> to vector<1x16xf32>
    %10 = vector.broadcast %9 : vector<1x16xf32> to vector<64x16xf32>
    %11 = arith.subf %7, %10 : vector<64x16xf32>
    %12 = vector.broadcast %4 : vector<1x16xf32> to vector<64x16xf32>
    %13 = arith.mulf %11, %12 : vector<64x16xf32>
    %cst_8 = arith.constant 0.000000e+00 : f32
    %14 = vector.broadcast %cst_8 : f32 to vector<64x16xf32>
    %15 = arith.maximumf %13, %14 : vector<64x16xf32>
    %16 = arith.truncf %15 : vector<64x16xf32> to vector<64x16xbf16>
    %c0_9 = arith.constant 0 : index
    %c0_10 = arith.constant 0 : index
    %c0_11 = arith.constant 0 : index
    %17 = vector.load %arg5[%c0_9, %c0_10, %c0_11] : memref<1x64x16xbf16, #tpu.memory_space<vmem>>, vector<1x64x16xbf16>
    %18 = vector.shape_cast %17 : vector<1x64x16xbf16> to vector<64x16xbf16>
    %19 = vector.shape_cast %16 : vector<64x16xbf16> to vector<1x64x16xbf16>
    tpu.vector_store %arg5[%c0_9, %c0_10, %c0_11], %19 {strides = array<i32>} : memref<1x64x16xbf16, #tpu.memory_space<vmem>>, vector<1x64x16xbf16>,
    return
  }
  func.func @transform_0(%arg0: i32, %arg1: i32) -> (i32, i32, i32) {
    %c0_i32 = arith.constant 0 : i32
    %c0_i32_0 = arith.constant 0 : i32
    return %arg0, %arg1, %c0_i32 : i32, i32, i32
  }
  func.func @transform_1(%arg0: i32, %arg1: i32) -> (i32, i32, i32) {
    %c0_i32 = arith.constant 0 : i32
    %c0_i32_0 = arith.constant 0 : i32
    %c0_i32_1 = arith.constant 0 : i32
    return %arg0, %c0_i32, %c0_i32_0 : i32, i32, i32
  }
  func.func @transform_2(%arg0: i32, %arg1: i32) -> (i32, i32, i32) {
    %c0_i32 = arith.constant 0 : i32
    %c0_i32_0 = arith.constant 0 : i32
    %c0_i32_1 = arith.constant 0 : i32
    return %arg0, %c0_i32, %c0_i32_0 : i32, i32, i32
  }
  func.func @transform_3(%arg0: i32, %arg1: i32) -> (i32, i32, i32) {
    %c0_i32 = arith.constant 0 : i32
    %c0_i32_0 = arith.constant 0 : i32
    return %arg0, %arg1, %c0_i32 : i32, i32, i32
  }
}

module attributes {stable_mosaic.version = 11 : i64} {
  func.func @kernel(%arg0: i32, %arg1: i32, %arg2: memref<1x64x128xbf16, #tpu.memory_space<vmem>>, %arg3: memref<128x16xbf16, #tpu.memory_space<vmem>>, %arg4: memref<1x16xf32, #tpu.memory_space<vmem>>, %arg5: memref<1x64x16xbf16, #tpu.memory_space<vmem>>, %arg6: memref<1x1x1x16xf32, #tpu.memory_space<vmem>>, %arg7: memref<1x1x1x16xf32, #tpu.memory_space<vmem>>) attributes {dimension_semantics = [#tpu.dimension_semantics<parallel>, #tpu.dimension_semantics<parallel>], iteration_bounds = array<i64: 2, 1>, scalar_prefetch = 0 : i64, scratch_operands = 0 : i64, tpu.core_type = #tpu.core_type<tc>, window_params = [{transform_indices = @transform_0, window_bounds = array<i64: 1, 64, 128>}, {pipeline_mode = #tpu.pipeline_mode<synchronous>, transform_indices = @transform_1, window_bounds = array<i64: 128, 16>}, {pipeline_mode = #tpu.pipeline_mode<synchronous>, transform_indices = @transform_2, window_bounds = array<i64: 1, 16>}, {transform_indices = @transform_3, window_bounds = array<i64: 1, 64, 16>}, {transform_indices = @transform_4, window_bounds = array<i64: 1, 1, 1, 16>}, {transform_indices = @transform_5, window_bounds = array<i64: 1, 1, 1, 16>}]} {
    %c0 = arith.constant 0 : index
    %c0_0 = arith.constant 0 : index
    %c0_1 = arith.constant 0 : index
    %0 = vector.load %arg2[%c0, %c0_0, %c0_1] : memref<1x64x128xbf16, #tpu.memory_space<vmem>>, vector<1x64x128xbf16>
    %1 = vector.shape_cast %0 : vector<1x64x128xbf16> to vector<64x128xbf16>
    %c0_2 = arith.constant 0 : index
    %c0_3 = arith.constant 0 : index
    %2 = vector.load %arg3[%c0_2, %c0_3] : memref<128x16xbf16, #tpu.memory_space<vmem>>, vector<128x16xbf16>
    %cst = arith.constant dense<0.000000e+00> : vector<64x16xf32>
    %3 = tpu.matmul %1, %2, %cst {dimension_numbers = #tpu.dot_dimension_numbers<[1], [0], [0], [1], [0, 0, 1, 1], [], []>} : vector<64x128xbf16>, vector<128x16xbf16>, vector<64x16xf32> -> vector<64x16xf32>
    %c0_4 = arith.constant 0 : index
    %c0_5 = arith.constant 0 : index
    %4 = vector.load %arg4[%c0_4, %c0_5] : memref<1x16xf32, #tpu.memory_space<vmem>>, vector<1x16xf32>
    %5 = vector.broadcast %4 : vector<1x16xf32> to vector<64x16xf32>
    %6 = arith.addf %3, %5 : vector<64x16xf32>
    %7 = arith.truncf %6 : vector<64x16xf32> to vector<64x16xbf16>
    %c0_6 = arith.constant 0 : index
    %c0_7 = arith.constant 0 : index
    %c0_8 = arith.constant 0 : index
    %8 = vector.load %arg5[%c0_6, %c0_7, %c0_8] : memref<1x64x16xbf16, #tpu.memory_space<vmem>>, vector<1x64x16xbf16>
    %9 = vector.shape_cast %8 : vector<1x64x16xbf16> to vector<64x16xbf16>
    %10 = vector.shape_cast %7 : vector<64x16xbf16> to vector<1x64x16xbf16>
    tpu.vector_store %arg5[%c0_6, %c0_7, %c0_8], %10 {strides = array<i32>} : memref<1x64x16xbf16, #tpu.memory_space<vmem>>, vector<1x64x16xbf16>,
    %cst_9 = arith.constant dense<0.000000e+00> : vector<16xf32>
    %11 = vector.multi_reduction <add>, %6, %cst_9 [0] : vector<64x16xf32> to vector<16xf32>
    %12 = vector.shape_cast %11 : vector<16xf32> to vector<1x16xf32>
    %c0_10 = arith.constant 0 : index
    %c0_11 = arith.constant 0 : index
    %c0_12 = arith.constant 0 : index
    %c0_13 = arith.constant 0 : index
    %13 = vector.load %arg6[%c0_10, %c0_11, %c0_12, %c0_13] : memref<1x1x1x16xf32, #tpu.memory_space<vmem>>, vector<1x1x1x16xf32>
    %14 = vector.shape_cast %13 : vector<1x1x1x16xf32> to vector<1x16xf32>
    %15 = vector.shape_cast %12 : vector<1x16xf32> to vector<1x1x1x16xf32>
    tpu.vector_store %arg6[%c0_10, %c0_11, %c0_12, %c0_13], %15 {strides = array<i32>} : memref<1x1x1x16xf32, #tpu.memory_space<vmem>>, vector<1x1x1x16xf32>,
    %16 = arith.mulf %6, %6 : vector<64x16xf32>
    %cst_14 = arith.constant dense<0.000000e+00> : vector<16xf32>
    %17 = vector.multi_reduction <add>, %16, %cst_14 [0] : vector<64x16xf32> to vector<16xf32>
    %18 = vector.shape_cast %17 : vector<16xf32> to vector<1x16xf32>
    %c0_15 = arith.constant 0 : index
    %c0_16 = arith.constant 0 : index
    %c0_17 = arith.constant 0 : index
    %c0_18 = arith.constant 0 : index
    %19 = vector.load %arg7[%c0_15, %c0_16, %c0_17, %c0_18] : memref<1x1x1x16xf32, #tpu.memory_space<vmem>>, vector<1x1x1x16xf32>
    %20 = vector.shape_cast %19 : vector<1x1x1x16xf32> to vector<1x16xf32>
    %21 = vector.shape_cast %18 : vector<1x16xf32> to vector<1x1x1x16xf32>
    tpu.vector_store %arg7[%c0_15, %c0_16, %c0_17, %c0_18], %21 {strides = array<i32>} : memref<1x1x1x16xf32, #tpu.memory_space<vmem>>, vector<1x1x1x16xf32>,
    return
  }
  func.func @transform_0(%arg0: i32, %arg1: i32) -> (i32, i32, i32) {
    %c0_i32 = arith.constant 0 : i32
    %c0_i32_0 = arith.constant 0 : i32
    return %arg0, %arg1, %c0_i32 : i32, i32, i32
  }
  func.func @transform_1(%arg0: i32, %arg1: i32) -> (i32, i32) {
    %c0_i32 = arith.constant 0 : i32
    %c0_i32_0 = arith.constant 0 : i32
    %c0_i32_1 = arith.constant 0 : i32
    return %c0_i32, %c0_i32_0 : i32, i32
  }
  func.func @transform_2(%arg0: i32, %arg1: i32) -> (i32, i32) {
    %c0_i32 = arith.constant 0 : i32
    %c0_i32_0 = arith.constant 0 : i32
    %c0_i32_1 = arith.constant 0 : i32
    return %c0_i32, %c0_i32_0 : i32, i32
  }
  func.func @transform_3(%arg0: i32, %arg1: i32) -> (i32, i32, i32) {
    %c0_i32 = arith.constant 0 : i32
    %c0_i32_0 = arith.constant 0 : i32
    return %arg0, %arg1, %c0_i32 : i32, i32, i32
  }
  func.func @transform_4(%arg0: i32, %arg1: i32) -> (i32, i32, i32, i32) {
    %c0_i32 = arith.constant 0 : i32
    %c0_i32_0 = arith.constant 0 : i32
    %c0_i32_1 = arith.constant 0 : i32
    return %arg0, %arg1, %c0_i32, %c0_i32_0 : i32, i32, i32, i32
  }
  func.func @transform_5(%arg0: i32, %arg1: i32) -> (i32, i32, i32, i32) {
    %c0_i32 = arith.constant 0 : i32
    %c0_i32_0 = arith.constant 0 : i32
    %c0_i32_1 = arith.constant 0 : i32
    return %arg0, %arg1, %c0_i32, %c0_i32_0 : i32, i32, i32, i32
  }
}

module attributes {stable_mosaic.version = 11 : i64} {
  func.func @kernel(%arg0: i32, %arg1: i32, %arg2: memref<1x16x256xbf16, #tpu.memory_space<vmem>>, %arg3: memref<256x32xbf16, #tpu.memory_space<vmem>>, %arg4: memref<1x32xf32, #tpu.memory_space<vmem>>, %arg5: memref<1x16x32xbf16, #tpu.memory_space<vmem>>, %arg6: memref<1x1x1x32xf32, #tpu.memory_space<vmem>>, %arg7: memref<1x1x1x32xf32, #tpu.memory_space<vmem>>) attributes {dimension_semantics = [#tpu.dimension_semantics<parallel>, #tpu.dimension_semantics<parallel>], iteration_bounds = array<i64: 2, 1>, scalar_prefetch = 0 : i64, scratch_operands = 0 : i64, tpu.core_type = #tpu.core_type<tc>, window_params = [{transform_indices = @transform_0, window_bounds = array<i64: 1, 16, 256>}, {pipeline_mode = #tpu.pipeline_mode<synchronous>, transform_indices = @transform_1, window_bounds = array<i64: 256, 32>}, {pipeline_mode = #tpu.pipeline_mode<synchronous>, transform_indices = @transform_2, window_bounds = array<i64: 1, 32>}, {transform_indices = @transform_3, window_bounds = array<i64: 1, 16, 32>}, {transform_indices = @transform_4, window_bounds = array<i64: 1, 1, 1, 32>}, {transform_indices = @transform_5, window_bounds = array<i64: 1, 1, 1, 32>}]} {
    %c0 = arith.constant 0 : index
    %c0_0 = arith.constant 0 : index
    %c0_1 = arith.constant 0 : index
    %0 = vector.load %arg2[%c0, %c0_0, %c0_1] : memref<1x16x256xbf16, #tpu.memory_space<vmem>>, vector<1x16x256xbf16>
    %1 = vector.shape_cast %0 : vector<1x16x256xbf16> to vector<16x256xbf16>
    %c0_2 = arith.constant 0 : index
    %c0_3 = arith.constant 0 : index
    %2 = vector.load %arg3[%c0_2, %c0_3] : memref<256x32xbf16, #tpu.memory_space<vmem>>, vector<256x32xbf16>
    %cst = arith.constant dense<0.000000e+00> : vector<16x32xf32>
    %3 = tpu.matmul %1, %2, %cst {dimension_numbers = #tpu.dot_dimension_numbers<[1], [0], [0], [1], [0, 0, 1, 1], [], []>} : vector<16x256xbf16>, vector<256x32xbf16>, vector<16x32xf32> -> vector<16x32xf32>
    %c0_4 = arith.constant 0 : index
    %c0_5 = arith.constant 0 : index
    %4 = vector.load %arg4[%c0_4, %c0_5] : memref<1x32xf32, #tpu.memory_space<vmem>>, vector<1x32xf32>
    %5 = vector.broadcast %4 : vector<1x32xf32> to vector<16x32xf32>
    %6 = arith.addf %3, %5 : vector<16x32xf32>
    %7 = arith.truncf %6 : vector<16x32xf32> to vector<16x32xbf16>
    %c0_6 = arith.constant 0 : index
    %c0_7 = arith.constant 0 : index
    %c0_8 = arith.constant 0 : index
    %8 = vector.load %arg5[%c0_6, %c0_7, %c0_8] : memref<1x16x32xbf16, #tpu.memory_space<vmem>>, vector<1x16x32xbf16>
    %9 = vector.shape_cast %8 : vector<1x16x32xbf16> to vector<16x32xbf16>
    %10 = vector.shape_cast %7 : vector<16x32xbf16> to vector<1x16x32xbf16>
    tpu.vector_store %arg5[%c0_6, %c0_7, %c0_8], %10 {strides = array<i32>} : memref<1x16x32xbf16, #tpu.memory_space<vmem>>, vector<1x16x32xbf16>,
    %cst_9 = arith.constant dense<0.000000e+00> : vector<32xf32>
    %11 = vector.multi_reduction <add>, %6, %cst_9 [0] : vector<16x32xf32> to vector<32xf32>
    %12 = vector.shape_cast %11 : vector<32xf32> to vector<1x32xf32>
    %c0_10 = arith.constant 0 : index
    %c0_11 = arith.constant 0 : index
    %c0_12 = arith.constant 0 : index
    %c0_13 = arith.constant 0 : index
    %13 = vector.load %arg6[%c0_10, %c0_11, %c0_12, %c0_13] : memref<1x1x1x32xf32, #tpu.memory_space<vmem>>, vector<1x1x1x32xf32>
    %14 = vector.shape_cast %13 : vector<1x1x1x32xf32> to vector<1x32xf32>
    %15 = vector.shape_cast %12 : vector<1x32xf32> to vector<1x1x1x32xf32>
    tpu.vector_store %arg6[%c0_10, %c0_11, %c0_12, %c0_13], %15 {strides = array<i32>} : memref<1x1x1x32xf32, #tpu.memory_space<vmem>>, vector<1x1x1x32xf32>,
    %16 = arith.mulf %6, %6 : vector<16x32xf32>
    %cst_14 = arith.constant dense<0.000000e+00> : vector<32xf32>
    %17 = vector.multi_reduction <add>, %16, %cst_14 [0] : vector<16x32xf32> to vector<32xf32>
    %18 = vector.shape_cast %17 : vector<32xf32> to vector<1x32xf32>
    %c0_15 = arith.constant 0 : index
    %c0_16 = arith.constant 0 : index
    %c0_17 = arith.constant 0 : index
    %c0_18 = arith.constant 0 : index
    %19 = vector.load %arg7[%c0_15, %c0_16, %c0_17, %c0_18] : memref<1x1x1x32xf32, #tpu.memory_space<vmem>>, vector<1x1x1x32xf32>
    %20 = vector.shape_cast %19 : vector<1x1x1x32xf32> to vector<1x32xf32>
    %21 = vector.shape_cast %18 : vector<1x32xf32> to vector<1x1x1x32xf32>
    tpu.vector_store %arg7[%c0_15, %c0_16, %c0_17, %c0_18], %21 {strides = array<i32>} : memref<1x1x1x32xf32, #tpu.memory_space<vmem>>, vector<1x1x1x32xf32>,
    return
  }
  func.func @transform_0(%arg0: i32, %arg1: i32) -> (i32, i32, i32) {
    %c0_i32 = arith.constant 0 : i32
    %c0_i32_0 = arith.constant 0 : i32
    return %arg0, %arg1, %c0_i32 : i32, i32, i32
  }
  func.func @transform_1(%arg0: i32, %arg1: i32) -> (i32, i32) {
    %c0_i32 = arith.constant 0 : i32
    %c0_i32_0 = arith.constant 0 : i32
    %c0_i32_1 = arith.constant 0 : i32
    return %c0_i32, %c0_i32_0 : i32, i32
  }
  func.func @transform_2(%arg0: i32, %arg1: i32) -> (i32, i32) {
    %c0_i32 = arith.constant 0 : i32
    %c0_i32_0 = arith.constant 0 : i32
    %c0_i32_1 = arith.constant 0 : i32
    return %c0_i32, %c0_i32_0 : i32, i32
  }
  func.func @transform_3(%arg0: i32, %arg1: i32) -> (i32, i32, i32) {
    %c0_i32 = arith.constant 0 : i32
    %c0_i32_0 = arith.constant 0 : i32
    return %arg0, %arg1, %c0_i32 : i32, i32, i32
  }
  func.func @transform_4(%arg0: i32, %arg1: i32) -> (i32, i32, i32, i32) {
    %c0_i32 = arith.constant 0 : i32
    %c0_i32_0 = arith.constant 0 : i32
    %c0_i32_1 = arith.constant 0 : i32
    return %arg0, %arg1, %c0_i32, %c0_i32_0 : i32, i32, i32, i32
  }
  func.func @transform_5(%arg0: i32, %arg1: i32) -> (i32, i32, i32, i32) {
    %c0_i32 = arith.constant 0 : i32
    %c0_i32_0 = arith.constant 0 : i32
    %c0_i32_1 = arith.constant 0 : i32
    return %arg0, %arg1, %c0_i32, %c0_i32_0 : i32, i32, i32, i32
  }
}

module attributes {stable_mosaic.version = 11 : i64} {
  func.func @_norm_relu_kernel(%arg0: i32, %arg1: i32, %arg2: memref<1x16x32xbf16, #tpu.memory_space<vmem>>, %arg3: memref<1x1x32xf32, #tpu.memory_space<vmem>>, %arg4: memref<1x1x32xf32, #tpu.memory_space<vmem>>, %arg5: memref<1x16x32xbf16, #tpu.memory_space<vmem>>) attributes {dimension_semantics = [#tpu.dimension_semantics<parallel>, #tpu.dimension_semantics<parallel>], iteration_bounds = array<i64: 2, 1>, scalar_prefetch = 0 : i64, scratch_operands = 0 : i64, tpu.core_type = #tpu.core_type<tc>, window_params = [{transform_indices = @transform_0, window_bounds = array<i64: 1, 16, 32>}, {transform_indices = @transform_1, window_bounds = array<i64: 1, 1, 32>}, {transform_indices = @transform_2, window_bounds = array<i64: 1, 1, 32>}, {transform_indices = @transform_3, window_bounds = array<i64: 1, 16, 32>}]} {
    %c0 = arith.constant 0 : index
    %c0_0 = arith.constant 0 : index
    %c0_1 = arith.constant 0 : index
    %0 = vector.load %arg4[%c0, %c0_0, %c0_1] : memref<1x1x32xf32, #tpu.memory_space<vmem>>, vector<1x1x32xf32>
    %1 = vector.shape_cast %0 : vector<1x1x32xf32> to vector<1x32xf32>
    %cst = arith.constant 9.99999974E-6 : f32
    %2 = vector.broadcast %cst : f32 to vector<1x32xf32>
    %3 = arith.addf %1, %2 : vector<1x32xf32>
    %4 = math.rsqrt %3 : vector<1x32xf32>
    %c0_2 = arith.constant 0 : index
    %c0_3 = arith.constant 0 : index
    %c0_4 = arith.constant 0 : index
    %5 = vector.load %arg2[%c0_2, %c0_3, %c0_4] : memref<1x16x32xbf16, #tpu.memory_space<vmem>>, vector<1x16x32xbf16>
    %6 = vector.shape_cast %5 : vector<1x16x32xbf16> to vector<16x32xbf16>
    %7 = arith.extf %6 : vector<16x32xbf16> to vector<16x32xf32>
    %c0_5 = arith.constant 0 : index
    %c0_6 = arith.constant 0 : index
    %c0_7 = arith.constant 0 : index
    %8 = vector.load %arg3[%c0_5, %c0_6, %c0_7] : memref<1x1x32xf32, #tpu.memory_space<vmem>>, vector<1x1x32xf32>
    %9 = vector.shape_cast %8 : vector<1x1x32xf32> to vector<1x32xf32>
    %10 = vector.broadcast %9 : vector<1x32xf32> to vector<16x32xf32>
    %11 = arith.subf %7, %10 : vector<16x32xf32>
    %12 = vector.broadcast %4 : vector<1x32xf32> to vector<16x32xf32>
    %13 = arith.mulf %11, %12 : vector<16x32xf32>
    %cst_8 = arith.constant 0.000000e+00 : f32
    %14 = vector.broadcast %cst_8 : f32 to vector<16x32xf32>
    %15 = arith.maximumf %13, %14 : vector<16x32xf32>
    %16 = arith.truncf %15 : vector<16x32xf32> to vector<16x32xbf16>
    %c0_9 = arith.constant 0 : index
    %c0_10 = arith.constant 0 : index
    %c0_11 = arith.constant 0 : index
    %17 = vector.load %arg5[%c0_9, %c0_10, %c0_11] : memref<1x16x32xbf16, #tpu.memory_space<vmem>>, vector<1x16x32xbf16>
    %18 = vector.shape_cast %17 : vector<1x16x32xbf16> to vector<16x32xbf16>
    %19 = vector.shape_cast %16 : vector<16x32xbf16> to vector<1x16x32xbf16>
    tpu.vector_store %arg5[%c0_9, %c0_10, %c0_11], %19 {strides = array<i32>} : memref<1x16x32xbf16, #tpu.memory_space<vmem>>, vector<1x16x32xbf16>,
    return
  }
  func.func @transform_0(%arg0: i32, %arg1: i32) -> (i32, i32, i32) {
    %c0_i32 = arith.constant 0 : i32
    %c0_i32_0 = arith.constant 0 : i32
    return %arg0, %arg1, %c0_i32 : i32, i32, i32
  }
  func.func @transform_1(%arg0: i32, %arg1: i32) -> (i32, i32, i32) {
    %c0_i32 = arith.constant 0 : i32
    %c0_i32_0 = arith.constant 0 : i32
    %c0_i32_1 = arith.constant 0 : i32
    return %arg0, %c0_i32, %c0_i32_0 : i32, i32, i32
  }
  func.func @transform_2(%arg0: i32, %arg1: i32) -> (i32, i32, i32) {
    %c0_i32 = arith.constant 0 : i32
    %c0_i32_0 = arith.constant 0 : i32
    %c0_i32_1 = arith.constant 0 : i32
    return %arg0, %c0_i32, %c0_i32_0 : i32, i32, i32
  }
  func.func @transform_3(%arg0: i32, %arg1: i32) -> (i32, i32, i32) {
    %c0_i32 = arith.constant 0 : i32
    %c0_i32_0 = arith.constant 0 : i32
    return %arg0, %arg1, %c0_i32 : i32, i32, i32
  }
}

module attributes {stable_mosaic.version = 11 : i64} {
  func.func @kernel(%arg0: i32, %arg1: i32, %arg2: memref<1x16x384xbf16, #tpu.memory_space<vmem>>, %arg3: memref<384x32xbf16, #tpu.memory_space<vmem>>, %arg4: memref<1x32xf32, #tpu.memory_space<vmem>>, %arg5: memref<1x16x32xbf16, #tpu.memory_space<vmem>>, %arg6: memref<1x1x1x32xf32, #tpu.memory_space<vmem>>, %arg7: memref<1x1x1x32xf32, #tpu.memory_space<vmem>>) attributes {dimension_semantics = [#tpu.dimension_semantics<parallel>, #tpu.dimension_semantics<parallel>], iteration_bounds = array<i64: 2, 1>, scalar_prefetch = 0 : i64, scratch_operands = 0 : i64, tpu.core_type = #tpu.core_type<tc>, window_params = [{transform_indices = @transform_0, window_bounds = array<i64: 1, 16, 384>}, {pipeline_mode = #tpu.pipeline_mode<synchronous>, transform_indices = @transform_1, window_bounds = array<i64: 384, 32>}, {pipeline_mode = #tpu.pipeline_mode<synchronous>, transform_indices = @transform_2, window_bounds = array<i64: 1, 32>}, {transform_indices = @transform_3, window_bounds = array<i64: 1, 16, 32>}, {transform_indices = @transform_4, window_bounds = array<i64: 1, 1, 1, 32>}, {transform_indices = @transform_5, window_bounds = array<i64: 1, 1, 1, 32>}]} {
    %c0 = arith.constant 0 : index
    %c0_0 = arith.constant 0 : index
    %c0_1 = arith.constant 0 : index
    %0 = vector.load %arg2[%c0, %c0_0, %c0_1] : memref<1x16x384xbf16, #tpu.memory_space<vmem>>, vector<1x16x384xbf16>
    %1 = vector.shape_cast %0 : vector<1x16x384xbf16> to vector<16x384xbf16>
    %c0_2 = arith.constant 0 : index
    %c0_3 = arith.constant 0 : index
    %2 = vector.load %arg3[%c0_2, %c0_3] : memref<384x32xbf16, #tpu.memory_space<vmem>>, vector<384x32xbf16>
    %cst = arith.constant dense<0.000000e+00> : vector<16x32xf32>
    %3 = tpu.matmul %1, %2, %cst {dimension_numbers = #tpu.dot_dimension_numbers<[1], [0], [0], [1], [0, 0, 1, 1], [], []>} : vector<16x384xbf16>, vector<384x32xbf16>, vector<16x32xf32> -> vector<16x32xf32>
    %c0_4 = arith.constant 0 : index
    %c0_5 = arith.constant 0 : index
    %4 = vector.load %arg4[%c0_4, %c0_5] : memref<1x32xf32, #tpu.memory_space<vmem>>, vector<1x32xf32>
    %5 = vector.broadcast %4 : vector<1x32xf32> to vector<16x32xf32>
    %6 = arith.addf %3, %5 : vector<16x32xf32>
    %7 = arith.truncf %6 : vector<16x32xf32> to vector<16x32xbf16>
    %c0_6 = arith.constant 0 : index
    %c0_7 = arith.constant 0 : index
    %c0_8 = arith.constant 0 : index
    %8 = vector.load %arg5[%c0_6, %c0_7, %c0_8] : memref<1x16x32xbf16, #tpu.memory_space<vmem>>, vector<1x16x32xbf16>
    %9 = vector.shape_cast %8 : vector<1x16x32xbf16> to vector<16x32xbf16>
    %10 = vector.shape_cast %7 : vector<16x32xbf16> to vector<1x16x32xbf16>
    tpu.vector_store %arg5[%c0_6, %c0_7, %c0_8], %10 {strides = array<i32>} : memref<1x16x32xbf16, #tpu.memory_space<vmem>>, vector<1x16x32xbf16>,
    %cst_9 = arith.constant dense<0.000000e+00> : vector<32xf32>
    %11 = vector.multi_reduction <add>, %6, %cst_9 [0] : vector<16x32xf32> to vector<32xf32>
    %12 = vector.shape_cast %11 : vector<32xf32> to vector<1x32xf32>
    %c0_10 = arith.constant 0 : index
    %c0_11 = arith.constant 0 : index
    %c0_12 = arith.constant 0 : index
    %c0_13 = arith.constant 0 : index
    %13 = vector.load %arg6[%c0_10, %c0_11, %c0_12, %c0_13] : memref<1x1x1x32xf32, #tpu.memory_space<vmem>>, vector<1x1x1x32xf32>
    %14 = vector.shape_cast %13 : vector<1x1x1x32xf32> to vector<1x32xf32>
    %15 = vector.shape_cast %12 : vector<1x32xf32> to vector<1x1x1x32xf32>
    tpu.vector_store %arg6[%c0_10, %c0_11, %c0_12, %c0_13], %15 {strides = array<i32>} : memref<1x1x1x32xf32, #tpu.memory_space<vmem>>, vector<1x1x1x32xf32>,
    %16 = arith.mulf %6, %6 : vector<16x32xf32>
    %cst_14 = arith.constant dense<0.000000e+00> : vector<32xf32>
    %17 = vector.multi_reduction <add>, %16, %cst_14 [0] : vector<16x32xf32> to vector<32xf32>
    %18 = vector.shape_cast %17 : vector<32xf32> to vector<1x32xf32>
    %c0_15 = arith.constant 0 : index
    %c0_16 = arith.constant 0 : index
    %c0_17 = arith.constant 0 : index
    %c0_18 = arith.constant 0 : index
    %19 = vector.load %arg7[%c0_15, %c0_16, %c0_17, %c0_18] : memref<1x1x1x32xf32, #tpu.memory_space<vmem>>, vector<1x1x1x32xf32>
    %20 = vector.shape_cast %19 : vector<1x1x1x32xf32> to vector<1x32xf32>
    %21 = vector.shape_cast %18 : vector<1x32xf32> to vector<1x1x1x32xf32>
    tpu.vector_store %arg7[%c0_15, %c0_16, %c0_17, %c0_18], %21 {strides = array<i32>} : memref<1x1x1x32xf32, #tpu.memory_space<vmem>>, vector<1x1x1x32xf32>,
    return
  }
  func.func @transform_0(%arg0: i32, %arg1: i32) -> (i32, i32, i32) {
    %c0_i32 = arith.constant 0 : i32
    %c0_i32_0 = arith.constant 0 : i32
    return %arg0, %arg1, %c0_i32 : i32, i32, i32
  }
  func.func @transform_1(%arg0: i32, %arg1: i32) -> (i32, i32) {
    %c0_i32 = arith.constant 0 : i32
    %c0_i32_0 = arith.constant 0 : i32
    %c0_i32_1 = arith.constant 0 : i32
    return %c0_i32, %c0_i32_0 : i32, i32
  }
  func.func @transform_2(%arg0: i32, %arg1: i32) -> (i32, i32) {
    %c0_i32 = arith.constant 0 : i32
    %c0_i32_0 = arith.constant 0 : i32
    %c0_i32_1 = arith.constant 0 : i32
    return %c0_i32, %c0_i32_0 : i32, i32
  }
  func.func @transform_3(%arg0: i32, %arg1: i32) -> (i32, i32, i32) {
    %c0_i32 = arith.constant 0 : i32
    %c0_i32_0 = arith.constant 0 : i32
    return %arg0, %arg1, %c0_i32 : i32, i32, i32
  }
  func.func @transform_4(%arg0: i32, %arg1: i32) -> (i32, i32, i32, i32) {
    %c0_i32 = arith.constant 0 : i32
    %c0_i32_0 = arith.constant 0 : i32
    %c0_i32_1 = arith.constant 0 : i32
    return %arg0, %arg1, %c0_i32, %c0_i32_0 : i32, i32, i32, i32
  }
  func.func @transform_5(%arg0: i32, %arg1: i32) -> (i32, i32, i32, i32) {
    %c0_i32 = arith.constant 0 : i32
    %c0_i32_0 = arith.constant 0 : i32
    %c0_i32_1 = arith.constant 0 : i32
    return %arg0, %arg1, %c0_i32, %c0_i32_0 : i32, i32, i32, i32
  }
}

module attributes {stable_mosaic.version = 11 : i64} {
  func.func @_norm_residual_kernel(%arg0: i32, %arg1: i32, %arg2: memref<1x16x32xbf16, #tpu.memory_space<vmem>>, %arg3: memref<1x1x32xf32, #tpu.memory_space<vmem>>, %arg4: memref<1x1x32xf32, #tpu.memory_space<vmem>>, %arg5: memref<1x16x32xbf16, #tpu.memory_space<vmem>>, %arg6: memref<1x16x32xbf16, #tpu.memory_space<vmem>>) attributes {dimension_semantics = [#tpu.dimension_semantics<parallel>, #tpu.dimension_semantics<parallel>], iteration_bounds = array<i64: 2, 1>, scalar_prefetch = 0 : i64, scratch_operands = 0 : i64, tpu.core_type = #tpu.core_type<tc>, window_params = [{transform_indices = @transform_0, window_bounds = array<i64: 1, 16, 32>}, {transform_indices = @transform_1, window_bounds = array<i64: 1, 1, 32>}, {transform_indices = @transform_2, window_bounds = array<i64: 1, 1, 32>}, {transform_indices = @transform_3, window_bounds = array<i64: 1, 16, 32>}, {transform_indices = @transform_4, window_bounds = array<i64: 1, 16, 32>}]} {
    %c0 = arith.constant 0 : index
    %c0_0 = arith.constant 0 : index
    %c0_1 = arith.constant 0 : index
    %0 = vector.load %arg4[%c0, %c0_0, %c0_1] : memref<1x1x32xf32, #tpu.memory_space<vmem>>, vector<1x1x32xf32>
    %1 = vector.shape_cast %0 : vector<1x1x32xf32> to vector<1x32xf32>
    %cst = arith.constant 9.99999974E-6 : f32
    %2 = vector.broadcast %cst : f32 to vector<1x32xf32>
    %3 = arith.addf %1, %2 : vector<1x32xf32>
    %4 = math.rsqrt %3 : vector<1x32xf32>
    %c0_2 = arith.constant 0 : index
    %c0_3 = arith.constant 0 : index
    %c0_4 = arith.constant 0 : index
    %5 = vector.load %arg2[%c0_2, %c0_3, %c0_4] : memref<1x16x32xbf16, #tpu.memory_space<vmem>>, vector<1x16x32xbf16>
    %6 = vector.shape_cast %5 : vector<1x16x32xbf16> to vector<16x32xbf16>
    %7 = arith.extf %6 : vector<16x32xbf16> to vector<16x32xf32>
    %c0_5 = arith.constant 0 : index
    %c0_6 = arith.constant 0 : index
    %c0_7 = arith.constant 0 : index
    %8 = vector.load %arg3[%c0_5, %c0_6, %c0_7] : memref<1x1x32xf32, #tpu.memory_space<vmem>>, vector<1x1x32xf32>
    %9 = vector.shape_cast %8 : vector<1x1x32xf32> to vector<1x32xf32>
    %10 = vector.broadcast %9 : vector<1x32xf32> to vector<16x32xf32>
    %11 = arith.subf %7, %10 : vector<16x32xf32>
    %12 = vector.broadcast %4 : vector<1x32xf32> to vector<16x32xf32>
    %13 = arith.mulf %11, %12 : vector<16x32xf32>
    %c0_8 = arith.constant 0 : index
    %c0_9 = arith.constant 0 : index
    %c0_10 = arith.constant 0 : index
    %14 = vector.load %arg5[%c0_8, %c0_9, %c0_10] : memref<1x16x32xbf16, #tpu.memory_space<vmem>>, vector<1x16x32xbf16>
    %15 = vector.shape_cast %14 : vector<1x16x32xbf16> to vector<16x32xbf16>
    %16 = arith.extf %15 : vector<16x32xbf16> to vector<16x32xf32>
    %17 = arith.addf %16, %13 : vector<16x32xf32>
    %18 = arith.truncf %17 : vector<16x32xf32> to vector<16x32xbf16>
    %c0_11 = arith.constant 0 : index
    %c0_12 = arith.constant 0 : index
    %c0_13 = arith.constant 0 : index
    %19 = vector.load %arg6[%c0_11, %c0_12, %c0_13] : memref<1x16x32xbf16, #tpu.memory_space<vmem>>, vector<1x16x32xbf16>
    %20 = vector.shape_cast %19 : vector<1x16x32xbf16> to vector<16x32xbf16>
    %21 = vector.shape_cast %18 : vector<16x32xbf16> to vector<1x16x32xbf16>
    tpu.vector_store %arg6[%c0_11, %c0_12, %c0_13], %21 {strides = array<i32>} : memref<1x16x32xbf16, #tpu.memory_space<vmem>>, vector<1x16x32xbf16>,
    return
  }
  func.func @transform_0(%arg0: i32, %arg1: i32) -> (i32, i32, i32) {
    %c0_i32 = arith.constant 0 : i32
    %c0_i32_0 = arith.constant 0 : i32
    return %arg0, %arg1, %c0_i32 : i32, i32, i32
  }
  func.func @transform_1(%arg0: i32, %arg1: i32) -> (i32, i32, i32) {
    %c0_i32 = arith.constant 0 : i32
    %c0_i32_0 = arith.constant 0 : i32
    %c0_i32_1 = arith.constant 0 : i32
    return %arg0, %c0_i32, %c0_i32_0 : i32, i32, i32
  }
  func.func @transform_2(%arg0: i32, %arg1: i32) -> (i32, i32, i32) {
    %c0_i32 = arith.constant 0 : i32
    %c0_i32_0 = arith.constant 0 : i32
    %c0_i32_1 = arith.constant 0 : i32
    return %arg0, %c0_i32, %c0_i32_0 : i32, i32, i32
  }
  func.func @transform_3(%arg0: i32, %arg1: i32) -> (i32, i32, i32) {
    %c0_i32 = arith.constant 0 : i32
    %c0_i32_0 = arith.constant 0 : i32
    return %arg0, %arg1, %c0_i32 : i32, i32, i32
  }
  func.func @transform_4(%arg0: i32, %arg1: i32) -> (i32, i32, i32) {
    %c0_i32 = arith.constant 0 : i32
    %c0_i32_0 = arith.constant 0 : i32
    return %arg0, %arg1, %c0_i32 : i32, i32, i32
  }
}

module attributes {stable_mosaic.version = 11 : i64} {
  func.func @kernel(%arg0: i32, %arg1: i32, %arg2: memref<1x64x384xbf16, #tpu.memory_space<vmem>>, %arg3: memref<384x16xbf16, #tpu.memory_space<vmem>>, %arg4: memref<1x16xf32, #tpu.memory_space<vmem>>, %arg5: memref<1x64x16xbf16, #tpu.memory_space<vmem>>, %arg6: memref<1x1x1x16xf32, #tpu.memory_space<vmem>>, %arg7: memref<1x1x1x16xf32, #tpu.memory_space<vmem>>) attributes {dimension_semantics = [#tpu.dimension_semantics<parallel>, #tpu.dimension_semantics<parallel>], iteration_bounds = array<i64: 2, 1>, scalar_prefetch = 0 : i64, scratch_operands = 0 : i64, tpu.core_type = #tpu.core_type<tc>, window_params = [{transform_indices = @transform_0, window_bounds = array<i64: 1, 64, 384>}, {pipeline_mode = #tpu.pipeline_mode<synchronous>, transform_indices = @transform_1, window_bounds = array<i64: 384, 16>}, {pipeline_mode = #tpu.pipeline_mode<synchronous>, transform_indices = @transform_2, window_bounds = array<i64: 1, 16>}, {transform_indices = @transform_3, window_bounds = array<i64: 1, 64, 16>}, {transform_indices = @transform_4, window_bounds = array<i64: 1, 1, 1, 16>}, {transform_indices = @transform_5, window_bounds = array<i64: 1, 1, 1, 16>}]} {
    %c0 = arith.constant 0 : index
    %c0_0 = arith.constant 0 : index
    %c0_1 = arith.constant 0 : index
    %0 = vector.load %arg2[%c0, %c0_0, %c0_1] : memref<1x64x384xbf16, #tpu.memory_space<vmem>>, vector<1x64x384xbf16>
    %1 = vector.shape_cast %0 : vector<1x64x384xbf16> to vector<64x384xbf16>
    %c0_2 = arith.constant 0 : index
    %c0_3 = arith.constant 0 : index
    %2 = vector.load %arg3[%c0_2, %c0_3] : memref<384x16xbf16, #tpu.memory_space<vmem>>, vector<384x16xbf16>
    %cst = arith.constant dense<0.000000e+00> : vector<64x16xf32>
    %3 = tpu.matmul %1, %2, %cst {dimension_numbers = #tpu.dot_dimension_numbers<[1], [0], [0], [1], [0, 0, 1, 1], [], []>} : vector<64x384xbf16>, vector<384x16xbf16>, vector<64x16xf32> -> vector<64x16xf32>
    %c0_4 = arith.constant 0 : index
    %c0_5 = arith.constant 0 : index
    %4 = vector.load %arg4[%c0_4, %c0_5] : memref<1x16xf32, #tpu.memory_space<vmem>>, vector<1x16xf32>
    %5 = vector.broadcast %4 : vector<1x16xf32> to vector<64x16xf32>
    %6 = arith.addf %3, %5 : vector<64x16xf32>
    %7 = arith.truncf %6 : vector<64x16xf32> to vector<64x16xbf16>
    %c0_6 = arith.constant 0 : index
    %c0_7 = arith.constant 0 : index
    %c0_8 = arith.constant 0 : index
    %8 = vector.load %arg5[%c0_6, %c0_7, %c0_8] : memref<1x64x16xbf16, #tpu.memory_space<vmem>>, vector<1x64x16xbf16>
    %9 = vector.shape_cast %8 : vector<1x64x16xbf16> to vector<64x16xbf16>
    %10 = vector.shape_cast %7 : vector<64x16xbf16> to vector<1x64x16xbf16>
    tpu.vector_store %arg5[%c0_6, %c0_7, %c0_8], %10 {strides = array<i32>} : memref<1x64x16xbf16, #tpu.memory_space<vmem>>, vector<1x64x16xbf16>,
    %cst_9 = arith.constant dense<0.000000e+00> : vector<16xf32>
    %11 = vector.multi_reduction <add>, %6, %cst_9 [0] : vector<64x16xf32> to vector<16xf32>
    %12 = vector.shape_cast %11 : vector<16xf32> to vector<1x16xf32>
    %c0_10 = arith.constant 0 : index
    %c0_11 = arith.constant 0 : index
    %c0_12 = arith.constant 0 : index
    %c0_13 = arith.constant 0 : index
    %13 = vector.load %arg6[%c0_10, %c0_11, %c0_12, %c0_13] : memref<1x1x1x16xf32, #tpu.memory_space<vmem>>, vector<1x1x1x16xf32>
    %14 = vector.shape_cast %13 : vector<1x1x1x16xf32> to vector<1x16xf32>
    %15 = vector.shape_cast %12 : vector<1x16xf32> to vector<1x1x1x16xf32>
    tpu.vector_store %arg6[%c0_10, %c0_11, %c0_12, %c0_13], %15 {strides = array<i32>} : memref<1x1x1x16xf32, #tpu.memory_space<vmem>>, vector<1x1x1x16xf32>,
    %16 = arith.mulf %6, %6 : vector<64x16xf32>
    %cst_14 = arith.constant dense<0.000000e+00> : vector<16xf32>
    %17 = vector.multi_reduction <add>, %16, %cst_14 [0] : vector<64x16xf32> to vector<16xf32>
    %18 = vector.shape_cast %17 : vector<16xf32> to vector<1x16xf32>
    %c0_15 = arith.constant 0 : index
    %c0_16 = arith.constant 0 : index
    %c0_17 = arith.constant 0 : index
    %c0_18 = arith.constant 0 : index
    %19 = vector.load %arg7[%c0_15, %c0_16, %c0_17, %c0_18] : memref<1x1x1x16xf32, #tpu.memory_space<vmem>>, vector<1x1x1x16xf32>
    %20 = vector.shape_cast %19 : vector<1x1x1x16xf32> to vector<1x16xf32>
    %21 = vector.shape_cast %18 : vector<1x16xf32> to vector<1x1x1x16xf32>
    tpu.vector_store %arg7[%c0_15, %c0_16, %c0_17, %c0_18], %21 {strides = array<i32>} : memref<1x1x1x16xf32, #tpu.memory_space<vmem>>, vector<1x1x1x16xf32>,
    return
  }
  func.func @transform_0(%arg0: i32, %arg1: i32) -> (i32, i32, i32) {
    %c0_i32 = arith.constant 0 : i32
    %c0_i32_0 = arith.constant 0 : i32
    return %arg0, %arg1, %c0_i32 : i32, i32, i32
  }
  func.func @transform_1(%arg0: i32, %arg1: i32) -> (i32, i32) {
    %c0_i32 = arith.constant 0 : i32
    %c0_i32_0 = arith.constant 0 : i32
    %c0_i32_1 = arith.constant 0 : i32
    return %c0_i32, %c0_i32_0 : i32, i32
  }
  func.func @transform_2(%arg0: i32, %arg1: i32) -> (i32, i32) {
    %c0_i32 = arith.constant 0 : i32
    %c0_i32_0 = arith.constant 0 : i32
    %c0_i32_1 = arith.constant 0 : i32
    return %c0_i32, %c0_i32_0 : i32, i32
  }
  func.func @transform_3(%arg0: i32, %arg1: i32) -> (i32, i32, i32) {
    %c0_i32 = arith.constant 0 : i32
    %c0_i32_0 = arith.constant 0 : i32
    return %arg0, %arg1, %c0_i32 : i32, i32, i32
  }
  func.func @transform_4(%arg0: i32, %arg1: i32) -> (i32, i32, i32, i32) {
    %c0_i32 = arith.constant 0 : i32
    %c0_i32_0 = arith.constant 0 : i32
    %c0_i32_1 = arith.constant 0 : i32
    return %arg0, %arg1, %c0_i32, %c0_i32_0 : i32, i32, i32, i32
  }
  func.func @transform_5(%arg0: i32, %arg1: i32) -> (i32, i32, i32, i32) {
    %c0_i32 = arith.constant 0 : i32
    %c0_i32_0 = arith.constant 0 : i32
    %c0_i32_1 = arith.constant 0 : i32
    return %arg0, %arg1, %c0_i32, %c0_i32_0 : i32, i32, i32, i32
  }
}

module attributes {stable_mosaic.version = 11 : i64} {
  func.func @_gemm_tanh_kernel(%arg0: i32, %arg1: i32, %arg2: memref<1x256x512xbf16, #tpu.memory_space<vmem>>, %arg3: memref<512x128xbf16, #tpu.memory_space<vmem>>, %arg4: memref<1x128xf32, #tpu.memory_space<vmem>>, %arg5: memref<1x256x128xf32, #tpu.memory_space<vmem>>) attributes {dimension_semantics = [#tpu.dimension_semantics<parallel>, #tpu.dimension_semantics<parallel>], iteration_bounds = array<i64: 2, 1>, scalar_prefetch = 0 : i64, scratch_operands = 0 : i64, tpu.core_type = #tpu.core_type<tc>, window_params = [{transform_indices = @transform_0, window_bounds = array<i64: 1, 256, 512>}, {pipeline_mode = #tpu.pipeline_mode<synchronous>, transform_indices = @transform_1, window_bounds = array<i64: 512, 128>}, {pipeline_mode = #tpu.pipeline_mode<synchronous>, transform_indices = @transform_2, window_bounds = array<i64: 1, 128>}, {transform_indices = @transform_3, window_bounds = array<i64: 1, 256, 128>}]} {
    %c0 = arith.constant 0 : index
    %c0_0 = arith.constant 0 : index
    %c0_1 = arith.constant 0 : index
    %0 = vector.load %arg2[%c0, %c0_0, %c0_1] : memref<1x256x512xbf16, #tpu.memory_space<vmem>>, vector<1x256x512xbf16>
    %1 = vector.shape_cast %0 : vector<1x256x512xbf16> to vector<256x512xbf16>
    %c0_2 = arith.constant 0 : index
    %c0_3 = arith.constant 0 : index
    %2 = vector.load %arg3[%c0_2, %c0_3] : memref<512x128xbf16, #tpu.memory_space<vmem>>, vector<512x128xbf16>
    %cst = arith.constant dense<0.000000e+00> : vector<256x128xf32>
    %3 = tpu.matmul %1, %2, %cst {dimension_numbers = #tpu.dot_dimension_numbers<[1], [0], [0], [1], [0, 0, 1, 1], [], []>} : vector<256x512xbf16>, vector<512x128xbf16>, vector<256x128xf32> -> vector<256x128xf32>
    %c0_4 = arith.constant 0 : index
    %c0_5 = arith.constant 0 : index
    %4 = vector.load %arg4[%c0_4, %c0_5] : memref<1x128xf32, #tpu.memory_space<vmem>>, vector<1x128xf32>
    %5 = vector.broadcast %4 : vector<1x128xf32> to vector<256x128xf32>
    %6 = arith.addf %3, %5 : vector<256x128xf32>
    %7 = math.tanh %6 : vector<256x128xf32>
    %c0_6 = arith.constant 0 : index
    %c0_7 = arith.constant 0 : index
    %c0_8 = arith.constant 0 : index
    %8 = vector.load %arg5[%c0_6, %c0_7, %c0_8] : memref<1x256x128xf32, #tpu.memory_space<vmem>>, vector<1x256x128xf32>
    %9 = vector.shape_cast %8 : vector<1x256x128xf32> to vector<256x128xf32>
    %10 = vector.shape_cast %7 : vector<256x128xf32> to vector<1x256x128xf32>
    tpu.vector_store %arg5[%c0_6, %c0_7, %c0_8], %10 {strides = array<i32>} : memref<1x256x128xf32, #tpu.memory_space<vmem>>, vector<1x256x128xf32>,
    return
  }
  func.func @transform_0(%arg0: i32, %arg1: i32) -> (i32, i32, i32) {
    %c0_i32 = arith.constant 0 : i32
    %c0_i32_0 = arith.constant 0 : i32
    return %arg0, %arg1, %c0_i32 : i32, i32, i32
  }
  func.func @transform_1(%arg0: i32, %arg1: i32) -> (i32, i32) {
    %c0_i32 = arith.constant 0 : i32
    %c0_i32_0 = arith.constant 0 : i32
    %c0_i32_1 = arith.constant 0 : i32
    return %c0_i32, %c0_i32_0 : i32, i32
  }
  func.func @transform_2(%arg0: i32, %arg1: i32) -> (i32, i32) {
    %c0_i32 = arith.constant 0 : i32
    %c0_i32_0 = arith.constant 0 : i32
    %c0_i32_1 = arith.constant 0 : i32
    return %c0_i32, %c0_i32_0 : i32, i32
  }
  func.func @transform_3(%arg0: i32, %arg1: i32) -> (i32, i32, i32) {
    %c0_i32 = arith.constant 0 : i32
    %c0_i32_0 = arith.constant 0 : i32
    return %arg0, %arg1, %c0_i32 : i32, i32, i32
  }
}

</mosaic_0001>

<bundles_post_ra>
// kernel: mul.13
= control target key start
LH: loop header
LB: loop body
LE: loop exit
PB: predicated region body
PF: predicated region fallthrough
CT: control target
= control target key end

     0   :  { %s34_s0 = inlined_call_operand.vmem [shape: f32[2,1,8], index: 0, kind: input, shape index: {}, may-alias: {0,1}]   ;;  %s35_s1 = inlined_call_operand.vmem [shape: f32[2,1,8], index: 1, kind: input, shape index: {}, may-alias: {0,1}]   ;;  %s36_s2 = inlined_call_operand.vmem [shape: f32[2,1,8], index: 2, kind: output, shape index: {}]  }
   0x1   :  { %v3_v0 = vld [vmem:[%s34_s0] sm:$0x3] }
   0x2   :  { %v4_v1 = vld [vmem:[%s35_s1] sm:$0x3] }
   0x3   :  { %v7_v2 = vmul.f32 %v4_v1, %v3_v0 }
   0x5   :  { %9 = vst [vmem:[%s36_s2] sm:$0x3] %v7_v2 }

// kernel: generator_forward.20
= control target key start
LH: loop header
LB: loop body
LE: loop exit
PB: predicated region body
PF: predicated region fallthrough
CT: control target
= control target key end

     0   :  { %s750_s12 = smov 0   ;;  %s752_s13 = smov 0   ;;  %s986_s0 = inlined_call_operand.vmem [shape: bf16[2,256,8], index: 0, kind: input, shape index: {}]   ;;  %s987_s1 = inlined_call_operand.vmem [shape: f32[2,1,8], index: 1, kind: input, shape index: {}]   ;;  %s988_s2 = inlined_call_operand.vmem [shape: f32[2,1,8], index: 2, kind: input, shape index: {}]   ;;  %s989_s3 = inlined_call_operand.vmem [shape: bf16[2,256,8], index: 3, kind: output, shape index: {}]  }
   0x1   :  { %s754_s14 = smov 0  }
   0x2 LB: > { %s25_s15 = sadd.s32 1, %s724_s13  ;;  %p591_p0 = scmp.ge.s32.totalorder %s728_s14, 1  ;;  %s728_s14 = sphi %s754_s14, %s13_s14   ;;  %s724_s13 = sphi %s752_s13, %s993_s13   ;;  %s720_s12 = sphi %s750_s12, %s992_s12  }
   0x3   : > { %p27_p1 = scmp.ge.s32.totalorder %s25_s15, 2  ;;  %p174_p2 = scmp.lt.s32.totalorder %s728_s14, 3 }
   0x5   : > { %s995_s15 = smov (%p27_p1, %s25_s15), 0  ;;  %p175_p3 = pnand %p591_p0, %p174_p2 }
   0x6   : > { %p213_p4 = scmp.lt.s32.totalorder (!%p175_p3), %s720_s12, 1 }
   0x7   : > { %178 = sbr.rel (%p175_p3) target bundleno = 76 (0x4c), region = 32 }
   0xc   : > { %s997_s12 = smov (!%p213_p4, %s720_s12), 1  ;;  %vm449_vm3 = vcmask 60416  }
   0xd   : > { %s598_s16 = sshll.u32 %s997_s12, 7  ;;  %s224_s19 = scalar_lea.vmem %s987_s1, %s997_s12 }
   0xe   : > { %s227_s22 = scalar_lea.vmem %s988_s2, %s997_s12  ;;  %s784_s25 = scalar_lea.vmem %s986_s0, %s598_s16  ;;  %v790_v7 = vld [vmem:[%s224_s19] ss:$0 sm:$0xff] }
   0xf   : > { %v238_v0 = vld [vmem:[%s227_s22] sm:$0x1]  ;;  %v664_v3 = vld [vmem:[%s784_s25 + $0x8] sm:$0xff]   ;;  %v665_v4 = vld [vmem:[%s784_s25 + $0x10] sm:$0xff]   ;;  %s864_s28 = scalar_lea.vmem %s989_s3, %s598_s16 }
  0x10   : > { %v239_v1 = vadd.f32 1e-05, %v238_v0  ;;  %v601_v2 = vld [vmem:[%s784_s25] sm:$0xff]   ;;  %v666_v5 = vld [vmem:[%s784_s25 + $0x18] sm:$0xff]   ;;  %v606_v9 = vunpack.c.l.bf16 %v664_v3  ;;  %v607_v10 = vunpack.c.h.bf16 %v664_v3  ;;  %v610_v11 = vunpack.c.l.bf16 %v665_v4  ;;  %v668_v17 = vld [vmem:[%s784_s25 + $0x28] sm:$0xff]  }
  0x11   : > { %v602_v6 = vunpack.c.l.bf16 %v601_v2  ;;  %v603_v8 = vunpack.c.h.bf16 %v601_v2  ;;  %v611_v12 = vunpack.c.h.bf16 %v665_v4  ;;  %v614_v14 = vunpack.c.l.bf16 %v666_v5  ;;  %v667_v16 = vld [vmem:[%s784_s25 + $0x20] sm:$0xff]   ;;  %v669_v22 = vld [vmem:[%s784_s25 + $0x30] sm:$0xff]   ;;  %v670_v27 = vld [vmem:[%s784_s25 + $0x38] sm:$0xff]  }
  0x12   : > { %704 = vrsqrt.f32 %v239_v1  ;;  %vm246_vm0 = vweird.f32 %v239_v1  ;;  %v320_v20 = vsub.f32 %v606_v9, %v790_v7  ;;  %v615_v21 = vunpack.c.h.bf16 %v666_v5  ;;  %v671_v32 = vld [vmem:[%s784_s25 + $0x40] sm:$0xff]   ;;  %v672_v33 = vld [vmem:[%s784_s25 + $0x48] sm:$0xff]   ;;  %v673_v37 = vld [vmem:[%s784_s25 + $0x50] sm:$0xff]  }
  0x13   : > { %v318_v18 = vsub.f32 %v602_v6, %v790_v7  ;;  %v319_v19 = vsub.f32 %v603_v8, %v790_v7  ;;  %v321_v24 = vsub.f32 %v607_v10, %v790_v7  ;;  %v322_v25 = vsub.f32 %v610_v11, %v790_v7  ;;  %v674_v55 = vld [vmem:[%s784_s25 + $0x58] sm:$0xff]   ;;  %v822_v60 = vld [vmem:[%s784_s25 + $0x60] sm:$0xff]  }
  0x14   : > { %v323_v26 = vsub.f32 %v611_v12, %v790_v7  ;;  %v324_v28 = vsub.f32 %v614_v14, %v790_v7  ;;  %v618_v29 = vunpack.c.l.bf16 %v667_v16  ;;  %v619_v30 = vunpack.c.h.bf16 %v667_v16  ;;  %v853_v14 = vld [vmem:[%s784_s25 + $0x68] sm:$0xff]  }
  0x15   : > { %v622_v31 = vunpack.c.l.bf16 %v668_v17  ;;  %v623_v35 = vunpack.c.h.bf16 %v668_v17  ;;  %v626_v36 = vunpack.c.l.bf16 %v669_v22  ;;  %v325_v38 = vsub.f32 %v615_v21, %v790_v7 }
  0x16   : > { %v627_v39 = vunpack.c.h.bf16 %v669_v22  ;;  %v630_v40 = vunpack.c.l.bf16 %v670_v27  ;;  %v631_v41 = vunpack.c.h.bf16 %v670_v27  ;;  %v634_v43 = vunpack.c.l.bf16 %v671_v32 }
  0x17   : > { %v635_v44 = vunpack.c.h.bf16 %v671_v32  ;;  %v638_v45 = vunpack.c.l.bf16 %v672_v33  ;;  %v326_v47 = vsub.f32 %v618_v29, %v790_v7  ;;  %v327_v48 = vsub.f32 %v619_v30, %v790_v7 }
  0x18   : > { %v705_v13 = vpop.eup %704  ;;  %v639_v49 = vunpack.c.h.bf16 %v672_v33  ;;  %v642_v50 = vunpack.c.l.bf16 %v673_v37  ;;  %v328_v52 = vsub.f32 %v622_v31, %v790_v7  ;;  %v329_v53 = vsub.f32 %v623_v35, %v790_v7 }
  0x19   : > { %v241_v15 = vmul.f32 %v705_v13, %v239_v1  ;;  %vm247_vm1 = vweird.f32 %v705_v13  ;;  %v643_v54 = vunpack.c.h.bf16 %v673_v37  ;;  %v330_v56 = vsub.f32 %v626_v36, %v790_v7 }
  0x1a   : > { %vm808_vm2 = vmor %vm246_vm0, %vm247_vm1  ;;  %v331_v57 = vsub.f32 %v627_v39, %v790_v7  ;;  %v332_v58 = vsub.f32 %v630_v40, %v790_v7  ;;  %v333_v59 = vsub.f32 %v631_v41, %v790_v7  ;;  %v827_v62 = vsub.f32 %v634_v43, %v790_v7 }
  0x1b   : > { %v242_v23 = vmul.f32 %v705_v13, %v241_v15  ;;  %v830_v63 = vsub.f32 %v635_v44, %v790_v7  ;;  %v833_v0 = vsub.f32 %v638_v45, %v790_v7  ;;  %v838_v2 = vsub.f32 %v639_v49, %v790_v7 }
  0x1c   : > { %v841_v3 = vsub.f32 %v642_v50, %v790_v7  ;;  %v646_v4 = vunpack.c.l.bf16 %v674_v55  ;;  %v844_v5 = vsub.f32 %v643_v54, %v790_v7  ;;  %v647_v6 = vunpack.c.h.bf16 %v674_v55  ;;  %v677_v55 = vld [vmem:[%s784_s25 + $0x70] sm:$0xff]  }
  0x1d   : > { %v243_v34 = vmul.f32 0.5, %v242_v23  ;;  %v650_v8 = vunpack.c.l.bf16 %v822_v60  ;;  %v651_v9 = vunpack.c.h.bf16 %v822_v60  ;;  %v655_v54 = vunpack.c.h.bf16 %v853_v14 }
  0x1f   : > { %v244_v42 = vsub.f32 1.5, %v243_v34  ;;  %v341_v34 = vsub.f32 %v647_v6, %v790_v7  ;;  %v342_v50 = vsub.f32 %v650_v8, %v790_v7 }
  0x21   : > { %v245_v51 = vmul.f32 %v705_v13, %v244_v42 }
  0x23   : > { %v249_v61 = vsel %vm808_vm2, %v705_v13, %v245_v51 }
  0x24   : > { %v835_v1 = vperm.slane %v249_v61, 0 }
  0x26   : > { %v353_v10 = vmul.f32 %v835_v1, %v318_v18  ;;  %v354_v11 = vmul.f32 %v835_v1, %v319_v19  ;;  %v355_v12 = vmul.f32 %v835_v1, %v320_v20  ;;  %v356_v13 = vmul.f32 %v835_v1, %v321_v24 }
  0x27   : > { %v357_v15 = vmul.f32 %v835_v1, %v322_v25  ;;  %v358_v16 = vmul.f32 %v835_v1, %v323_v26  ;;  %v359_v17 = vmul.f32 %v835_v1, %v324_v28  ;;  %v360_v21 = vmul.f32 %v835_v1, %v325_v38 }
  0x28   : > { %v385_v22 = vmax.f32 %v353_v10, 0.0  ;;  %v386_v23 = vmax.f32 %v354_v11, 0.0  ;;  %v387_v27 = vmax.f32 %v355_v12, 0.0  ;;  %v388_v18 = vmax.f32 %v356_v13, 0.0  ;;  %v678_v12 = vld [vmem:[%s784_s25 + $0x78] sm:$0xff]  }
  0x29   : > { %v389_v19 = vmax.f32 %v357_v15, 0.0  ;;  %v390_v20 = vmax.f32 %v358_v16, 0.0  ;;  %v867_v24 = vsub.f32 %v646_v4, %v790_v7  ;;  %v654_v25 = vunpack.c.l.bf16 %v853_v14 }
  0x2a   : > { %v417_v26 = vpack.c.bf16 %v385_v22, %v385_v22  ;;  %v418_v28 = vpack.c.bf16 %v386_v23, %v386_v23  ;;  %v419_v29 = vpack.c.bf16 %v387_v27, %v387_v27  ;;  %v391_v30 = vmax.f32 %v359_v17, 0.0 }
  0x2b   : > { %v420_v31 = vpack.c.bf16 %v388_v18, %v388_v18  ;;  %v421_v32 = vpack.c.bf16 %v389_v19, %v389_v19  ;;  %v392_v33 = vmax.f32 %v360_v21, 0.0  ;;  %v361_v35 = vmul.f32 %v835_v1, %v326_v47 }
  0x2c   : > { %450 = vst.msk [vmem:[%s864_s28] sm:$0xf] %vm449_vm3, %v417_v26  ;;  %v362_v36 = vmul.f32 %v835_v1, %v327_v48  ;;  %v363_v37 = vmul.f32 %v835_v1, %v328_v52  ;;  %v364_v38 = vmul.f32 %v835_v1, %v329_v53  ;;  %v422_v39 = vpack.c.bf16 %v390_v20, %v390_v20 }
  0x2d   : > { %451 = vst.msk [vmem:[%s864_s28 + $0x4] sm:$0xf] %vm449_vm3, %v418_v28  ;;  %v365_v40 = vmul.f32 %v835_v1, %v330_v56  ;;  %v366_v41 = vmul.f32 %v835_v1, %v331_v57  ;;  %v367_v42 = vmul.f32 %v835_v1, %v332_v58  ;;  %v423_v43 = vpack.c.bf16 %v391_v30, %v391_v30 }
  0x2e   : > { %452 = vst.msk [vmem:[%s864_s28 + $0x8] sm:$0xf] %vm449_vm3, %v419_v29  ;;  %v393_v44 = vmax.f32 %v361_v35, 0.0  ;;  %v394_v45 = vmax.f32 %v362_v36, 0.0  ;;  %v395_v46 = vmax.f32 %v363_v37, 0.0  ;;  %v424_v47 = vpack.c.bf16 %v392_v33, %v392_v33 }
  0x2f   : > { %453 = vst.msk [vmem:[%s864_s28 + $0xc] sm:$0xf] %vm449_vm3, %v420_v31  ;;  %v396_v48 = vmax.f32 %v364_v38, 0.0  ;;  %v368_v49 = vmul.f32 %v835_v1, %v333_v59  ;;  %v397_v52 = vmax.f32 %v365_v40, 0.0  ;;  %v343_v53 = vsub.f32 %v651_v9, %v790_v7 }
  0x30   : > { %454 = vst.msk [vmem:[%s864_s28 + $0x10] sm:$0xf] %vm449_vm3, %v421_v32  ;;  %v425_v51 = vpack.c.bf16 %v393_v44, %v393_v44  ;;  %v426_v56 = vpack.c.bf16 %v394_v45, %v394_v45  ;;  %v398_v57 = vmax.f32 %v366_v41, 0.0  ;;  %v399_v58 = vmax.f32 %v367_v42, 0.0 }
  0x31   : > { %455 = vst.msk [vmem:[%s864_s28 + $0x14] sm:$0xf] %vm449_vm3, %v422_v39  ;;  %v344_v59 = vsub.f32 %v654_v25, %v790_v7  ;;  %v427_v60 = vpack.c.bf16 %v395_v46, %v395_v46  ;;  %v369_v61 = vmul.f32 %v835_v1, %v827_v62  ;;  %v370_v4 = vmul.f32 %v835_v1, %v830_v63 }
  0x32   : > { %456 = vst.msk [vmem:[%s864_s28 + $0x18] sm:$0xf] %vm449_vm3, %v423_v43  ;;  %v371_v6 = vmul.f32 %v835_v1, %v833_v0  ;;  %v428_v8 = vpack.c.bf16 %v396_v48, %v396_v48  ;;  %v400_v9 = vmax.f32 %v368_v49, 0.0  ;;  %v372_v10 = vmul.f32 %v835_v1, %v838_v2 }
  0x33   : > { %457 = vst.msk [vmem:[%s864_s28 + $0x1c] sm:$0xf] %vm449_vm3, %v424_v47  ;;  %v658_v11 = vunpack.c.l.bf16 %v677_v55  ;;  %v429_v62 = vpack.c.bf16 %v397_v52, %v397_v52  ;;  %v401_v13 = vmax.f32 %v369_v61, 0.0  ;;  %v373_v63 = vmul.f32 %v835_v1, %v841_v3 }
  0x34   : > { %458 = vst.msk [vmem:[%s864_s28 + $0x20] sm:$0xf] %vm449_vm3, %v425_v51  ;;  %v345_v0 = vsub.f32 %v655_v54, %v790_v7  ;;  %v430_v14 = vpack.c.bf16 %v398_v57, %v398_v57  ;;  %v402_v15 = vmax.f32 %v370_v4, 0.0  ;;  %v374_v2 = vmul.f32 %v835_v1, %v844_v5 }
  0x35   : > { %459 = vst.msk [vmem:[%s864_s28 + $0x24] sm:$0xf] %vm449_vm3, %v426_v56  ;;  %v659_v16 = vunpack.c.h.bf16 %v677_v55  ;;  %v431_v17 = vpack.c.bf16 %v399_v58, %v399_v58  ;;  %v403_v21 = vmax.f32 %v371_v6, 0.0  ;;  %v375_v22 = vmul.f32 %v835_v1, %v867_v24 }
  0x36   : > { %460 = vst.msk [vmem:[%s864_s28 + $0x28] sm:$0xf] %vm449_vm3, %v427_v60  ;;  %v662_v3 = vunpack.c.l.bf16 %v678_v12  ;;  %v432_v23 = vpack.c.bf16 %v400_v9, %v400_v9  ;;  %v404_v27 = vmax.f32 %v372_v10, 0.0  ;;  %v376_v18 = vmul.f32 %v835_v1, %v341_v34 }
  0x37   : > { %461 = vst.msk [vmem:[%s864_s28 + $0x2c] sm:$0xf] %vm449_vm3, %v428_v8  ;;  %v663_v19 = vunpack.c.h.bf16 %v678_v12  ;;  %v433_v5 = vpack.c.bf16 %v401_v13, %v401_v13  ;;  %v405_v20 = vmax.f32 %v373_v63, 0.0  ;;  %v377_v25 = vmul.f32 %v835_v1, %v342_v50 }
  0x38   : > { %462 = vst.msk [vmem:[%s864_s28 + $0x30] sm:$0xf] %vm449_vm3, %v429_v62  ;;  %v346_v26 = vsub.f32 %v658_v11, %v790_v7  ;;  %v434_v24 = vpack.c.bf16 %v402_v15, %v402_v15  ;;  %v406_v28 = vmax.f32 %v374_v2, 0.0  ;;  %v378_v29 = vmul.f32 %v835_v1, %v343_v53 }
  0x39   : > { %463 = vst.msk [vmem:[%s864_s28 + $0x34] sm:$0xf] %vm449_vm3, %v430_v14  ;;  %v347_v30 = vsub.f32 %v659_v16, %v790_v7  ;;  %v435_v31 = vpack.c.bf16 %v403_v21, %v403_v21  ;;  %v407_v32 = vmax.f32 %v375_v22, 0.0  ;;  %v379_v33 = vmul.f32 %v835_v1, %v344_v59 }
  0x3a   : > { %464 = vst.msk [vmem:[%s864_s28 + $0x38] sm:$0xf] %vm449_vm3, %v431_v17  ;;  %v348_v34 = vsub.f32 %v662_v3, %v790_v7  ;;  %v436_v35 = vpack.c.bf16 %v404_v27, %v404_v27  ;;  %v408_v36 = vmax.f32 %v376_v18, 0.0  ;;  %v380_v37 = vmul.f32 %v835_v1, %v345_v0 }
  0x3b   : > { %465 = vst.msk [vmem:[%s864_s28 + $0x3c] sm:$0xf] %vm449_vm3, %v432_v23  ;;  %v349_v38 = vsub.f32 %v663_v19, %v790_v7  ;;  %v437_v39 = vpack.c.bf16 %v405_v20, %v405_v20  ;;  %v409_v40 = vmax.f32 %v377_v25, 0.0  ;;  %v381_v41 = vmul.f32 %v835_v1, %v346_v26 }
  0x3c   : > { %466 = vst.msk [vmem:[%s864_s28 + $0x40] sm:$0xf] %vm449_vm3, %v433_v5  ;;  %v438_v42 = vpack.c.bf16 %v406_v28, %v406_v28  ;;  %v410_v43 = vmax.f32 %v378_v29, 0.0  ;;  %v382_v44 = vmul.f32 %v835_v1, %v347_v30  ;;  %v439_v45 = vpack.c.bf16 %v407_v32, %v407_v32 }
  0x3d   : > { %467 = vst.msk [vmem:[%s864_s28 + $0x44] sm:$0xf] %vm449_vm3, %v434_v24  ;;  %v411_v7 = vmax.f32 %v379_v33, 0.0  ;;  %v383_v46 = vmul.f32 %v835_v1, %v348_v34  ;;  %v440_v47 = vpack.c.bf16 %v408_v36, %v408_v36  ;;  %v412_v48 = vmax.f32 %v380_v37, 0.0 }
  0x3e   : > { %468 = vst.msk [vmem:[%s864_s28 + $0x48] sm:$0xf] %vm449_vm3, %v435_v31  ;;  %v384_v49 = vmul.f32 %v835_v1, %v349_v38  ;;  %v441_v50 = vpack.c.bf16 %v409_v40, %v409_v40  ;;  %v413_v51 = vmax.f32 %v381_v41, 0.0  ;;  %v442_v52 = vpack.c.bf16 %v410_v43, %v410_v43 }
  0x3f   : > { %469 = vst.msk [vmem:[%s864_s28 + $0x4c] sm:$0xf] %vm449_vm3, %v436_v35  ;;  %v414_v53 = vmax.f32 %v382_v44, 0.0  ;;  %v443_v54 = vpack.c.bf16 %v411_v7, %v411_v7  ;;  %v415_v55 = vmax.f32 %v383_v46, 0.0  ;;  %v444_v1 = vpack.c.bf16 %v412_v48, %v412_v48 }
  0x40   : > { %470 = vst.msk [vmem:[%s864_s28 + $0x50] sm:$0xf] %vm449_vm3, %v437_v39  ;;  %v416_v56 = vmax.f32 %v384_v49, 0.0  ;;  %v445_v57 = vpack.c.bf16 %v413_v51, %v413_v51 }
  0x41   : > { %471 = vst.msk [vmem:[%s864_s28 + $0x54] sm:$0xf] %vm449_vm3, %v438_v42  ;;  %v446_v58 = vpack.c.bf16 %v414_v53, %v414_v53  ;;  %v447_v59 = vpack.c.bf16 %v415_v55, %v415_v55 }
  0x42   : > { %472 = vst.msk [vmem:[%s864_s28 + $0x58] sm:$0xf] %vm449_vm3, %v439_v45  ;;  %v448_v60 = vpack.c.bf16 %v416_v56, %v416_v56 }
  0x43   : > { %473 = vst.msk [vmem:[%s864_s28 + $0x5c] sm:$0xf] %vm449_vm3, %v440_v47 }
  0x44   : > { %474 = vst.msk [vmem:[%s864_s28 + $0x60] sm:$0xf] %vm449_vm3, %v441_v50 }
  0x45   : > { %475 = vst.msk [vmem:[%s864_s28 + $0x64] sm:$0xf] %vm449_vm3, %v442_v52 }
  0x46   : > { %476 = vst.msk [vmem:[%s864_s28 + $0x68] sm:$0xf] %vm449_vm3, %v443_v54 }
  0x47   : > { %477 = vst.msk [vmem:[%s864_s28 + $0x6c] sm:$0xf] %vm449_vm3, %v444_v1 }
  0x48   : > { %478 = vst.msk [vmem:[%s864_s28 + $0x70] sm:$0xf] %vm449_vm3, %v445_v57 }
  0x49   : > { %479 = vst.msk [vmem:[%s864_s28 + $0x74] sm:$0xf] %vm449_vm3, %v446_v58 }
  0x4a   : > { %480 = vst.msk [vmem:[%s864_s28 + $0x78] sm:$0xf] %vm449_vm3, %v447_v59 }
  0x4b   : > { %481 = vst.msk [vmem:[%s864_s28 + $0x7c] sm:$0xf] %vm449_vm3, %v448_v60 }
  0x4c PF: > { %s13_s14 = sadd.s32 1, %s728_s14   ;;  %s992_s12 = smov %s724_s13 }
  0x4d   : > { %p10_p5 = scmp.ge.s32.totalorder %s13_s14, 4   ;;  %s993_s13 = smov %s995_s15 }
  0x4f   :  { %12 = sbr.rel (!%p10_p5) target bundleno = 2 (0x2), region = 68 }

// kernel: generator_forward.19
= control target key start
LH: loop header
LB: loop body
LE: loop exit
PB: predicated region body
PF: predicated region fallthrough
CT: control target
= control target key end

     0   :  { %s1549_s18 = smov 0   ;;  %s1551_s19 = smov 0   ;;  %s2046_s0 = inlined_call_operand.vmem [shape: bf16[2,256,256], index: 0, kind: input, shape index: {}]   ;;  %s2047_s1 = inlined_call_operand.vmem [shape: bf16[256,8], index: 1, kind: input, shape index: {}]   ;;  %s2048_s2 = inlined_call_operand.vmem [shape: f32[1,8], index: 2, kind: input, shape index: {}]   ;;  %s2049_s3 = inlined_call_operand.vmem [shape: bf16[2,256,8], index: 3, kind: output, shape index: {0}]   ;;  %s2050_s4 = inlined_call_operand.vmem [shape: f32[2,1,1,8], index: 4, kind: output, shape index: {1}]   ;;  %s2051_s5 = inlined_call_operand.vmem [shape: f32[2,1,1,8], index: 5, kind: output, shape index: {2}]  }
   0x1   :  { %s1553_s20 = smov 0  }
   0x2 LB: > { %s28_s21 = sadd.s32 1, %s1513_s19  ;;  %p1205_p0 = scmp.ge.s32.totalorder %s1517_s20, 1  ;;  %s1517_s20 = sphi %s1553_s20, %s16_s20   ;;  %s1513_s19 = sphi %s1551_s19, %s2053_s19   ;;  %s1509_s18 = sphi %s1549_s18, %s2052_s18  }
   0x3   : > { %p30_p1 = scmp.ge.s32.totalorder %s28_s21, 2  ;;  %p218_p2 = scmp.lt.s32.totalorder %s1517_s20, 3 }
   0x5   : > { %s2055_s21 = smov (%p30_p1, %s28_s21), 0  ;;  %p219_p3 = pnand %p1205_p0, %p218_p2 }
   0x6   : > { %p268_p4 = scmp.lt.s32.totalorder (!%p219_p3), %s1509_s18, 1 }
   0x7   : > { %222 = sbr.rel (%p219_p3) target bundleno = 344 (0x158), region = 32 }
   0xc   : > { %v1445_v0 = vld [vmem:[%s2047_s1 + $0x38] sm:$0xff]  ;;  %v1444_v2 = vld [vmem:[%s2047_s1 + $0x30] sm:$0xff]  ;;  %v1443_v4 = vld [vmem:[%s2047_s1 + $0x28] sm:$0xff]  ;;  %s2057_s18 = smov (!%p268_p4, %s1509_s18), 1  ;;  %vm834_vm0 = vcmask 60416   ;;  %vm867_vm1 = vcmask 64512  }
   0xd   : > { %v1453_v1 = vld [vmem:[%s2047_s1 + $0x78] sm:$0xff]  ;;  %624 = vmatpush.bf16.msra.mxu0 %v1445_v0  ;;  %v1452_v3 = vld [vmem:[%s2047_s1 + $0x70] sm:$0xff]  ;;  %1454 = vmatpush.bf16.msra.mxu2 %v1445_v0  ;;  %v1451_v5 = vld [vmem:[%s2047_s1 + $0x68] sm:$0xff]  ;;  %s1404_s25 = sshll.u32 %s2057_s18, 8  ;;  %s1405_s14 = sshll.u32 %s2057_s18, 7  ;;  %vm937_vm2 = vcmask 57344  }
   0xe   : > { %713 = vmatpush.bf16.msra.mxu1 %v1453_v1  ;;  %1462 = vmatpush.bf16.msra.mxu3 %v1453_v1  ;;  %v1442_v6 = vld [vmem:[%s2047_s1 + $0x20] sm:$0xff]  ;;  %v1441_v8 = vld [vmem:[%s2047_s1 + $0x18] sm:$0xff]  ;;  %v1440_v10 = vld [vmem:[%s2047_s1 + $0x10] sm:$0xff]  ;;  %s1619_s7 = scalar_lea.vmem %s2046_s0, %s1404_s25  ;;  %s1701_s17 = scalar_lea.vmem %s2049_s3, %s1405_s14 }
   0xf   : > { %v1450_v7 = vld [vmem:[%s2047_s1 + $0x60] sm:$0xff]  ;;  %v1449_v9 = vld [vmem:[%s2047_s1 + $0x58] sm:$0xff]  ;;  %v1448_v11 = vld [vmem:[%s2047_s1 + $0x50] sm:$0xff]  ;;  %s293_s24 = scalar_lea.vmem %s2050_s4, %s2057_s18  ;;  %s299_s27 = scalar_lea.vmem %s2051_s5, %s2057_s18 }
  0x10   : > { %v1439_v12 = vld [vmem:[%s2047_s1 + $0x8] sm:$0xff]  ;;  %v1438_v14 = vld [vmem:[%s2047_s1] sm:$0xff]  ;;  %v1220_v28 = vld [vmem:[%s1619_s7 + $0x10] sm:$0xf] }
  0x11   : > { %625 = vmatpush.bf16.msra.mxu0 %v1444_v2  ;;  %1455 = vmatpush.bf16.msra.mxu2 %v1444_v2  ;;  %v1447_v13 = vld [vmem:[%s2047_s1 + $0x48] sm:$0xff]  ;;  %v1446_v15 = vld [vmem:[%s2047_s1 + $0x40] sm:$0xff]  ;;  %v1409_v29 = vld [vmem:[%s1619_s7 + $0x14] sm:$0xf0] }
  0x12   : > { %714 = vmatpush.bf16.msra.mxu1 %v1452_v3  ;;  %1463 = vmatpush.bf16.msra.mxu3 %v1452_v3  ;;  %v1212_v16 = vld [vmem:[%s1619_s7] sm:$0xf]  ;;  %v1407_v17 = vld [vmem:[%s1619_s7 + $0x4] sm:$0xf0]  ;;  %v1406_v18 = vld [vmem:[%s1619_s7 + $0x4] sm:$0xf]  ;;  %v1221_v36 = vor.u32 %v1409_v29, %v1220_v28 }
  0x13   : > { %v1214_v19 = vld [vmem:[%s1619_s7 + $0x8] sm:$0xf0]  ;;  %v1276_v20 = vld [vmem:[%s1619_s7 + $0x80] sm:$0xf]  ;;  %v1423_v21 = vld [vmem:[%s1619_s7 + $0x84] sm:$0xf0]  ;;  %v1213_v24 = vor.u32 %v1407_v17, %v1212_v16 }
  0x14   : > { %v1422_v22 = vld [vmem:[%s1619_s7 + $0x84] sm:$0xf]  ;;  %v1278_v23 = vld [vmem:[%s1619_s7 + $0x88] sm:$0xf0]  ;;  %v1217_v25 = vor.u32 %v1406_v18, %v1214_v19  ;;  %v1277_v26 = vor.u32 %v1423_v21, %v1276_v20  ;;  %v1408_v30 = vld [vmem:[%s1619_s7 + $0x14] sm:$0xf] }
  0x15   : > { %626 = vmatpush.bf16.msra.mxu0 %v1443_v4  ;;  %1456 = vmatpush.bf16.msra.mxu2 %v1443_v4  ;;  %v1281_v27 = vor.u32 %v1422_v22, %v1278_v23  ;;  %v1222_v31 = vld [vmem:[%s1619_s7 + $0x18] sm:$0xf0]  ;;  %v1284_v32 = vld [vmem:[%s1619_s7 + $0x90] sm:$0xf]  ;;  %v1425_v33 = vld [vmem:[%s1619_s7 + $0x94] sm:$0xf0] }
  0x16   : > { %715 = vmatpush.bf16.msra.mxu1 %v1451_v5  ;;  %1464 = vmatpush.bf16.msra.mxu3 %v1451_v5  ;;  %v1424_v34 = vld [vmem:[%s1619_s7 + $0x94] sm:$0xf]  ;;  %v1286_v35 = vld [vmem:[%s1619_s7 + $0x98] sm:$0xf0]  ;;  %v1225_v37 = vor.u32 %v1408_v30, %v1222_v31  ;;  %v1285_v38 = vor.u32 %v1425_v33, %v1284_v32  ;;  %v1228_v40 = vld [vmem:[%s1619_s7 + $0x20] sm:$0xf] }
  0x17   : > { %v1289_v39 = vor.u32 %v1424_v34, %v1286_v35  ;;  %v1411_v41 = vld [vmem:[%s1619_s7 + $0x24] sm:$0xf0]  ;;  %v1410_v42 = vld [vmem:[%s1619_s7 + $0x24] sm:$0xf]  ;;  %v1230_v43 = vld [vmem:[%s1619_s7 + $0x28] sm:$0xf0] }
  0x18   : > { %v1292_v44 = vld [vmem:[%s1619_s7 + $0xa0] sm:$0xf]  ;;  %v1427_v45 = vld [vmem:[%s1619_s7 + $0xa4] sm:$0xf0]  ;;  %v1426_v46 = vld [vmem:[%s1619_s7 + $0xa4] sm:$0xf]  ;;  %v1229_v48 = vor.u32 %v1411_v41, %v1228_v40  ;;  %v1233_v49 = vor.u32 %v1410_v42, %v1230_v43 }
  0x19   : > { %627 = vmatpush.bf16.msra.mxu0 %v1442_v6  ;;  %1457 = vmatpush.bf16.msra.mxu2 %v1442_v6  ;;  %v1294_v47 = vld [vmem:[%s1619_s7 + $0xa8] sm:$0xf0]  ;;  %v1293_v50 = vor.u32 %v1427_v45, %v1292_v44  ;;  %v1236_v52 = vld [vmem:[%s1619_s7 + $0x30] sm:$0xf]  ;;  %v1413_v53 = vld [vmem:[%s1619_s7 + $0x34] sm:$0xf0] }
  0x1a   : > { %716 = vmatpush.bf16.msra.mxu1 %v1450_v7  ;;  %1465 = vmatpush.bf16.msra.mxu3 %v1450_v7  ;;  %v1297_v51 = vor.u32 %v1426_v46, %v1294_v47  ;;  %v1412_v54 = vld [vmem:[%s1619_s7 + $0x34] sm:$0xf]  ;;  %v1238_v55 = vld [vmem:[%s1619_s7 + $0x38] sm:$0xf0]  ;;  %v1300_v56 = vld [vmem:[%s1619_s7 + $0xb0] sm:$0xf]  ;;  %v1237_v60 = vor.u32 %v1413_v53, %v1236_v52 }
  0x1b   : > { %v1429_v57 = vld [vmem:[%s1619_s7 + $0xb4] sm:$0xf0]  ;;  %v1428_v58 = vld [vmem:[%s1619_s7 + $0xb4] sm:$0xf]  ;;  %v1302_v59 = vld [vmem:[%s1619_s7 + $0xb8] sm:$0xf0]  ;;  %v1241_v61 = vor.u32 %v1412_v54, %v1238_v55 }
  0x1c   : > { %v1301_v62 = vor.u32 %v1429_v57, %v1300_v56  ;;  %v1305_v63 = vor.u32 %v1428_v58, %v1302_v59  ;;  %v1244_v0 = vld [vmem:[%s1619_s7 + $0x40] sm:$0xf]  ;;  %v1415_v1 = vld [vmem:[%s1619_s7 + $0x44] sm:$0xf0]  ;;  %v1414_v2 = vld [vmem:[%s1619_s7 + $0x44] sm:$0xf] }
  0x1d   : > { %628 = vmatpush.bf16.msra.mxu0 %v1441_v8  ;;  %1458 = vmatpush.bf16.msra.mxu2 %v1441_v8  ;;  %v1246_v3 = vld [vmem:[%s1619_s7 + $0x48] sm:$0xf0]  ;;  %v1308_v4 = vld [vmem:[%s1619_s7 + $0xc0] sm:$0xf]  ;;  %v1431_v5 = vld [vmem:[%s1619_s7 + $0xc4] sm:$0xf0]  ;;  %v1245_v8 = vor.u32 %v1415_v1, %v1244_v0 }
  0x1e   : > { %717 = vmatpush.bf16.msra.mxu1 %v1449_v9  ;;  %1466 = vmatpush.bf16.msra.mxu3 %v1449_v9  ;;  %v1430_v6 = vld [vmem:[%s1619_s7 + $0xc4] sm:$0xf]  ;;  %v1310_v7 = vld [vmem:[%s1619_s7 + $0xc8] sm:$0xf0]  ;;  %v1249_v9 = vor.u32 %v1414_v2, %v1246_v3  ;;  %v1316_v16 = vld [vmem:[%s1619_s7 + $0xd0] sm:$0xf] }
  0x1f   : > { %v1433_v17 = vld [vmem:[%s1619_s7 + $0xd4] sm:$0xf0]  ;;  %v1432_v18 = vld [vmem:[%s1619_s7 + $0xd4] sm:$0xf]  ;;  %v1318_v19 = vld [vmem:[%s1619_s7 + $0xd8] sm:$0xf0] }
  0x20   : > { %v1317_v22 = vor.u32 %v1433_v17, %v1316_v16  ;;  %v1321_v23 = vor.u32 %v1432_v18, %v1318_v19  ;;  %v1324_v28 = vld [vmem:[%s1619_s7 + $0xe0] sm:$0xf]  ;;  %v1435_v29 = vld [vmem:[%s1619_s7 + $0xe4] sm:$0xf0]  ;;  %v1434_v30 = vld [vmem:[%s1619_s7 + $0xe4] sm:$0xf] }
  0x21   : > { %629 = vmatpush.bf16.msra.mxu0 %v1440_v10  ;;  %1459 = vmatpush.bf16.msra.mxu2 %v1440_v10  ;;  %v1309_v10 = vor.u32 %v1431_v5, %v1308_v4  ;;  %v1326_v31 = vld [vmem:[%s1619_s7 + $0xe8] sm:$0xf0]  ;;  %v1325_v34 = vor.u32 %v1435_v29, %v1324_v28  ;;  %v1332_v40 = vld [vmem:[%s1619_s7 + $0xf0] sm:$0xf]  ;;  %v1437_v41 = vld [vmem:[%s1619_s7 + $0xf4] sm:$0xf0] }
  0x22   : > { %718 = vmatpush.bf16.msra.mxu1 %v1448_v11  ;;  %1467 = vmatpush.bf16.msra.mxu3 %v1448_v11  ;;  %v1313_v11 = vor.u32 %v1430_v6, %v1310_v7  ;;  %v1329_v35 = vor.u32 %v1434_v30, %v1326_v31  ;;  %v1436_v42 = vld [vmem:[%s1619_s7 + $0xf4] sm:$0xf]  ;;  %v1334_v43 = vld [vmem:[%s1619_s7 + $0xf8] sm:$0xf0]  ;;  %v1333_v46 = vor.u32 %v1437_v41, %v1332_v40 }
  0x23   : > { %v1337_v47 = vor.u32 %v1436_v42, %v1334_v43 }
  0x25   : > { %630 = vmatpush.bf16.msra.mxu0 %v1439_v12  ;;  %1460 = vmatpush.bf16.msra.mxu2 %v1439_v12  ;;  %v1252_v12 = vld [vmem:[%s1619_s7 + $0x50] sm:$0xf] }
  0x26   : > { %719 = vmatpush.bf16.msra.mxu1 %v1447_v13  ;;  %1468 = vmatpush.bf16.msra.mxu3 %v1447_v13  ;;  %v1417_v13 = vld [vmem:[%s1619_s7 + $0x54] sm:$0xf0] }
  0x27   : > { %v1253_v20 = vor.u32 %v1417_v13, %v1252_v12 }
  0x29   : > { %631 = vmatpush.bf16.msra.mxu0 %v1438_v14  ;;  %1461 = vmatpush.bf16.msra.mxu2 %v1438_v14  ;;  %v1416_v14 = vld [vmem:[%s1619_s7 + $0x54] sm:$0xf] }
  0x2a   : > { %720 = vmatpush.bf16.msra.mxu1 %v1446_v15  ;;  %1469 = vmatpush.bf16.msra.mxu3 %v1446_v15  ;;  %v1254_v15 = vld [vmem:[%s1619_s7 + $0x58] sm:$0xf0] }
  0x2b   : > { %v1257_v21 = vor.u32 %v1416_v14, %v1254_v15 }
  0x2c   : > { %632 = vmatmul.bf16.vlgmr.msra.gmra.mxu0 %v1213_v24  ;;  %672 = vmatmul.bf16.vlgmr.msra.gmra.mxu2 %v1277_v26  ;;  %v1260_v24 = vld [vmem:[%s1619_s7 + $0x60] sm:$0xf]  ;;  %v1418_v26 = vld [vmem:[%s1619_s7 + $0x64] sm:$0xf] }
  0x2d   : > { %721 = vmatmul.bf16.vlgmr.msra.gmra.mxu1 %v1217_v25  ;;  %761 = vmatmul.bf16.vlgmr.msra.gmra.mxu3 %v1281_v27  ;;  %v1419_v25 = vld [vmem:[%s1619_s7 + $0x64] sm:$0xf0]  ;;  %v1262_v27 = vld [vmem:[%s1619_s7 + $0x68] sm:$0xf0] }
  0x2e   : > { %v1261_v32 = vor.u32 %v1419_v25, %v1260_v24  ;;  %v1265_v33 = vor.u32 %v1418_v26, %v1262_v27 }
  0x3c   : > { %637 = vmatmul.bf16.gmra.mxu0 %v1221_v36  ;;  %677 = vmatmul.bf16.gmra.mxu2 %v1285_v38  ;;  %v1268_v36 = vld [vmem:[%s1619_s7 + $0x70] sm:$0xf]  ;;  %v1420_v38 = vld [vmem:[%s1619_s7 + $0x74] sm:$0xf] }
  0x3d   : > { %726 = vmatmul.bf16.gmra.mxu1 %v1225_v37  ;;  %766 = vmatmul.bf16.gmra.mxu3 %v1289_v39  ;;  %v1421_v37 = vld [vmem:[%s1619_s7 + $0x74] sm:$0xf0]  ;;  %v1270_v39 = vld [vmem:[%s1619_s7 + $0x78] sm:$0xf0] }
  0x3e   : > { %v1269_v44 = vor.u32 %v1421_v37, %v1268_v36  ;;  %v1273_v45 = vor.u32 %v1420_v38, %v1270_v39 }
  0x4c   : > { %642 = vmatmul.bf16.gmra.mxu0 %v1229_v48  ;;  %682 = vmatmul.bf16.gmra.mxu2 %v1293_v50  ;;  %v1694_v48 = vld [vmem:[%s2048_s2] ss:$0 sm:$0xff] }
  0x4d   : > { %731 = vmatmul.bf16.gmra.mxu1 %v1233_v49  ;;  %771 = vmatmul.bf16.gmra.mxu3 %v1297_v51 }
  0x5c   : > { %647 = vmatmul.bf16.gmra.mxu0 %v1237_v60  ;;  %687 = vmatmul.bf16.gmra.mxu2 %v1301_v62 }
  0x5d   : > { %736 = vmatmul.bf16.gmra.mxu1 %v1241_v61  ;;  %776 = vmatmul.bf16.gmra.mxu3 %v1305_v63 }
  0x6c   : > { %652 = vmatmul.bf16.gmra.mxu0 %v1245_v8  ;;  %692 = vmatmul.bf16.gmra.mxu2 %v1309_v10 }
  0x6d   : > { %741 = vmatmul.bf16.gmra.mxu1 %v1249_v9  ;;  %781 = vmatmul.bf16.gmra.mxu3 %v1313_v11 }
  0x7c   : > { %657 = vmatmul.bf16.gmra.mxu0 %v1253_v20  ;;  %697 = vmatmul.bf16.gmra.mxu2 %v1317_v22 }
  0x7d   : > { %746 = vmatmul.bf16.gmra.mxu1 %v1257_v21  ;;  %786 = vmatmul.bf16.gmra.mxu3 %v1321_v23 }
  0x8c   : > { %662 = vmatmul.bf16.gmra.mxu0 %v1261_v32  ;;  %702 = vmatmul.bf16.gmra.mxu2 %v1325_v34 }
  0x8d   : > { %751 = vmatmul.bf16.gmra.mxu1 %v1265_v33  ;;  %791 = vmatmul.bf16.gmra.mxu3 %v1329_v35 }
  0x9c   : > { %667 = vmatmul.bf16.gmra.mxu0 %v1269_v44  ;;  %707 = vmatmul.bf16.gmra.mxu2 %v1333_v46 }
  0x9d   : > { %756 = vmatmul.bf16.gmra.mxu1 %v1273_v45  ;;  %796 = vmatmul.bf16.gmra.mxu3 %v1337_v47 }
  0xa9   : > { %v633_v49 = vpop.f32.mrf.mxu0 }
  0xaa   : > { %v722_v50 = vpop.f32.mrf.mxu1  ;;  %v634_v51 = vadd.f32 %v1694_v48, %v633_v49 }
  0xac   : > { %v723_v52 = vadd.f32 %v722_v50, %v634_v51 }
  0xae   : > { %v802_v53 = vpack.c.bf16 %v723_v52, %v723_v52  ;;  %v939_v61 = vmul.f32 %v723_v52, %v723_v52  ;;  %v868_v0 = vsel %vm867_vm1, %v723_v52, 0.0 }
  0xaf   : > { %v673_v54 = vpop.f32.mrf.mxu2 }
  0xb0   : > { %835 = vst.msk [vmem:[%s1701_s17] sm:$0xf] %vm834_vm0, %v802_v53  ;;  %v762_v55 = vpop.f32.mrf.mxu3  ;;  %v674_v58 = vadd.f32 %v1694_v48, %v673_v54  ;;  %v971_v5 = vsel %vm867_vm1, %v939_v61, 0.0 }
  0xb1   : > { %v635_v56 = vpop.f32.mrf.mxu0 }
  0xb2   : > { %v724_v57 = vpop.f32.mrf.mxu1  ;;  %v636_v59 = vadd.f32 %v1694_v48, %v635_v56  ;;  %v1707_v60 = vadd.f32 %v762_v55, %v674_v58 }
  0xb4   : > { %v725_v62 = vadd.f32 %v724_v57, %v636_v59  ;;  %v818_v63 = vpack.c.bf16 %v1707_v60, %v1707_v60 }
  0xb6   : > { %v803_v1 = vpack.c.bf16 %v725_v62, %v725_v62  ;;  %v869_v2 = vsel %vm867_vm1, %v725_v62, 0.0  ;;  %v940_v3 = vmul.f32 %v725_v62, %v725_v62  ;;  %851 = vst.msk [vmem:[%s1701_s17 + $0x40] sm:$0xf] %vm834_vm0, %v818_v63 }
  0xb7   : > { %v870_v4 = vadd.f32 %v869_v2, %v868_v0  ;;  %v675_v7 = vpop.f32.mrf.mxu2 }
  0xb8   : > { %836 = vst.msk [vmem:[%s1701_s17 + $0x4] sm:$0xf] %vm834_vm0, %v803_v1  ;;  %v972_v6 = vsel %vm867_vm1, %v940_v3, 0.0  ;;  %v764_v8 = vpop.f32.mrf.mxu3  ;;  %v676_v12 = vadd.f32 %v1694_v48, %v675_v7 }
  0xb9   : > { %v973_v9 = vadd.f32 %v972_v6, %v971_v5  ;;  %v638_v10 = vpop.f32.mrf.mxu0 }
  0xba   : > { %v727_v11 = vpop.f32.mrf.mxu1  ;;  %v639_v13 = vadd.f32 %v1694_v48, %v638_v10  ;;  %v1721_v14 = vadd.f32 %v764_v8, %v676_v12 }
  0xbc   : > { %v728_v15 = vadd.f32 %v727_v11, %v639_v13  ;;  %v819_v16 = vpack.c.bf16 %v1721_v14, %v1721_v14 }
  0xbe   : > { %v804_v17 = vpack.c.bf16 %v728_v15, %v728_v15  ;;  %v871_v18 = vsel %vm867_vm1, %v728_v15, 0.0  ;;  %v941_v19 = vmul.f32 %v728_v15, %v728_v15  ;;  %852 = vst.msk [vmem:[%s1701_s17 + $0x44] sm:$0xf] %vm834_vm0, %v819_v16 }
  0xbf   : > { %v872_v20 = vadd.f32 %v871_v18, %v870_v4  ;;  %v678_v22 = vpop.f32.mrf.mxu2 }
  0xc0   : > { %837 = vst.msk [vmem:[%s1701_s17 + $0x8] sm:$0xf] %vm834_vm0, %v804_v17  ;;  %v974_v21 = vsel %vm867_vm1, %v941_v19, 0.0  ;;  %v767_v23 = vpop.f32.mrf.mxu3  ;;  %v679_v27 = vadd.f32 %v1694_v48, %v678_v22 }
  0xc1   : > { %v975_v24 = vadd.f32 %v974_v21, %v973_v9  ;;  %v640_v25 = vpop.f32.mrf.mxu0 }
  0xc2   : > { %v729_v26 = vpop.f32.mrf.mxu1  ;;  %v641_v28 = vadd.f32 %v1694_v48, %v640_v25  ;;  %v1733_v29 = vadd.f32 %v767_v23, %v679_v27 }
  0xc4   : > { %v730_v30 = vadd.f32 %v729_v26, %v641_v28  ;;  %v820_v31 = vpack.c.bf16 %v1733_v29, %v1733_v29 }
  0xc6   : > { %v805_v32 = vpack.c.bf16 %v730_v30, %v730_v30  ;;  %v873_v33 = vsel %vm867_vm1, %v730_v30, 0.0  ;;  %v942_v34 = vmul.f32 %v730_v30, %v730_v30  ;;  %853 = vst.msk [vmem:[%s1701_s17 + $0x48] sm:$0xf] %vm834_vm0, %v820_v31 }
  0xc7   : > { %v874_v35 = vadd.f32 %v873_v33, %v872_v20  ;;  %v680_v37 = vpop.f32.mrf.mxu2 }
  0xc8   : > { %838 = vst.msk [vmem:[%s1701_s17 + $0xc] sm:$0xf] %vm834_vm0, %v805_v32  ;;  %v976_v36 = vsel %vm867_vm1, %v942_v34, 0.0  ;;  %v769_v38 = vpop.f32.mrf.mxu3  ;;  %v681_v42 = vadd.f32 %v1694_v48, %v680_v37 }
  0xc9   : > { %v977_v39 = vadd.f32 %v976_v36, %v975_v24  ;;  %v643_v40 = vpop.f32.mrf.mxu0 }
  0xca   : > { %v732_v41 = vpop.f32.mrf.mxu1  ;;  %v644_v43 = vadd.f32 %v1694_v48, %v643_v40  ;;  %v1745_v44 = vadd.f32 %v769_v38, %v681_v42 }
  0xcc   : > { %v733_v45 = vadd.f32 %v732_v41, %v644_v43  ;;  %v821_v46 = vpack.c.bf16 %v1745_v44, %v1745_v44 }
  0xce   : > { %v806_v47 = vpack.c.bf16 %v733_v45, %v733_v45  ;;  %v875_v49 = vsel %vm867_vm1, %v733_v45, 0.0  ;;  %v943_v50 = vmul.f32 %v733_v45, %v733_v45  ;;  %854 = vst.msk [vmem:[%s1701_s17 + $0x4c] sm:$0xf] %vm834_vm0, %v821_v46 }
  0xcf   : > { %v1750_v51 = vadd.f32 %v875_v49, %v874_v35  ;;  %v683_v53 = vpop.f32.mrf.mxu2 }
  0xd0   : > { %839 = vst.msk [vmem:[%s1701_s17 + $0x10] sm:$0xf] %vm834_vm0, %v806_v47  ;;  %v978_v52 = vsel %vm867_vm1, %v943_v50, 0.0  ;;  %v772_v54 = vpop.f32.mrf.mxu3  ;;  %v684_v58 = vadd.f32 %v1694_v48, %v683_v53 }
  0xd1   : > { %v1757_v55 = vadd.f32 %v978_v52, %v977_v39  ;;  %v645_v56 = vpop.f32.mrf.mxu0 }
  0xd2   : > { %v734_v57 = vpop.f32.mrf.mxu1  ;;  %v646_v59 = vadd.f32 %v1694_v48, %v645_v56  ;;  %v1761_v61 = vadd.f32 %v772_v54, %v684_v58 }
  0xd4   : > { %v1763_v62 = vadd.f32 %v734_v57, %v646_v59  ;;  %v822_v63 = vpack.c.bf16 %v1761_v61, %v1761_v61 }
  0xd6   : > { %v807_v0 = vpack.c.bf16 %v1763_v62, %v1763_v62  ;;  %855 = vst.msk [vmem:[%s1701_s17 + $0x50] sm:$0xf] %vm834_vm0, %v822_v63 }
  0xd7   : > { %v685_v1 = vpop.f32.mrf.mxu2 }
  0xd8   : > { %840 = vst.msk [vmem:[%s1701_s17 + $0x14] sm:$0xf] %vm834_vm0, %v807_v0  ;;  %v774_v2 = vpop.f32.mrf.mxu3  ;;  %v686_v5 = vadd.f32 %v1694_v48, %v685_v1 }
  0xd9   : > { %v648_v3 = vpop.f32.mrf.mxu0 }
  0xda   : > { %v737_v4 = vpop.f32.mrf.mxu1  ;;  %v649_v6 = vadd.f32 %v1694_v48, %v648_v3  ;;  %v1775_v7 = vadd.f32 %v774_v2, %v686_v5 }
  0xdc   : > { %v1777_v8 = vadd.f32 %v737_v4, %v649_v6  ;;  %v823_v9 = vpack.c.bf16 %v1775_v7, %v1775_v7 }
  0xde   : > { %v808_v10 = vpack.c.bf16 %v1777_v8, %v1777_v8  ;;  %856 = vst.msk [vmem:[%s1701_s17 + $0x54] sm:$0xf] %vm834_vm0, %v823_v9 }
  0xdf   : > { %v688_v11 = vpop.f32.mrf.mxu2 }
  0xe0   : > { %841 = vst.msk [vmem:[%s1701_s17 + $0x18] sm:$0xf] %vm834_vm0, %v808_v10  ;;  %v777_v12 = vpop.f32.mrf.mxu3  ;;  %v689_v16 = vadd.f32 %v1694_v48, %v688_v11 }
  0xe1   : > { %v650_v13 = vpop.f32.mrf.mxu0 }
  0xe2   : > { %v739_v15 = vpop.f32.mrf.mxu1  ;;  %v651_v17 = vadd.f32 %v1694_v48, %v650_v13  ;;  %v1789_v18 = vadd.f32 %v777_v12, %v689_v16 }
  0xe4   : > { %v1791_v19 = vadd.f32 %v739_v15, %v651_v17  ;;  %v824_v20 = vpack.c.bf16 %v1789_v18, %v1789_v18 }
  0xe6   : > { %v809_v21 = vpack.c.bf16 %v1791_v19, %v1791_v19  ;;  %857 = vst.msk [vmem:[%s1701_s17 + $0x58] sm:$0xf] %vm834_vm0, %v824_v20  ;;  %v944_v20 = vmul.f32 %v1763_v62, %v1763_v62 }
  0xe7   : > { %v690_v22 = vpop.f32.mrf.mxu2 }
  0xe8   : > { %842 = vst.msk [vmem:[%s1701_s17 + $0x1c] sm:$0xf] %vm834_vm0, %v809_v21  ;;  %v779_v23 = vpop.f32.mrf.mxu3  ;;  %v691_v26 = vadd.f32 %v1694_v48, %v690_v22  ;;  %v877_v22 = vsel %vm867_vm1, %v1763_v62, 0.0 }
  0xe9   : > { %v653_v24 = vpop.f32.mrf.mxu0 }
  0xea   : > { %v742_v25 = vpop.f32.mrf.mxu1  ;;  %v654_v27 = vadd.f32 %v1694_v48, %v653_v24  ;;  %v1803_v28 = vadd.f32 %v779_v23, %v691_v26  ;;  %v945_v23 = vmul.f32 %v1777_v8, %v1777_v8 }
  0xec   : > { %v1805_v30 = vadd.f32 %v742_v25, %v654_v27  ;;  %v825_v31 = vpack.c.bf16 %v1803_v28, %v1803_v28 }
  0xee   : > { %v810_v32 = vpack.c.bf16 %v1805_v30, %v1805_v30  ;;  %858 = vst.msk [vmem:[%s1701_s17 + $0x5c] sm:$0xf] %vm834_vm0, %v825_v31 }
  0xef   : > { %v693_v33 = vpop.f32.mrf.mxu2 }
  0xf0   : > { %843 = vst.msk [vmem:[%s1701_s17 + $0x20] sm:$0xf] %vm834_vm0, %v810_v32  ;;  %v782_v34 = vpop.f32.mrf.mxu3  ;;  %v694_v37 = vadd.f32 %v1694_v48, %v693_v33  ;;  %v980_v32 = vsel %vm867_vm1, %v944_v20, 0.0  ;;  %v879_v33 = vsel %vm867_vm1, %v1777_v8, 0.0 }
  0xf1   : > { %v655_v35 = vpop.f32.mrf.mxu0 }
  0xf2   : > { %v744_v36 = vpop.f32.mrf.mxu1  ;;  %v656_v38 = vadd.f32 %v1694_v48, %v655_v35  ;;  %v1817_v39 = vadd.f32 %v782_v34, %v694_v37  ;;  %v946_v34 = vmul.f32 %v1791_v19, %v1791_v19  ;;  %v878_v35 = vadd.f32 %v877_v22, %v1750_v51 }
  0xf3   : > { %v982_v37 = vsel %vm867_vm1, %v945_v23, 0.0 }
  0xf4   : > { %v1819_v40 = vadd.f32 %v744_v36, %v656_v38  ;;  %v826_v41 = vpack.c.bf16 %v1817_v39, %v1817_v39  ;;  %v881_v38 = vsel %vm867_vm1, %v1791_v19, 0.0  ;;  %v984_v51 = vsel %vm867_vm1, %v946_v34, 0.0 }
  0xf6   : > { %v811_v42 = vpack.c.bf16 %v1819_v40, %v1819_v40  ;;  %859 = vst.msk [vmem:[%s1701_s17 + $0x60] sm:$0xf] %vm834_vm0, %v826_v41  ;;  %v947_v41 = vmul.f32 %v1805_v30, %v1805_v30 }
  0xf7   : > { %v695_v43 = vpop.f32.mrf.mxu2 }
  0xf8   : > { %844 = vst.msk [vmem:[%s1701_s17 + $0x24] sm:$0xf] %vm834_vm0, %v811_v42  ;;  %v784_v45 = vpop.f32.mrf.mxu3  ;;  %v696_v49 = vadd.f32 %v1694_v48, %v695_v43  ;;  %v981_v42 = vadd.f32 %v980_v32, %v1757_v55  ;;  %v880_v43 = vadd.f32 %v879_v33, %v878_v35  ;;  %v885_v55 = vsel %vm867_vm1, %v1819_v40, 0.0 }
  0xf9   : > { %v658_v46 = vpop.f32.mrf.mxu0 }
  0xfa   : > { %v747_v47 = vpop.f32.mrf.mxu1  ;;  %v659_v50 = vadd.f32 %v1694_v48, %v658_v46  ;;  %v1831_v52 = vadd.f32 %v784_v45, %v696_v49  ;;  %v883_v46 = vsel %vm867_vm1, %v1805_v30, 0.0  ;;  %v983_v49 = vadd.f32 %v982_v37, %v981_v42 }
  0xfc   : > { %v1833_v53 = vadd.f32 %v747_v47, %v659_v50  ;;  %v827_v54 = vpack.c.bf16 %v1831_v52, %v1831_v52  ;;  %v948_v47 = vmul.f32 %v1819_v40, %v1819_v40  ;;  %v882_v50 = vadd.f32 %v881_v38, %v880_v43 }
  0xfe   : > { %v812_v56 = vpack.c.bf16 %v1833_v53, %v1833_v53  ;;  %860 = vst.msk [vmem:[%s1701_s17 + $0x64] sm:$0xf] %vm834_vm0, %v827_v54  ;;  %v986_v54 = vsel %vm867_vm1, %v947_v41, 0.0 }
  0xff   : > { %v698_v57 = vpop.f32.mrf.mxu2 }
 0x100   : > { %845 = vst.msk [vmem:[%s1701_s17 + $0x28] sm:$0xf] %vm834_vm0, %v812_v56  ;;  %v787_v58 = vpop.f32.mrf.mxu3  ;;  %v699_v0 = vadd.f32 %v1694_v48, %v698_v57  ;;  %v949_v56 = vmul.f32 %v1833_v53, %v1833_v53 }
 0x101   : > { %v660_v59 = vpop.f32.mrf.mxu0 }
 0x102   : > { %v749_v63 = vpop.f32.mrf.mxu1  ;;  %v661_v1 = vadd.f32 %v1694_v48, %v660_v59  ;;  %v1845_v2 = vadd.f32 %v787_v58, %v699_v0  ;;  %v985_v58 = vadd.f32 %v984_v51, %v983_v49  ;;  %v884_v59 = vadd.f32 %v883_v46, %v882_v50 }
 0x104   : > { %v1847_v3 = vadd.f32 %v749_v63, %v661_v1  ;;  %v828_v4 = vpack.c.bf16 %v1845_v2, %v1845_v2 }
 0x106   : > { %v813_v5 = vpack.c.bf16 %v1847_v3, %v1847_v3  ;;  %861 = vst.msk [vmem:[%s1701_s17 + $0x68] sm:$0xf] %vm834_vm0, %v828_v4  ;;  %v988_v4 = vsel %vm867_vm1, %v948_v47, 0.0  ;;  %v950_v40 = vmul.f32 %v1847_v3, %v1847_v3 }
 0x107   : > { %v700_v6 = vpop.f32.mrf.mxu2 }
 0x108   : > { %846 = vst.msk [vmem:[%s1701_s17 + $0x2c] sm:$0xf] %vm834_vm0, %v813_v5  ;;  %v789_v9 = vpop.f32.mrf.mxu3  ;;  %v701_v12 = vadd.f32 %v1694_v48, %v700_v6  ;;  %v887_v5 = vsel %vm867_vm1, %v1833_v53, 0.0  ;;  %v992_v23 = vsel %vm867_vm1, %v950_v40, 0.0 }
 0x109   : > { %v663_v10 = vpop.f32.mrf.mxu0 }
 0x10a   : > { %v752_v11 = vpop.f32.mrf.mxu1  ;;  %v664_v13 = vadd.f32 %v1694_v48, %v663_v10  ;;  %v1859_v15 = vadd.f32 %v789_v9, %v701_v12  ;;  %v987_v9 = vadd.f32 %v986_v54, %v985_v58  ;;  %v886_v10 = vadd.f32 %v885_v55, %v884_v59 }
 0x10b   : > { %v990_v12 = vsel %vm867_vm1, %v949_v56, 0.0  ;;  %v955_v55 = vmul.f32 %v1707_v60, %v1707_v60 }
 0x10c   : > { %v753_v16 = vadd.f32 %v752_v11, %v664_v13  ;;  %v829_v17 = vpack.c.bf16 %v1859_v15, %v1859_v15  ;;  %v889_v13 = vsel %vm867_vm1, %v1847_v3, 0.0  ;;  %v888_v53 = vadd.f32 %v887_v5, %v886_v10 }
 0x10d   : > { %v1002_v10 = vsel %vm867_vm1, %v955_v55, 0.0 }
 0x10e   : > { %v814_v21 = vpack.c.bf16 %v753_v16, %v753_v16  ;;  %862 = vst.msk [vmem:[%s1701_s17 + $0x6c] sm:$0xf] %vm834_vm0, %v829_v17  ;;  %v951_v17 = vmul.f32 %v753_v16, %v753_v16 }
 0x10f   : > { %v703_v24 = vpop.f32.mrf.mxu2 }
 0x110   : > { %847 = vst.msk [vmem:[%s1701_s17 + $0x30] sm:$0xf] %vm834_vm0, %v814_v21  ;;  %v792_v25 = vpop.f32.mrf.mxu3  ;;  %v704_v31 = vadd.f32 %v1694_v48, %v703_v24  ;;  %v989_v21 = vadd.f32 %v988_v4, %v987_v9  ;;  %v891_v24 = vsel %vm867_vm1, %v753_v16, 0.0  ;;  %v994_v32 = vsel %vm867_vm1, %v951_v17, 0.0 }
 0x111   : > { %v665_v26 = vpop.f32.mrf.mxu0 }
 0x112   : > { %v754_v27 = vpop.f32.mrf.mxu1  ;;  %v666_v62 = vadd.f32 %v1694_v48, %v665_v26  ;;  %v1881_v36 = vadd.f32 %v792_v25, %v704_v31  ;;  %v890_v31 = vadd.f32 %v889_v13, %v888_v53  ;;  %v903_v53 = vsel %vm867_vm1, %v1733_v29, 0.0 }
 0x114   : > { %v755_v8 = vadd.f32 %v754_v27, %v666_v62  ;;  %v830_v45 = vpack.c.bf16 %v1881_v36, %v1881_v36  ;;  %v991_v27 = vadd.f32 %v990_v12, %v989_v21  ;;  %v892_v37 = vadd.f32 %v891_v24, %v890_v31 }
 0x115   : > { %v901_v12 = vsel %vm867_vm1, %v1721_v14, 0.0 }
 0x116   : > { %v815_v19 = vpack.c.bf16 %v755_v8, %v755_v8  ;;  %863 = vst.msk [vmem:[%s1701_s17 + $0x70] sm:$0xf] %vm834_vm0, %v830_v45  ;;  %v952_v25 = vmul.f32 %v755_v8, %v755_v8  ;;  %v893_v3 = vsel %vm867_vm1, %v755_v8, 0.0  ;;  %v993_v35 = vadd.f32 %v992_v23, %v991_v27 }
 0x117   : > { %v705_v57 = vpop.f32.mrf.mxu2  ;;  %v894_v51 = vadd.f32 %v893_v3, %v892_v37  ;;  %v960_v3 = vmul.f32 %v1775_v7, %v1775_v7 }
 0x118   : > { %848 = vst.msk [vmem:[%s1701_s17 + $0x34] sm:$0xf] %vm834_vm0, %v815_v19  ;;  %v794_v30 = vpop.f32.mrf.mxu3  ;;  %v706_v1 = vadd.f32 %v1694_v48, %v705_v57  ;;  %v996_v41 = vsel %vm867_vm1, %v952_v25, 0.0  ;;  %v995_v45 = vadd.f32 %v994_v32, %v993_v35  ;;  %v905_v25 = vsel %vm867_vm1, %v1745_v44, 0.0 }
 0x119   : > { %v668_v63 = vpop.f32.mrf.mxu0  ;;  %v907_v32 = vsel %vm867_vm1, %v1761_v61, 0.0  ;;  %v961_v35 = vmul.f32 %v1789_v18, %v1789_v18 }
 0x11a   : > { %v757_v0 = vpop.f32.mrf.mxu1  ;;  %v669_v6 = vadd.f32 %v1694_v48, %v668_v63  ;;  %v1912_v11 = vadd.f32 %v794_v30, %v706_v1  ;;  %v997_v49 = vadd.f32 %v996_v41, %v995_v45  ;;  %v899_v63 = vsel %vm867_vm1, %v1707_v60, 0.0 }
 0x11b   : > { %v957_v60 = vmul.f32 %v1733_v29, %v1733_v29  ;;  %v962_v41 = vmul.f32 %v1803_v28, %v1803_v28  ;;  %v1014_v45 = vsel %vm867_vm1, %v961_v35, 0.0 }
 0x11c   : > { %v758_v20 = vadd.f32 %v757_v0, %v669_v6  ;;  %v831_v22 = vpack.c.bf16 %v1912_v11, %v1912_v11  ;;  %v956_v0 = vmul.f32 %v1721_v14, %v1721_v14 }
 0x11d   : > { %v1006_v24 = vsel %vm867_vm1, %v957_v60, 0.0 }
 0x11e   : > { %v816_v26 = vpack.c.bf16 %v758_v20, %v758_v20  ;;  %864 = vst.msk [vmem:[%s1701_s17 + $0x74] sm:$0xf] %vm834_vm0, %v831_v22  ;;  %v953_v33 = vmul.f32 %v758_v20, %v758_v20  ;;  %v895_v42 = vsel %vm867_vm1, %v758_v20, 0.0  ;;  %v1004_v21 = vsel %vm867_vm1, %v956_v0, 0.0 }
 0x11f   : > { %v708_v34 = vpop.f32.mrf.mxu2  ;;  %v896_v50 = vadd.f32 %v895_v42, %v894_v51  ;;  %v963_v51 = vmul.f32 %v1817_v39, %v1817_v39 }
 0x120   : > { %849 = vst.msk [vmem:[%s1701_s17 + $0x38] sm:$0xf] %vm834_vm0, %v816_v26  ;;  %v797_v62 = vpop.f32.mrf.mxu3  ;;  %v709_v16 = vadd.f32 %v1694_v48, %v708_v34  ;;  %v998_v47 = vsel %vm867_vm1, %v953_v33, 0.0  ;;  %v959_v26 = vmul.f32 %v1761_v61, %v1761_v61  ;;  %v911_v61 = vsel %vm867_vm1, %v1789_v18, 0.0 }
 0x121   : > { %v670_v38 = vpop.f32.mrf.mxu0  ;;  %v999_v58 = vadd.f32 %v998_v47, %v997_v49  ;;  %v915_v18 = vsel %vm867_vm1, %v1817_v39, 0.0  ;;  %v964_v49 = vmul.f32 %v1831_v52, %v1831_v52  ;;  %v1018_v55 = vsel %vm867_vm1, %v963_v51, 0.0 }
 0x122   : > { %v671_v43 = vadd.f32 %v1694_v48, %v670_v38  ;;  %v759_v8 = vpop.f32.mrf.mxu1  ;;  %v1931_v46 = vadd.f32 %v797_v62, %v709_v16  ;;  %v1010_v62 = vsel %vm867_vm1, %v959_v26, 0.0  ;;  %v1012_v16 = vsel %vm867_vm1, %v960_v3, 0.0 }
 0x123   : > { %v919_v39 = vsel %vm867_vm1, %v1845_v2, 0.0 }
 0x124   : > { %v760_v19 = vadd.f32 %v759_v8, %v671_v43  ;;  %v832_v54 = vpack.c.bf16 %v1931_v46, %v1931_v46 }
 0x126   : > { %v817_v56 = vpack.c.bf16 %v760_v19, %v760_v19  ;;  %v897_v57 = vsel %vm867_vm1, %v760_v19, 0.0  ;;  %v954_v30 = vmul.f32 %v760_v19, %v760_v19  ;;  %865 = vst.msk [vmem:[%s1701_s17 + $0x78] sm:$0xf] %vm834_vm0, %v832_v54  ;;  %v1016_v19 = vsel %vm867_vm1, %v962_v41, 0.0 }
 0x127   : > { %v898_v59 = vadd.f32 %v897_v57, %v896_v50  ;;  %v710_v4 = vpop.f32.mrf.mxu2 }
 0x128   : > { %850 = vst.msk [vmem:[%s1701_s17 + $0x3c] sm:$0xf] %vm834_vm0, %v817_v56  ;;  %v1000_v1 = vsel %vm867_vm1, %v954_v30, 0.0  ;;  %v799_v5 = vpop.f32.mrf.mxu3  ;;  %v711_v9 = vadd.f32 %v1694_v48, %v710_v4  ;;  %v958_v48 = vmul.f32 %v1745_v44, %v1745_v44  ;;  %v909_v44 = vsel %vm867_vm1, %v1775_v7, 0.0 }
 0x129   : > { %v900_v40 = vadd.f32 %v899_v63, %v898_v59  ;;  %v1001_v6 = vadd.f32 %v1000_v1, %v999_v58  ;;  %v913_v7 = vsel %vm867_vm1, %v1803_v28, 0.0  ;;  %v917_v28 = vsel %vm867_vm1, %v1831_v52, 0.0 }
 0x12a   : > { %v1954_v20 = vadd.f32 %v799_v5, %v711_v9  ;;  %v1008_v29 = vsel %vm867_vm1, %v958_v48, 0.0  ;;  %v965_v56 = vmul.f32 %v1845_v2, %v1845_v2  ;;  %v1020_v58 = vsel %vm867_vm1, %v964_v49, 0.0 }
 0x12b   : > { %v902_v13 = vadd.f32 %v901_v12, %v900_v40  ;;  %v1003_v17 = vadd.f32 %v1002_v10, %v1001_v6  ;;  %v966_v59 = vmul.f32 %v1859_v15, %v1859_v15  ;;  %v921_v52 = vsel %vm867_vm1, %v1859_v15, 0.0 }
 0x12c   : > { %v833_v14 = vpack.c.bf16 %v1954_v20, %v1954_v20  ;;  %v1022_v1 = vsel %vm867_vm1, %v965_v56, 0.0  ;;  %v967_v4 = vmul.f32 %v1881_v36, %v1881_v36  ;;  %v923_v2 = vsel %vm867_vm1, %v1881_v36, 0.0 }
 0x12d   : > { %v904_v22 = vadd.f32 %v903_v53, %v902_v13  ;;  %v1005_v23 = vadd.f32 %v1004_v21, %v1003_v17  ;;  %v1024_v6 = vsel %vm867_vm1, %v966_v59, 0.0  ;;  %v968_v9 = vmul.f32 %v1912_v11, %v1912_v11 }
 0x12e   : > { %866 = vst.msk [vmem:[%s1701_s17 + $0x7c] sm:$0xf] %vm834_vm0, %v833_v14  ;;  %v1026_v60 = vsel %vm867_vm1, %v967_v4, 0.0  ;;  %v925_v15 = vsel %vm867_vm1, %v1912_v11, 0.0  ;;  %v969_v13 = vmul.f32 %v1931_v46, %v1931_v46  ;;  %v927_v36 = vsel %vm867_vm1, %v1931_v46, 0.0 }
 0x12f   : > { %v906_v27 = vadd.f32 %v905_v25, %v904_v22  ;;  %v1007_v31 = vadd.f32 %v1006_v24, %v1005_v23  ;;  %v1028_v53 = vsel %vm867_vm1, %v968_v9, 0.0  ;;  %v970_v48 = vmul.f32 %v1954_v20, %v1954_v20 }
 0x130   : > { %v1030_v14 = vsel %vm867_vm1, %v969_v13, 0.0  ;;  %v929_v11 = vsel %vm867_vm1, %v1954_v20, 0.0 }
 0x131   : > { %v908_v33 = vadd.f32 %v907_v32, %v906_v27  ;;  %v1009_v34 = vadd.f32 %v1008_v29, %v1007_v31  ;;  %v1032_v26 = vsel %vm867_vm1, %v970_v48, 0.0 }
 0x133   : > { %v910_v37 = vadd.f32 %v909_v44, %v908_v33  ;;  %v1011_v38 = vadd.f32 %v1010_v62, %v1009_v34 }
 0x135   : > { %v1013_v42 = vadd.f32 %v1012_v16, %v1011_v38  ;;  %v912_v43 = vadd.f32 %v911_v61, %v910_v37 }
 0x137   : > { %v914_v8 = vadd.f32 %v913_v7, %v912_v43  ;;  %v1015_v47 = vadd.f32 %v1014_v45, %v1013_v42 }
 0x139   : > { %v916_v50 = vadd.f32 %v915_v18, %v914_v8  ;;  %v1017_v54 = vadd.f32 %v1016_v19, %v1015_v47 }
 0x13b   : > { %v918_v57 = vadd.f32 %v917_v28, %v916_v50  ;;  %v1019_v30 = vadd.f32 %v1018_v55, %v1017_v54 }
 0x13d   : > { %v920_v63 = vadd.f32 %v919_v39, %v918_v57  ;;  %v1021_v0 = vadd.f32 %v1020_v58, %v1019_v30 }
 0x13f   : > { %v922_v5 = vadd.f32 %v921_v52, %v920_v63  ;;  %v1023_v40 = vadd.f32 %v1022_v1, %v1021_v0 }
 0x141   : > { %v924_v10 = vadd.f32 %v923_v2, %v922_v5  ;;  %v1025_v12 = vadd.f32 %v1024_v6, %v1023_v40 }
 0x143   : > { %v1027_v17 = vadd.f32 %v1026_v60, %v1025_v12  ;;  %v926_v21 = vadd.f32 %v925_v15, %v924_v10 }
 0x145   : > { %v1029_v22 = vadd.f32 %v1028_v53, %v1027_v17  ;;  %v928_v23 = vadd.f32 %v927_v36, %v926_v21 }
 0x147   : > { %v1031_v24 = vadd.f32 %v1030_v14, %v1029_v22  ;;  %v930_v25 = vadd.f32 %v929_v11, %v928_v23 }
 0x149   : > { %v931_v27 = vrot.slane %v930_v25, 4  ;;  %v1033_v31 = vadd.f32 %v1032_v26, %v1031_v24 }
 0x14b   : > { %v932_v29 = vadd.f32 %v931_v27, %v930_v25  ;;  %v1034_v46 = vrot.slane %v1033_v31, 4 }
 0x14d   : > { %v933_v32 = vrot.slane %v932_v29, 2  ;;  %v1035_v3 = vadd.f32 %v1034_v46, %v1033_v31 }
 0x14f   : > { %v934_v33 = vadd.f32 %v933_v32, %v932_v29  ;;  %v1036_v34 = vrot.slane %v1035_v3, 2 }
 0x151   : > { %v935_v62 = vrot.slane %v934_v33, 1  ;;  %v1037_v44 = vadd.f32 %v1036_v34, %v1035_v3 }
 0x153   : > { %v936_v20 = vadd.f32 %v935_v62, %v934_v33  ;;  %v1038_v35 = vrot.slane %v1037_v44, 1 }
 0x155   : > { %938 = vst.msk [vmem:[%s293_s24] sm:$0x1] %vm937_vm2, %v936_v20  ;;  %v1039_v37 = vadd.f32 %v1038_v35, %v1037_v44 }
 0x157   : > { %1040 = vst.msk [vmem:[%s299_s27] sm:$0x1] %vm937_vm2, %v1039_v37 }
 0x158 PF: > { %s16_s20 = sadd.s32 1, %s1517_s20   ;;  %s2052_s18 = smov %s1513_s19 }
 0x159   : > { %p13_p5 = scmp.ge.s32.totalorder %s16_s20, 4   ;;  %s2053_s19 = smov %s2055_s21 }
 0x15b   :  { %15 = sbr.rel (!%p13_p5) target bundleno = 2 (0x2), region = 86 }

// kernel: mul.14
= control target key start
LH: loop header
LB: loop body
LE: loop exit
PB: predicated region body
PF: predicated region fallthrough
CT: control target
= control target key end

     0   :  { %s34_s0 = inlined_call_operand.vmem [shape: f32[2,1,16], index: 0, kind: input, shape index: {}, may-alias: {0,1}]   ;;  %s35_s1 = inlined_call_operand.vmem [shape: f32[2,1,16], index: 1, kind: input, shape index: {}, may-alias: {0,1}]   ;;  %s36_s2 = inlined_call_operand.vmem [shape: f32[2,1,16], index: 2, kind: output, shape index: {}]  }
   0x1   :  { %v3_v0 = vld [vmem:[%s34_s0] sm:$0x3] }
   0x2   :  { %v4_v1 = vld [vmem:[%s35_s1] sm:$0x3] }
   0x3   :  { %v7_v2 = vmul.f32 %v4_v1, %v3_v0 }
   0x5   :  { %9 = vst [vmem:[%s36_s2] sm:$0x3] %v7_v2 }

// kernel: generator_forward.22
= control target key start
LH: loop header
LB: loop body
LE: loop exit
PB: predicated region body
PF: predicated region fallthrough
CT: control target
= control target key end

     0   :  { %s522_s12 = smov 0   ;;  %s524_s13 = smov 0   ;;  %s578_s0 = inlined_call_operand.vmem [shape: bf16[2,64,16], index: 0, kind: input, shape index: {}]   ;;  %s579_s1 = inlined_call_operand.vmem [shape: f32[2,1,16], index: 1, kind: input, shape index: {}]   ;;  %s580_s2 = inlined_call_operand.vmem [shape: f32[2,1,16], index: 2, kind: input, shape index: {}]   ;;  %s581_s3 = inlined_call_operand.vmem [shape: bf16[2,64,16], index: 3, kind: output, shape index: {}]  }
   0x1   :  { %s526_s14 = smov 0  }
   0x2 LB: > { %s25_s15 = sadd.s32 1, %s496_s13  ;;  %p423_p0 = scmp.ge.s32.totalorder %s500_s14, 1  ;;  %s500_s14 = sphi %s526_s14, %s13_s14   ;;  %s496_s13 = sphi %s524_s13, %s583_s13   ;;  %s492_s12 = sphi %s522_s12, %s582_s12  }
   0x3   : > { %p27_p1 = scmp.ge.s32.totalorder %s25_s15, 2  ;;  %p174_p2 = scmp.lt.s32.totalorder %s500_s14, 3 }
   0x5   : > { %s585_s15 = smov (%p27_p1, %s25_s15), 0  ;;  %p175_p3 = pnand %p423_p0, %p174_p2 }
   0x6   : > { %p213_p4 = scmp.lt.s32.totalorder (!%p175_p3), %s492_s12, 1 }
   0x7   : > { %178 = sbr.rel (%p175_p3) target bundleno = 51 (0x33), region = 32 }
   0xc   : > { %s587_s12 = smov (!%p213_p4, %s492_s12), 1  ;;  %vm305_vm3 = vcmask 125952  }
   0xd   : > { %s224_s18 = scalar_lea.vmem %s579_s1, %s587_s12  ;;  %s227_s21 = scalar_lea.vmem %s580_s2, %s587_s12 }
   0xe   : > { %v238_v0 = vld [vmem:[%s227_s21] sm:$0x1]  ;;  %s430_s22 = sshll.u32 %s587_s12, 5 }
   0xf   : > { %v239_v1 = vadd.f32 1e-05, %v238_v0  ;;  %s220_s25 = scalar_lea.vmem %s578_s0, %s430_s22  ;;  %v475_v11 = vld [vmem:[%s224_s18] ss:$0 sm:$0xff]  ;;  %s236_s28 = scalar_lea.vmem %s581_s3, %s430_s22 }
  0x10   : > { %v433_v4 = vld [vmem:[%s220_s25] sm:$0xff]   ;;  %v448_v6 = vld [vmem:[%s220_s25 + $0x8] sm:$0xff]   ;;  %v449_v7 = vld [vmem:[%s220_s25 + $0x10] sm:$0xff]  }
  0x11   : > { %476 = vrsqrt.f32 %v239_v1  ;;  %v450_v8 = vld [vmem:[%s220_s25 + $0x18] sm:$0xff]   ;;  %vm246_vm0 = vweird.f32 %v239_v1  ;;  %v434_v10 = vunpack.c.l.bf16 %v433_v4  ;;  %v435_v12 = vunpack.c.h.bf16 %v433_v4 }
  0x12   : > { %v438_v13 = vunpack.c.l.bf16 %v448_v6  ;;  %v439_v14 = vunpack.c.h.bf16 %v448_v6  ;;  %v442_v15 = vunpack.c.l.bf16 %v449_v7  ;;  %v443_v17 = vunpack.c.h.bf16 %v449_v7 }
  0x13   : > { %v446_v18 = vunpack.c.l.bf16 %v450_v8  ;;  %v447_v19 = vunpack.c.h.bf16 %v450_v8  ;;  %v270_v21 = vsub.f32 %v434_v10, %v475_v11  ;;  %v271_v22 = vsub.f32 %v435_v12, %v475_v11 }
  0x14   : > { %v272_v23 = vsub.f32 %v438_v13, %v475_v11  ;;  %v273_v24 = vsub.f32 %v439_v14, %v475_v11  ;;  %v274_v25 = vsub.f32 %v442_v15, %v475_v11  ;;  %v275_v27 = vsub.f32 %v443_v17, %v475_v11 }
  0x15   : > { %v276_v28 = vsub.f32 %v446_v18, %v475_v11  ;;  %v277_v29 = vsub.f32 %v447_v19, %v475_v11 }
  0x17   : > { %v477_v2 = vpop.eup %476 }
  0x18   : > { %v241_v3 = vmul.f32 %v477_v2, %v239_v1  ;;  %vm247_vm1 = vweird.f32 %v477_v2 }
  0x19   : > { %vm248_vm2 = vmor %vm246_vm0, %vm247_vm1 }
  0x1a   : > { %v242_v5 = vmul.f32 %v477_v2, %v241_v3 }
  0x1c   : > { %v243_v9 = vmul.f32 0.5, %v242_v5 }
  0x1e   : > { %v244_v16 = vsub.f32 1.5, %v243_v9 }
  0x20   : > { %v245_v20 = vmul.f32 %v477_v2, %v244_v16 }
  0x22   : > { %v249_v26 = vsel %vm248_vm2, %v477_v2, %v245_v20 }
  0x23   : > { %v279_v30 = vperm.slane %v249_v26, 0 }
  0x25   : > { %v281_v31 = vmul.f32 %v279_v30, %v270_v21  ;;  %v282_v32 = vmul.f32 %v279_v30, %v271_v22  ;;  %v283_v33 = vmul.f32 %v279_v30, %v272_v23  ;;  %v284_v34 = vmul.f32 %v279_v30, %v273_v24 }
  0x26   : > { %v285_v35 = vmul.f32 %v279_v30, %v274_v25  ;;  %v286_v36 = vmul.f32 %v279_v30, %v275_v27  ;;  %v287_v37 = vmul.f32 %v279_v30, %v276_v28  ;;  %v288_v38 = vmul.f32 %v279_v30, %v277_v29 }
  0x27   : > { %v289_v39 = vmax.f32 %v281_v31, 0.0  ;;  %v290_v40 = vmax.f32 %v282_v32, 0.0  ;;  %v291_v41 = vmax.f32 %v283_v33, 0.0  ;;  %v292_v42 = vmax.f32 %v284_v34, 0.0 }
  0x28   : > { %v293_v43 = vmax.f32 %v285_v35, 0.0  ;;  %v294_v44 = vmax.f32 %v286_v36, 0.0  ;;  %v295_v48 = vmax.f32 %v287_v37, 0.0  ;;  %v296_v50 = vmax.f32 %v288_v38, 0.0 }
  0x29   : > { %v297_v45 = vpack.c.bf16 %v289_v39, %v289_v39  ;;  %v298_v46 = vpack.c.bf16 %v290_v40, %v290_v40  ;;  %v299_v47 = vpack.c.bf16 %v291_v41, %v291_v41  ;;  %v300_v49 = vpack.c.bf16 %v292_v42, %v292_v42 }
  0x2a   : > { %v301_v51 = vpack.c.bf16 %v293_v43, %v293_v43  ;;  %v302_v52 = vpack.c.bf16 %v294_v44, %v294_v44  ;;  %v303_v53 = vpack.c.bf16 %v295_v48, %v295_v48  ;;  %v304_v54 = vpack.c.bf16 %v296_v50, %v296_v50 }
  0x2b   : > { %306 = vst.msk [vmem:[%s236_s28] sm:$0xf] %vm305_vm3, %v297_v45 }
  0x2c   : > { %307 = vst.msk [vmem:[%s236_s28 + $0x4] sm:$0xf] %vm305_vm3, %v298_v46 }
  0x2d   : > { %308 = vst.msk [vmem:[%s236_s28 + $0x8] sm:$0xf] %vm305_vm3, %v299_v47 }
  0x2e   : > { %309 = vst.msk [vmem:[%s236_s28 + $0xc] sm:$0xf] %vm305_vm3, %v300_v49 }
  0x2f   : > { %310 = vst.msk [vmem:[%s236_s28 + $0x10] sm:$0xf] %vm305_vm3, %v301_v51 }
  0x30   : > { %311 = vst.msk [vmem:[%s236_s28 + $0x14] sm:$0xf] %vm305_vm3, %v302_v52 }
  0x31   : > { %312 = vst.msk [vmem:[%s236_s28 + $0x18] sm:$0xf] %vm305_vm3, %v303_v53 }
  0x32   : > { %313 = vst.msk [vmem:[%s236_s28 + $0x1c] sm:$0xf] %vm305_vm3, %v304_v54 }
  0x33 PF: > { %s13_s14 = sadd.s32 1, %s500_s14   ;;  %s582_s12 = smov %s496_s13 }
  0x34   : > { %p10_p5 = scmp.ge.s32.totalorder %s13_s14, 4   ;;  %s583_s13 = smov %s585_s15 }
  0x36   :  { %12 = sbr.rel (!%p10_p5) target bundleno = 2 (0x2), region = 68 }

// kernel: generator_forward.21
= control target key start
LH: loop header
LB: loop body
LE: loop exit
PB: predicated region body
PF: predicated region fallthrough
CT: control target
= control target key end

     0   :  { %s830_s18 = smov 0   ;;  %s832_s19 = smov 0   ;;  %s939_s0 = inlined_call_operand.vmem [shape: bf16[2,64,128], index: 0, kind: input, shape index: {}]   ;;  %s940_s1 = inlined_call_operand.vmem [shape: bf16[128,16], index: 1, kind: input, shape index: {}]   ;;  %s941_s2 = inlined_call_operand.vmem [shape: f32[1,16], index: 2, kind: input, shape index: {}]   ;;  %s942_s3 = inlined_call_operand.vmem [shape: bf16[2,64,16], index: 3, kind: output, shape index: {0}]   ;;  %s943_s4 = inlined_call_operand.vmem [shape: f32[2,1,1,16], index: 4, kind: output, shape index: {1}]   ;;  %s944_s5 = inlined_call_operand.vmem [shape: f32[2,1,1,16], index: 5, kind: output, shape index: {2}]  }
   0x1   :  { %s834_s20 = smov 0  }
   0x2 LB: > { %s28_s21 = sadd.s32 1, %s794_s19  ;;  %p658_p0 = scmp.ge.s32.totalorder %s798_s20, 1  ;;  %s798_s20 = sphi %s834_s20, %s16_s20   ;;  %s794_s19 = sphi %s832_s19, %s946_s19   ;;  %s790_s18 = sphi %s830_s18, %s945_s18  }
   0x3   : > { %p30_p1 = scmp.ge.s32.totalorder %s28_s21, 2  ;;  %p217_p2 = scmp.lt.s32.totalorder %s798_s20, 3 }
   0x5   : > { %s948_s21 = smov (%p30_p1, %s28_s21), 0  ;;  %p218_p3 = pnand %p658_p0, %p217_p2 }
   0x6   : > { %p266_p4 = scmp.lt.s32.totalorder (!%p218_p3), %s790_s18, 1 }
   0x7   : > { %221 = sbr.rel (%p218_p3) target bundleno = 210 (0xd2), region = 32 }
   0xc   : > { %v726_v0 = vld [vmem:[%s940_s1 + $0x38] sm:$0xff]  ;;  %v725_v1 = vld [vmem:[%s940_s1 + $0x30] sm:$0xff]  ;;  %v724_v2 = vld [vmem:[%s940_s1 + $0x28] sm:$0xff]  ;;  %s950_s18 = smov (!%p266_p4, %s790_s18), 1  ;;  %vm434_vm0 = vcmask 125952   ;;  %vm443_vm1 = vcmask 130048  }
   0xd   : > { %397 = vmatpush.bf16.msra.mxu0 %v726_v0  ;;  %727 = vmatpush.bf16.msra.mxu1 %v726_v0  ;;  %v723_v3 = vld [vmem:[%s940_s1 + $0x20] sm:$0xff]  ;;  %v722_v4 = vld [vmem:[%s940_s1 + $0x18] sm:$0xff]  ;;  %v721_v5 = vld [vmem:[%s940_s1 + $0x10] sm:$0xff]  ;;  %s713_s11 = sshll.u32 %s950_s18, 5  ;;  %s290_s28 = scalar_lea.vmem %s943_s4, %s950_s18  ;;  %vm465_vm2 = vcmask 122880  }
   0xe   : > { %728 = vmatpush.bf16.msra.mxu2 %v726_v0  ;;  %729 = vmatpush.bf16.msra.mxu3 %v726_v0  ;;  %v720_v6 = vld [vmem:[%s940_s1 + $0x8] sm:$0xff]  ;;  %v719_v7 = vld [vmem:[%s940_s1] sm:$0xff]  ;;  %s273_s16 = scalar_lea.vmem %s939_s0, %s713_s11  ;;  %s888_s25 = scalar_lea.vmem %s942_s3, %s713_s11 }
   0xf   : > { %v715_v8 = vld [vmem:[%s273_s16] sm:$0xff]  ;;  %v716_v9 = vld [vmem:[%s273_s16 + $0x8] sm:$0xff]  ;;  %v717_v10 = vld [vmem:[%s273_s16 + $0x10] sm:$0xff]  ;;  %s296_s6 = scalar_lea.vmem %s944_s5, %s950_s18 }
  0x10   : > { %v718_v11 = vld [vmem:[%s273_s16 + $0x18] sm:$0xff]  ;;  %v775_v12 = vld [vmem:[%s941_s2] ss:$0 sm:$0xff] }
  0x11   : > { %398 = vmatpush.bf16.msra.mxu0 %v725_v1  ;;  %730 = vmatpush.bf16.msra.mxu1 %v725_v1 }
  0x12   : > { %731 = vmatpush.bf16.msra.mxu2 %v725_v1  ;;  %732 = vmatpush.bf16.msra.mxu3 %v725_v1 }
  0x15   : > { %399 = vmatpush.bf16.msra.mxu0 %v724_v2  ;;  %733 = vmatpush.bf16.msra.mxu1 %v724_v2 }
  0x16   : > { %734 = vmatpush.bf16.msra.mxu2 %v724_v2  ;;  %735 = vmatpush.bf16.msra.mxu3 %v724_v2 }
  0x19   : > { %400 = vmatpush.bf16.msra.mxu0 %v723_v3  ;;  %736 = vmatpush.bf16.msra.mxu1 %v723_v3 }
  0x1a   : > { %737 = vmatpush.bf16.msra.mxu2 %v723_v3  ;;  %738 = vmatpush.bf16.msra.mxu3 %v723_v3 }
  0x1d   : > { %401 = vmatpush.bf16.msra.mxu0 %v722_v4  ;;  %739 = vmatpush.bf16.msra.mxu1 %v722_v4 }
  0x1e   : > { %740 = vmatpush.bf16.msra.mxu2 %v722_v4  ;;  %741 = vmatpush.bf16.msra.mxu3 %v722_v4 }
  0x21   : > { %402 = vmatpush.bf16.msra.mxu0 %v721_v5  ;;  %742 = vmatpush.bf16.msra.mxu1 %v721_v5 }
  0x22   : > { %743 = vmatpush.bf16.msra.mxu2 %v721_v5  ;;  %744 = vmatpush.bf16.msra.mxu3 %v721_v5 }
  0x25   : > { %403 = vmatpush.bf16.msra.mxu0 %v720_v6  ;;  %745 = vmatpush.bf16.msra.mxu1 %v720_v6 }
  0x26   : > { %746 = vmatpush.bf16.msra.mxu2 %v720_v6  ;;  %747 = vmatpush.bf16.msra.mxu3 %v720_v6 }
  0x29   : > { %404 = vmatpush.bf16.msra.mxu0 %v719_v7  ;;  %748 = vmatpush.bf16.msra.mxu1 %v719_v7 }
  0x2a   : > { %749 = vmatpush.bf16.msra.mxu2 %v719_v7  ;;  %750 = vmatpush.bf16.msra.mxu3 %v719_v7 }
  0x2c   : > { %405 = vmatmul.bf16.vlgmr.msra.gmra.mxu0 %v715_v8  ;;  %410 = vmatmul.bf16.vlgmr.msra.gmra.mxu1 %v716_v9 }
  0x2d   : > { %415 = vmatmul.bf16.vlgmr.msra.gmra.mxu2 %v717_v10  ;;  %420 = vmatmul.bf16.vlgmr.msra.gmra.mxu3 %v718_v11 }
  0xa9   : > { %v406_v13 = vpop.f32.mrf.mxu0  ;;  %v411_v14 = vpop.f32.mrf.mxu1 }
  0xaa   : > { %v407_v15 = vadd.f32 %v775_v12, %v406_v13  ;;  %v412_v16 = vadd.f32 %v775_v12, %v411_v14 }
  0xac   : > { %v426_v17 = vpack.c.bf16 %v407_v15, %v407_v15  ;;  %v428_v18 = vpack.c.bf16 %v412_v16, %v412_v16  ;;  %v467_v27 = vmul.f32 %v407_v15, %v407_v15  ;;  %v444_v30 = vsel %vm443_vm1, %v407_v15, 0.0 }
  0xad   : > { %v469_v31 = vmul.f32 %v412_v16, %v412_v16  ;;  %v447_v37 = vsel %vm443_vm1, %v412_v16, 0.0 }
  0xae   : > { %435 = vst.msk [vmem:[%s888_s25] sm:$0xf] %vm434_vm0, %v426_v17  ;;  %v475_v38 = vsel %vm443_vm1, %v467_v27, 0.0 }
  0xaf   : > { %437 = vst.msk [vmem:[%s888_s25 + $0x8] sm:$0xf] %vm434_vm0, %v428_v18  ;;  %v478_v42 = vsel %vm443_vm1, %v469_v31, 0.0 }
  0xb0   : > { %v416_v19 = vpop.f32.mrf.mxu2  ;;  %v421_v20 = vpop.f32.mrf.mxu3 }
  0xb1   : > { %v417_v21 = vadd.f32 %v775_v12, %v416_v19  ;;  %v422_v22 = vadd.f32 %v775_v12, %v421_v20  ;;  %v408_v23 = vpop.f32.mrf.mxu0  ;;  %v413_v24 = vpop.f32.mrf.mxu1 }
  0xb2   : > { %v409_v25 = vadd.f32 %v775_v12, %v408_v23  ;;  %v414_v26 = vadd.f32 %v775_v12, %v413_v24 }
  0xb3   : > { %v430_v28 = vpack.c.bf16 %v417_v21, %v417_v21  ;;  %v432_v29 = vpack.c.bf16 %v422_v22, %v422_v22  ;;  %v471_v47 = vmul.f32 %v417_v21, %v417_v21  ;;  %v451_v51 = vsel %vm443_vm1, %v417_v21, 0.0 }
  0xb4   : > { %v427_v32 = vpack.c.bf16 %v409_v25, %v409_v25  ;;  %v445_v33 = vsel %vm443_vm1, %v409_v25, 0.0  ;;  %v468_v35 = vmul.f32 %v409_v25, %v409_v25  ;;  %v429_v36 = vpack.c.bf16 %v414_v26, %v414_v26 }
  0xb5   : > { %439 = vst.msk [vmem:[%s888_s25 + $0x10] sm:$0xf] %vm434_vm0, %v430_v28  ;;  %v446_v34 = vadd.f32 %v445_v33, %v444_v30  ;;  %v470_v41 = vmul.f32 %v414_v26, %v414_v26  ;;  %v449_v44 = vsel %vm443_vm1, %v414_v26, 0.0  ;;  %v482_v60 = vsel %vm443_vm1, %v471_v47, 0.0 }
  0xb6   : > { %441 = vst.msk [vmem:[%s888_s25 + $0x18] sm:$0xf] %vm434_vm0, %v432_v29  ;;  %v476_v39 = vsel %vm443_vm1, %v468_v35, 0.0  ;;  %v473_v61 = vmul.f32 %v422_v22, %v422_v22  ;;  %v455_v63 = vsel %vm443_vm1, %v422_v22, 0.0 }
  0xb7   : > { %436 = vst.msk [vmem:[%s888_s25 + $0x4] sm:$0xf] %vm434_vm0, %v427_v32  ;;  %v448_v40 = vadd.f32 %v447_v37, %v446_v34  ;;  %v477_v43 = vadd.f32 %v476_v39, %v475_v38  ;;  %v480_v53 = vsel %vm443_vm1, %v470_v41, 0.0 }
  0xb8   : > { %438 = vst.msk [vmem:[%s888_s25 + $0xc] sm:$0xf] %vm434_vm0, %v429_v36  ;;  %v418_v45 = vpop.f32.mrf.mxu2  ;;  %v423_v46 = vpop.f32.mrf.mxu3  ;;  %v486_v6 = vsel %vm443_vm1, %v473_v61, 0.0 }
  0xb9   : > { %v450_v48 = vadd.f32 %v449_v44, %v448_v40  ;;  %v419_v49 = vadd.f32 %v775_v12, %v418_v45  ;;  %v424_v50 = vadd.f32 %v775_v12, %v423_v46  ;;  %v479_v52 = vadd.f32 %v478_v42, %v477_v43 }
  0xbb   : > { %v431_v54 = vpack.c.bf16 %v419_v49, %v419_v49  ;;  %v452_v55 = vadd.f32 %v451_v51, %v450_v48  ;;  %v472_v56 = vmul.f32 %v419_v49, %v419_v49  ;;  %v481_v57 = vadd.f32 %v480_v53, %v479_v52 }
  0xbc   : > { %v453_v58 = vsel %vm443_vm1, %v419_v49, 0.0  ;;  %v433_v59 = vpack.c.bf16 %v424_v50, %v424_v50  ;;  %v474_v3 = vmul.f32 %v424_v50, %v424_v50  ;;  %v457_v5 = vsel %vm443_vm1, %v424_v50, 0.0 }
  0xbd   : > { %440 = vst.msk [vmem:[%s888_s25 + $0x14] sm:$0xf] %vm434_vm0, %v431_v54  ;;  %v454_v62 = vadd.f32 %v453_v58, %v452_v55  ;;  %v483_v0 = vadd.f32 %v482_v60, %v481_v57  ;;  %v484_v1 = vsel %vm443_vm1, %v472_v56, 0.0 }
  0xbe   : > { %442 = vst.msk [vmem:[%s888_s25 + $0x1c] sm:$0xf] %vm434_vm0, %v433_v59  ;;  %v488_v10 = vsel %vm443_vm1, %v474_v3, 0.0 }
  0xbf   : > { %v456_v2 = vadd.f32 %v455_v63, %v454_v62  ;;  %v485_v4 = vadd.f32 %v484_v1, %v483_v0 }
  0xc1   : > { %v458_v7 = vadd.f32 %v457_v5, %v456_v2  ;;  %v487_v8 = vadd.f32 %v486_v6, %v485_v4 }
  0xc3   : > { %v459_v9 = vrot.slane %v458_v7, 4  ;;  %v489_v11 = vadd.f32 %v488_v10, %v487_v8 }
  0xc5   : > { %v460_v12 = vadd.f32 %v459_v9, %v458_v7  ;;  %v490_v13 = vrot.slane %v489_v11, 4 }
  0xc7   : > { %v461_v14 = vrot.slane %v460_v12, 2  ;;  %v491_v15 = vadd.f32 %v490_v13, %v489_v11 }
  0xc9   : > { %v462_v16 = vadd.f32 %v461_v14, %v460_v12  ;;  %v492_v17 = vrot.slane %v491_v15, 2 }
  0xcb   : > { %v463_v18 = vrot.slane %v462_v16, 1  ;;  %v493_v19 = vadd.f32 %v492_v17, %v491_v15 }
  0xcd   : > { %v464_v20 = vadd.f32 %v463_v18, %v462_v16  ;;  %v494_v21 = vrot.slane %v493_v19, 1 }
  0xcf   : > { %466 = vst.msk [vmem:[%s290_s28] sm:$0x1] %vm465_vm2, %v464_v20  ;;  %v495_v22 = vadd.f32 %v494_v21, %v493_v19 }
  0xd1   : > { %496 = vst.msk [vmem:[%s296_s6] sm:$0x1] %vm465_vm2, %v495_v22 }
  0xd2 PF: > { %s16_s20 = sadd.s32 1, %s798_s20   ;;  %s945_s18 = smov %s794_s19 }
  0xd3   : > { %p13_p5 = scmp.ge.s32.totalorder %s16_s20, 4   ;;  %s946_s19 = smov %s948_s21 }
  0xd5   :  { %15 = sbr.rel (!%p13_p5) target bundleno = 2 (0x2), region = 86 }

// kernel: mul.15
= control target key start
LH: loop header
LB: loop body
LE: loop exit
PB: predicated region body
PF: predicated region fallthrough
CT: control target
= control target key end

     0   :  { %s34_s0 = inlined_call_operand.vmem [shape: f32[2,1,32], index: 0, kind: input, shape index: {}, may-alias: {0,1}]   ;;  %s35_s1 = inlined_call_operand.vmem [shape: f32[2,1,32], index: 1, kind: input, shape index: {}, may-alias: {0,1}]   ;;  %s36_s2 = inlined_call_operand.vmem [shape: f32[2,1,32], index: 2, kind: output, shape index: {}]  }
   0x1   :  { %v3_v0 = vld [vmem:[%s34_s0] sm:$0x3] }
   0x2   :  { %v4_v1 = vld [vmem:[%s35_s1] sm:$0x3] }
   0x3   :  { %v7_v2 = vmul.f32 %v4_v1, %v3_v0 }
   0x5   :  { %9 = vst [vmem:[%s36_s2] sm:$0x3] %v7_v2 }

// kernel: generator_forward.23
= control target key start
LH: loop header
LB: loop body
LE: loop exit
PB: predicated region body
PF: predicated region fallthrough
CT: control target
= control target key end

     0   :  { %s843_s18 = smov 0   ;;  %s845_s19 = smov 0   ;;  %s939_s0 = inlined_call_operand.vmem [shape: bf16[2,16,256], index: 0, kind: input, shape index: {}]   ;;  %s940_s1 = inlined_call_operand.vmem [shape: bf16[256,32], index: 1, kind: input, shape index: {}]   ;;  %s941_s2 = inlined_call_operand.vmem [shape: f32[1,32], index: 2, kind: input, shape index: {}]   ;;  %s942_s3 = inlined_call_operand.vmem [shape: bf16[2,16,32], index: 3, kind: output, shape index: {0}]   ;;  %s943_s4 = inlined_call_operand.vmem [shape: f32[2,1,1,32], index: 4, kind: output, shape index: {1}]   ;;  %s944_s5 = inlined_call_operand.vmem [shape: f32[2,1,1,32], index: 5, kind: output, shape index: {2}]  }
   0x1   :  { %s847_s20 = smov 0  }
   0x2 LB: > { %s28_s21 = sadd.s32 1, %s807_s19  ;;  %p665_p0 = scmp.ge.s32.totalorder %s811_s20, 1  ;;  %s811_s20 = sphi %s847_s20, %s16_s20   ;;  %s807_s19 = sphi %s845_s19, %s946_s19   ;;  %s803_s18 = sphi %s843_s18, %s945_s18  }
   0x3   : > { %p30_p1 = scmp.ge.s32.totalorder %s28_s21, 2  ;;  %p218_p2 = scmp.lt.s32.totalorder %s811_s20, 3 }
   0x5   : > { %s948_s21 = smov (%p30_p1, %s28_s21), 0  ;;  %p219_p3 = pnand %p665_p0, %p218_p2 }
   0x6   : > { %p268_p4 = scmp.lt.s32.totalorder (!%p219_p3), %s803_s18, 1 }
   0x7   : > { %222 = sbr.rel (%p219_p3) target bundleno = 200 (0xc8), region = 32 }
   0xc   : > { %v755_v0 = vld [vmem:[%s940_s1 + $0x38] sm:$0xff]  ;;  %v754_v2 = vld [vmem:[%s940_s1 + $0x30] sm:$0xff]  ;;  %v753_v4 = vld [vmem:[%s940_s1 + $0x28] sm:$0xff]  ;;  %s950_s18 = smov (!%p268_p4, %s803_s18), 1  ;;  %vm474_vm0 = vcmask 257024   ;;  %vm477_vm1 = vcmask 261120  }
   0xd   : > { %v763_v1 = vld [vmem:[%s940_s1 + $0x78] sm:$0xff]  ;;  %444 = vmatpush.bf16.msra.mxu0 %v755_v0  ;;  %v762_v3 = vld [vmem:[%s940_s1 + $0x70] sm:$0xff]  ;;  %v761_v5 = vld [vmem:[%s940_s1 + $0x68] sm:$0xff]  ;;  %s744_s25 = sshll.u32 %s950_s18, 4  ;;  %s745_s14 = sshll.u32 %s950_s18, 3  ;;  %vm487_vm2 = vcmask 253952  }
   0xe   : > { %458 = vmatpush.bf16.msra.mxu1 %v763_v1  ;;  %v752_v6 = vld [vmem:[%s940_s1 + $0x20] sm:$0xff]  ;;  %v751_v8 = vld [vmem:[%s940_s1 + $0x18] sm:$0xff]  ;;  %v750_v10 = vld [vmem:[%s940_s1 + $0x10] sm:$0xff]  ;;  %s276_s7 = scalar_lea.vmem %s939_s0, %s744_s25  ;;  %s286_s17 = scalar_lea.vmem %s942_s3, %s745_s14 }
   0xf   : > { %v760_v7 = vld [vmem:[%s940_s1 + $0x60] sm:$0xff]  ;;  %v759_v9 = vld [vmem:[%s940_s1 + $0x58] sm:$0xff]  ;;  %v758_v11 = vld [vmem:[%s940_s1 + $0x50] sm:$0xff]  ;;  %s293_s24 = scalar_lea.vmem %s943_s4, %s950_s18  ;;  %s299_s27 = scalar_lea.vmem %s944_s5, %s950_s18 }
  0x10   : > { %v749_v12 = vld [vmem:[%s940_s1 + $0x8] sm:$0xff]  ;;  %v748_v14 = vld [vmem:[%s940_s1] sm:$0xff] }
  0x11   : > { %445 = vmatpush.bf16.msra.mxu0 %v754_v2  ;;  %v757_v13 = vld [vmem:[%s940_s1 + $0x48] sm:$0xff]  ;;  %v756_v15 = vld [vmem:[%s940_s1 + $0x40] sm:$0xff] }
  0x12   : > { %459 = vmatpush.bf16.msra.mxu1 %v762_v3  ;;  %v672_v16 = vld [vmem:[%s276_s7] sm:$0xf]  ;;  %v747_v17 = vld [vmem:[%s276_s7 + $0x4] sm:$0xf0]  ;;  %v746_v18 = vld [vmem:[%s276_s7 + $0x4] sm:$0xf] }
  0x13   : > { %v674_v19 = vld [vmem:[%s276_s7 + $0x8] sm:$0xf0]  ;;  %v673_v20 = vor.u32 %v747_v17, %v672_v16  ;;  %v788_v22 = vld [vmem:[%s941_s2] ss:$0 sm:$0xff] }
  0x14   : > { %v677_v21 = vor.u32 %v746_v18, %v674_v19 }
  0x15   : > { %446 = vmatpush.bf16.msra.mxu0 %v753_v4 }
  0x16   : > { %460 = vmatpush.bf16.msra.mxu1 %v761_v5 }
  0x19   : > { %447 = vmatpush.bf16.msra.mxu0 %v752_v6 }
  0x1a   : > { %461 = vmatpush.bf16.msra.mxu1 %v760_v7 }
  0x1d   : > { %448 = vmatpush.bf16.msra.mxu0 %v751_v8 }
  0x1e   : > { %462 = vmatpush.bf16.msra.mxu1 %v759_v9 }
  0x21   : > { %449 = vmatpush.bf16.msra.mxu0 %v750_v10 }
  0x22   : > { %463 = vmatpush.bf16.msra.mxu1 %v758_v11 }
  0x25   : > { %450 = vmatpush.bf16.msra.mxu0 %v749_v12 }
  0x26   : > { %464 = vmatpush.bf16.msra.mxu1 %v757_v13 }
  0x29   : > { %451 = vmatpush.bf16.msra.mxu0 %v748_v14 }
  0x2a   : > { %465 = vmatpush.bf16.msra.mxu1 %v756_v15 }
  0x2c   : > { %452 = vmatmul.bf16.vlgmr.msra.gmra.mxu0 %v673_v20 }
  0x2d   : > { %466 = vmatmul.bf16.vlgmr.msra.gmra.mxu1 %v677_v21 }
  0xa9   : > { %v453_v23 = vpop.f32.mrf.mxu0 }
  0xaa   : > { %v467_v24 = vpop.f32.mrf.mxu1  ;;  %v454_v25 = vadd.f32 %v788_v22, %v453_v23 }
  0xac   : > { %v468_v26 = vadd.f32 %v467_v24, %v454_v25 }
  0xae   : > { %v472_v27 = vpack.c.bf16 %v468_v26, %v468_v26  ;;  %v489_v31 = vmul.f32 %v468_v26, %v468_v26  ;;  %v478_v33 = vsel %vm477_vm1, %v468_v26, 0.0 }
  0xb0   : > { %475 = vst.msk [vmem:[%s286_s17] sm:$0xf] %vm474_vm0, %v472_v27  ;;  %v491_v38 = vsel %vm477_vm1, %v489_v31, 0.0 }
  0xb1   : > { %v455_v28 = vpop.f32.mrf.mxu0 }
  0xb2   : > { %v456_v29 = vadd.f32 %v788_v22, %v455_v28  ;;  %v469_v30 = vpop.f32.mrf.mxu1 }
  0xb4   : > { %v470_v32 = vadd.f32 %v469_v30, %v456_v29 }
  0xb6   : > { %v473_v34 = vpack.c.bf16 %v470_v32, %v470_v32  ;;  %v479_v35 = vsel %vm477_vm1, %v470_v32, 0.0  ;;  %v490_v36 = vmul.f32 %v470_v32, %v470_v32 }
  0xb7   : > { %v480_v37 = vadd.f32 %v479_v35, %v478_v33 }
  0xb8   : > { %476 = vst.msk [vmem:[%s286_s17 + $0x4] sm:$0xf] %vm474_vm0, %v473_v34  ;;  %v492_v39 = vsel %vm477_vm1, %v490_v36, 0.0 }
  0xb9   : > { %v481_v40 = vrot.slane %v480_v37, 4  ;;  %v493_v41 = vadd.f32 %v492_v39, %v491_v38 }
  0xbb   : > { %v482_v42 = vadd.f32 %v481_v40, %v480_v37  ;;  %v494_v43 = vrot.slane %v493_v41, 4 }
  0xbd   : > { %v483_v44 = vrot.slane %v482_v42, 2  ;;  %v495_v45 = vadd.f32 %v494_v43, %v493_v41 }
  0xbf   : > { %v484_v46 = vadd.f32 %v483_v44, %v482_v42  ;;  %v496_v47 = vrot.slane %v495_v45, 2 }
  0xc1   : > { %v485_v48 = vrot.slane %v484_v46, 1  ;;  %v497_v49 = vadd.f32 %v496_v47, %v495_v45 }
  0xc3   : > { %v486_v50 = vadd.f32 %v485_v48, %v484_v46  ;;  %v498_v51 = vrot.slane %v497_v49, 1 }
  0xc5   : > { %488 = vst.msk [vmem:[%s293_s24] sm:$0x1] %vm487_vm2, %v486_v50  ;;  %v499_v52 = vadd.f32 %v498_v51, %v497_v49 }
  0xc7   : > { %500 = vst.msk [vmem:[%s299_s27] sm:$0x1] %vm487_vm2, %v499_v52 }
  0xc8 PF: > { %s16_s20 = sadd.s32 1, %s811_s20   ;;  %s945_s18 = smov %s807_s19 }
  0xc9   : > { %p13_p5 = scmp.ge.s32.totalorder %s16_s20, 4   ;;  %s946_s19 = smov %s948_s21 }
  0xcb   :  { %15 = sbr.rel (!%p13_p5) target bundleno = 2 (0x2), region = 86 }

// kernel: generator_forward.24
= control target key start
LH: loop header
LB: loop body
LE: loop exit
PB: predicated region body
PF: predicated region fallthrough
CT: control target
= control target key end

     0   :  { %s465_s12 = smov 0   ;;  %s467_s13 = smov 0   ;;  %s509_s0 = inlined_call_operand.vmem [shape: bf16[2,16,32], index: 0, kind: input, shape index: {}]   ;;  %s510_s1 = inlined_call_operand.vmem [shape: f32[2,1,32], index: 1, kind: input, shape index: {}]   ;;  %s511_s2 = inlined_call_operand.vmem [shape: f32[2,1,32], index: 2, kind: input, shape index: {}]   ;;  %s512_s3 = inlined_call_operand.vmem [shape: bf16[2,16,32], index: 3, kind: output, shape index: {}]  }
   0x1   :  { %s469_s14 = smov 0  }
   0x2 LB: > { %s25_s15 = sadd.s32 1, %s439_s13  ;;  %p381_p0 = scmp.ge.s32.totalorder %s443_s14, 1  ;;  %s443_s14 = sphi %s469_s14, %s13_s14   ;;  %s439_s13 = sphi %s467_s13, %s514_s13   ;;  %s435_s12 = sphi %s465_s12, %s513_s12  }
   0x3   : > { %p27_p1 = scmp.ge.s32.totalorder %s25_s15, 2  ;;  %p174_p2 = scmp.lt.s32.totalorder %s443_s14, 3 }
   0x5   : > { %s516_s15 = smov (%p27_p1, %s25_s15), 0  ;;  %p175_p3 = pnand %p381_p0, %p174_p2 }
   0x6   : > { %p213_p4 = scmp.lt.s32.totalorder (!%p175_p3), %s435_s12, 1 }
   0x7   : > { %178 = sbr.rel (%p175_p3) target bundleno = 45 (0x2d), region = 32 }
   0xc   : > { %s518_s12 = smov (!%p213_p4, %s435_s12), 1  ;;  %vm269_vm3 = vcmask 257024  }
   0xd   : > { %s224_s18 = scalar_lea.vmem %s510_s1, %s518_s12  ;;  %s227_s21 = scalar_lea.vmem %s511_s2, %s518_s12 }
   0xe   : > { %v238_v0 = vld [vmem:[%s227_s21] sm:$0x1]  ;;  %s388_s22 = sshll.u32 %s518_s12, 3 }
   0xf   : > { %v239_v1 = vadd.f32 1e-05, %v238_v0  ;;  %s220_s25 = scalar_lea.vmem %s509_s0, %s388_s22  ;;  %v418_v9 = vld [vmem:[%s224_s18] ss:$0 sm:$0xff]  ;;  %s236_s28 = scalar_lea.vmem %s512_s3, %s388_s22 }
  0x10   : > { %v391_v5 = vld [vmem:[%s220_s25] sm:$0xff]  }
  0x11   : > { %419 = vrsqrt.f32 %v239_v1  ;;  %vm246_vm0 = vweird.f32 %v239_v1  ;;  %v392_v7 = vunpack.c.l.bf16 %v391_v5  ;;  %v393_v8 = vunpack.c.h.bf16 %v391_v5 }
  0x13   : > { %v258_v12 = vsub.f32 %v392_v7, %v418_v9  ;;  %v259_v13 = vsub.f32 %v393_v8, %v418_v9 }
  0x17   : > { %v420_v2 = vpop.eup %419 }
  0x18   : > { %v241_v3 = vmul.f32 %v420_v2, %v239_v1  ;;  %vm247_vm1 = vweird.f32 %v420_v2 }
  0x19   : > { %vm248_vm2 = vmor %vm246_vm0, %vm247_vm1 }
  0x1a   : > { %v242_v4 = vmul.f32 %v420_v2, %v241_v3 }
  0x1c   : > { %v243_v6 = vmul.f32 0.5, %v242_v4 }
  0x1e   : > { %v244_v10 = vsub.f32 1.5, %v243_v6 }
  0x20   : > { %v245_v11 = vmul.f32 %v420_v2, %v244_v10 }
  0x22   : > { %v249_v14 = vsel %vm248_vm2, %v420_v2, %v245_v11 }
  0x23   : > { %v261_v15 = vperm.slane %v249_v14, 0 }
  0x25   : > { %v263_v16 = vmul.f32 %v261_v15, %v258_v12  ;;  %v264_v17 = vmul.f32 %v261_v15, %v259_v13 }
  0x27   : > { %v265_v18 = vmax.f32 %v263_v16, 0.0  ;;  %v266_v19 = vmax.f32 %v264_v17, 0.0 }
  0x29   : > { %v267_v20 = vpack.c.bf16 %v265_v18, %v265_v18  ;;  %v268_v21 = vpack.c.bf16 %v266_v19, %v266_v19 }
  0x2b   : > { %270 = vst.msk [vmem:[%s236_s28] sm:$0xf] %vm269_vm3, %v267_v20 }
  0x2c   : > { %271 = vst.msk [vmem:[%s236_s28 + $0x4] sm:$0xf] %vm269_vm3, %v268_v21 }
  0x2d PF: > { %s13_s14 = sadd.s32 1, %s443_s14   ;;  %s513_s12 = smov %s439_s13 }
  0x2e   : > { %p10_p5 = scmp.ge.s32.totalorder %s13_s14, 4   ;;  %s514_s13 = smov %s516_s15 }
  0x30   :  { %12 = sbr.rel (!%p10_p5) target bundleno = 2 (0x2), region = 68 }

// kernel: generator_forward.25
= control target key start
LH: loop header
LB: loop body
LE: loop exit
PB: predicated region body
PF: predicated region fallthrough
CT: control target
= control target key end

     0   :  { %s973_s18 = smov 0   ;;  %s975_s19 = smov 0   ;;  %s1099_s0 = inlined_call_operand.vmem [shape: bf16[2,16,384], index: 0, kind: input, shape index: {}]   ;;  %s1100_s1 = inlined_call_operand.vmem [shape: bf16[384,32], index: 1, kind: input, shape index: {}]   ;;  %s1101_s2 = inlined_call_operand.vmem [shape: f32[1,32], index: 2, kind: input, shape index: {}]   ;;  %s1102_s3 = inlined_call_operand.vmem [shape: bf16[2,16,32], index: 3, kind: output, shape index: {0}]   ;;  %s1103_s4 = inlined_call_operand.vmem [shape: f32[2,1,1,32], index: 4, kind: output, shape index: {1}]   ;;  %s1104_s5 = inlined_call_operand.vmem [shape: f32[2,1,1,32], index: 5, kind: output, shape index: {2}]  }
   0x1   :  { %s977_s20 = smov 0  }
   0x2 LB: > { %s28_s21 = sadd.s32 1, %s937_s19  ;;  %p751_p0 = scmp.ge.s32.totalorder %s941_s20, 1  ;;  %s941_s20 = sphi %s977_s20, %s16_s20   ;;  %s937_s19 = sphi %s975_s19, %s1106_s19   ;;  %s933_s18 = sphi %s973_s18, %s1105_s18  }
   0x3   : > { %p30_p1 = scmp.ge.s32.totalorder %s28_s21, 2  ;;  %p218_p2 = scmp.lt.s32.totalorder %s941_s20, 3 }
   0x5   : > { %s1108_s21 = smov (%p30_p1, %s28_s21), 0  ;;  %p219_p3 = pnand %p751_p0, %p218_p2 }
   0x6   : > { %p268_p4 = scmp.lt.s32.totalorder (!%p219_p3), %s933_s18, 1 }
   0x7   : > { %222 = sbr.rel (%p219_p3) target bundleno = 206 (0xce), region = 32 }
   0xc   : > { %v876_v0 = vld [vmem:[%s1100_s1 + $0x38] sm:$0xff]  ;;  %v875_v3 = vld [vmem:[%s1100_s1 + $0x30] sm:$0xff]  ;;  %v874_v6 = vld [vmem:[%s1100_s1 + $0x28] sm:$0xff]  ;;  %s1110_s18 = smov (!%p268_p4, %s933_s18), 1  ;;  %vm560_vm0 = vcmask 257024   ;;  %vm563_vm1 = vcmask 261120  }
   0xd   : > { %v884_v1 = vld [vmem:[%s1100_s1 + $0x78] sm:$0xff]  ;;  %516 = vmatpush.bf16.msra.mxu0 %v876_v0  ;;  %v883_v4 = vld [vmem:[%s1100_s1 + $0x70] sm:$0xff]  ;;  %v882_v7 = vld [vmem:[%s1100_s1 + $0x68] sm:$0xff]  ;;  %s893_s10 = smul.u32 24, %s1110_s18  ;;  %s865_s9 = sshll.u32 %s1110_s18, 3  ;;  %vm573_vm2 = vcmask 253952  }
   0xe   : > { %v892_v2 = vld [vmem:[%s1100_s1 + $0xb8] sm:$0xff]  ;;  %530 = vmatpush.bf16.msra.mxu1 %v884_v1  ;;  %v891_v5 = vld [vmem:[%s1100_s1 + $0xb0] sm:$0xff]  ;;  %v890_v8 = vld [vmem:[%s1100_s1 + $0xa8] sm:$0xff]  ;;  %s286_s12 = scalar_lea.vmem %s1102_s3, %s865_s9  ;;  %s293_s15 = scalar_lea.vmem %s1103_s4, %s1110_s18 }
   0xf   : > { %544 = vmatpush.bf16.msra.mxu2 %v892_v2  ;;  %v873_v9 = vld [vmem:[%s1100_s1 + $0x20] sm:$0xff]  ;;  %v872_v12 = vld [vmem:[%s1100_s1 + $0x18] sm:$0xff]  ;;  %v871_v15 = vld [vmem:[%s1100_s1 + $0x10] sm:$0xff]  ;;  %s276_s23 = scalar_lea.vmem %s1099_s0, %s893_s10  ;;  %s299_s22 = scalar_lea.vmem %s1104_s5, %s1110_s18 }
  0x10   : > { %v881_v10 = vld [vmem:[%s1100_s1 + $0x60] sm:$0xff]  ;;  %v880_v13 = vld [vmem:[%s1100_s1 + $0x58] sm:$0xff]  ;;  %v879_v16 = vld [vmem:[%s1100_s1 + $0x50] sm:$0xff] }
  0x11   : > { %517 = vmatpush.bf16.msra.mxu0 %v875_v3  ;;  %v889_v11 = vld [vmem:[%s1100_s1 + $0xa0] sm:$0xff]  ;;  %v888_v14 = vld [vmem:[%s1100_s1 + $0x98] sm:$0xff]  ;;  %v887_v17 = vld [vmem:[%s1100_s1 + $0x90] sm:$0xff] }
  0x12   : > { %531 = vmatpush.bf16.msra.mxu1 %v883_v4  ;;  %v870_v18 = vld [vmem:[%s1100_s1 + $0x8] sm:$0xff]  ;;  %v869_v21 = vld [vmem:[%s1100_s1] sm:$0xff]  ;;  %v759_v26 = vld [vmem:[%s276_s23 + $0xc] sm:$0xf0] }
  0x13   : > { %545 = vmatpush.bf16.msra.mxu2 %v891_v5  ;;  %v878_v19 = vld [vmem:[%s1100_s1 + $0x48] sm:$0xff]  ;;  %v877_v22 = vld [vmem:[%s1100_s1 + $0x40] sm:$0xff]  ;;  %v868_v29 = vld [vmem:[%s276_s23 + $0x10] sm:$0xf0] }
  0x14   : > { %v886_v20 = vld [vmem:[%s1100_s1 + $0x88] sm:$0xff]  ;;  %v757_v23 = vld [vmem:[%s276_s23] sm:$0xf]  ;;  %v866_v25 = vld [vmem:[%s276_s23 + $0x4] sm:$0xf] }
  0x15   : > { %518 = vmatpush.bf16.msra.mxu0 %v874_v6  ;;  %v867_v24 = vld [vmem:[%s276_s23 + $0x8] sm:$0xf0]  ;;  %v885_v27 = vld [vmem:[%s1100_s1 + $0x80] sm:$0xff]  ;;  %v765_v28 = vld [vmem:[%s276_s23 + $0x8] sm:$0xf]  ;;  %v762_v31 = vor.u32 %v866_v25, %v759_v26 }
  0x16   : > { %532 = vmatpush.bf16.msra.mxu1 %v882_v7  ;;  %v758_v30 = vor.u32 %v867_v24, %v757_v23  ;;  %v766_v32 = vor.u32 %v868_v29, %v765_v28  ;;  %v918_v33 = vld [vmem:[%s1101_s2] ss:$0 sm:$0xff] }
  0x17   : > { %546 = vmatpush.bf16.msra.mxu2 %v890_v8 }
  0x19   : > { %519 = vmatpush.bf16.msra.mxu0 %v873_v9 }
  0x1a   : > { %533 = vmatpush.bf16.msra.mxu1 %v881_v10 }
  0x1b   : > { %547 = vmatpush.bf16.msra.mxu2 %v889_v11 }
  0x1d   : > { %520 = vmatpush.bf16.msra.mxu0 %v872_v12 }
  0x1e   : > { %534 = vmatpush.bf16.msra.mxu1 %v880_v13 }
  0x1f   : > { %548 = vmatpush.bf16.msra.mxu2 %v888_v14 }
  0x21   : > { %521 = vmatpush.bf16.msra.mxu0 %v871_v15 }
  0x22   : > { %535 = vmatpush.bf16.msra.mxu1 %v879_v16 }
  0x23   : > { %549 = vmatpush.bf16.msra.mxu2 %v887_v17 }
  0x25   : > { %522 = vmatpush.bf16.msra.mxu0 %v870_v18 }
  0x26   : > { %536 = vmatpush.bf16.msra.mxu1 %v878_v19 }
  0x27   : > { %550 = vmatpush.bf16.msra.mxu2 %v886_v20 }
  0x29   : > { %523 = vmatpush.bf16.msra.mxu0 %v869_v21 }
  0x2a   : > { %537 = vmatpush.bf16.msra.mxu1 %v877_v22 }
  0x2b   : > { %551 = vmatpush.bf16.msra.mxu2 %v885_v27 }
  0x2c   : > { %524 = vmatmul.bf16.vlgmr.msra.gmra.mxu0 %v758_v30 }
  0x2d   : > { %538 = vmatmul.bf16.vlgmr.msra.gmra.mxu1 %v762_v31 }
  0x2e   : > { %552 = vmatmul.bf16.vlgmr.msra.gmra.mxu2 %v766_v32 }
  0xa9   : > { %v525_v34 = vpop.f32.mrf.mxu0 }
  0xaa   : > { %v526_v35 = vadd.f32 %v918_v33, %v525_v34  ;;  %v539_v36 = vpop.f32.mrf.mxu1 }
  0xac   : > { %v540_v37 = vadd.f32 %v539_v36, %v526_v35 }
  0xb1   : > { %v553_v38 = vpop.f32.mrf.mxu2  ;;  %v527_v40 = vpop.f32.mrf.mxu0 }
  0xb2   : > { %v554_v39 = vadd.f32 %v553_v38, %v540_v37  ;;  %v528_v42 = vadd.f32 %v918_v33, %v527_v40  ;;  %v541_v43 = vpop.f32.mrf.mxu1 }
  0xb4   : > { %v558_v41 = vpack.c.bf16 %v554_v39, %v554_v39  ;;  %v542_v44 = vadd.f32 %v541_v43, %v528_v42  ;;  %v575_v46 = vmul.f32 %v554_v39, %v554_v39  ;;  %v564_v48 = vsel %vm563_vm1, %v554_v39, 0.0 }
  0xb6   : > { %561 = vst.msk [vmem:[%s286_s12] sm:$0xf] %vm560_vm0, %v558_v41  ;;  %v577_v53 = vsel %vm563_vm1, %v575_v46, 0.0 }
  0xb9   : > { %v555_v45 = vpop.f32.mrf.mxu2 }
  0xba   : > { %v556_v47 = vadd.f32 %v555_v45, %v542_v44 }
  0xbc   : > { %v559_v49 = vpack.c.bf16 %v556_v47, %v556_v47  ;;  %v565_v50 = vsel %vm563_vm1, %v556_v47, 0.0  ;;  %v576_v51 = vmul.f32 %v556_v47, %v556_v47 }
  0xbd   : > { %v566_v52 = vadd.f32 %v565_v50, %v564_v48 }
  0xbe   : > { %562 = vst.msk [vmem:[%s286_s12 + $0x4] sm:$0xf] %vm560_vm0, %v559_v49  ;;  %v578_v54 = vsel %vm563_vm1, %v576_v51, 0.0 }
  0xbf   : > { %v567_v55 = vrot.slane %v566_v52, 4  ;;  %v579_v56 = vadd.f32 %v578_v54, %v577_v53 }
  0xc1   : > { %v568_v57 = vadd.f32 %v567_v55, %v566_v52  ;;  %v580_v58 = vrot.slane %v579_v56, 4 }
  0xc3   : > { %v569_v59 = vrot.slane %v568_v57, 2  ;;  %v581_v60 = vadd.f32 %v580_v58, %v579_v56 }
  0xc5   : > { %v570_v61 = vadd.f32 %v569_v59, %v568_v57  ;;  %v582_v62 = vrot.slane %v581_v60, 2 }
  0xc7   : > { %v571_v63 = vrot.slane %v570_v61, 1  ;;  %v583_v0 = vadd.f32 %v582_v62, %v581_v60 }
  0xc9   : > { %v572_v1 = vadd.f32 %v571_v63, %v570_v61  ;;  %v584_v2 = vrot.slane %v583_v0, 1 }
  0xcb   : > { %574 = vst.msk [vmem:[%s293_s15] sm:$0x1] %vm573_vm2, %v572_v1  ;;  %v585_v3 = vadd.f32 %v584_v2, %v583_v0 }
  0xcd   : > { %586 = vst.msk [vmem:[%s299_s22] sm:$0x1] %vm573_vm2, %v585_v3 }
  0xce PF: > { %s16_s20 = sadd.s32 1, %s941_s20   ;;  %s1105_s18 = smov %s937_s19 }
  0xcf   : > { %p13_p5 = scmp.ge.s32.totalorder %s16_s20, 4   ;;  %s1106_s19 = smov %s1108_s21 }
  0xd1   :  { %15 = sbr.rel (!%p13_p5) target bundleno = 2 (0x2), region = 86 }

// kernel: generator_forward.28
= control target key start
LH: loop header
LB: loop body
LE: loop exit
PB: predicated region body
PF: predicated region fallthrough
CT: control target
= control target key end

     0   :  { %s562_s15 = smov 0   ;;  %s564_s16 = smov 0   ;;  %s604_s0 = inlined_call_operand.vmem [shape: bf16[2,16,32], index: 0, kind: input, shape index: {}]   ;;  %s605_s1 = inlined_call_operand.vmem [shape: f32[2,1,32], index: 1, kind: input, shape index: {}]   ;;  %s606_s2 = inlined_call_operand.vmem [shape: f32[2,1,32], index: 2, kind: input, shape index: {}]   ;;  %s607_s3 = inlined_call_operand.vmem [shape: bf16[2,16,32], index: 3, kind: input, shape index: {}]   ;;  %s608_s4 = inlined_call_operand.vmem [shape: bf16[2,16,32], index: 4, kind: output, shape index: {}]  }
   0x1   :  { %s566_s17 = smov 0  }
   0x2 LB: > { %s26_s18 = sadd.s32 1, %s531_s16  ;;  %p466_p0 = scmp.ge.s32.totalorder %s535_s17, 1  ;;  %s535_s17 = sphi %s566_s17, %s14_s17   ;;  %s531_s16 = sphi %s564_s16, %s610_s16   ;;  %s527_s15 = sphi %s562_s15, %s609_s15  }
   0x3   : > { %p28_p1 = scmp.ge.s32.totalorder %s26_s18, 2  ;;  %p216_p2 = scmp.lt.s32.totalorder %s535_s17, 3 }
   0x5   : > { %s612_s18 = smov (%p28_p1, %s26_s18), 0  ;;  %p217_p3 = pnand %p466_p0, %p216_p2 }
   0x6   : > { %p266_p4 = scmp.lt.s32.totalorder (!%p217_p3), %s527_s15, 1 }
   0x7   : > { %220 = sbr.rel (%p217_p3) target bundleno = 45 (0x2d), region = 36 }
   0xc   : > { %s614_s15 = smov (!%p266_p4, %s527_s15), 1  ;;  %vm336_vm3 = vcmask 257024  }
   0xd   : > { %s277_s21 = scalar_lea.vmem %s605_s1, %s614_s15  ;;  %s280_s24 = scalar_lea.vmem %s606_s2, %s614_s15 }
   0xe   : > { %v301_v0 = vld [vmem:[%s280_s24] sm:$0x1]  ;;  %s475_s25 = sshll.u32 %s614_s15, 3 }
   0xf   : > { %v302_v1 = vadd.f32 1e-05, %v301_v0  ;;  %s273_s28 = scalar_lea.vmem %s604_s0, %s475_s25  ;;  %s289_s5 = scalar_lea.vmem %s607_s3, %s475_s25  ;;  %v510_v9 = vld [vmem:[%s277_s21] ss:$0 sm:$0xff] }
  0x10   : > { %v479_v5 = vld [vmem:[%s273_s28] sm:$0xff]   ;;  %s299_s8 = scalar_lea.vmem %s608_s4, %s475_s25 }
  0x11   : > { %511 = vrsqrt.f32 %v302_v1  ;;  %vm309_vm0 = vweird.f32 %v302_v1  ;;  %v480_v7 = vunpack.c.l.bf16 %v479_v5  ;;  %v481_v8 = vunpack.c.h.bf16 %v479_v5  ;;  %v483_v12 = vld [vmem:[%s289_s5] sm:$0xff]  }
  0x12   : > { %v484_v17 = vunpack.c.l.bf16 %v483_v12  ;;  %v485_v18 = vunpack.c.h.bf16 %v483_v12 }
  0x13   : > { %v321_v13 = vsub.f32 %v480_v7, %v510_v9  ;;  %v322_v14 = vsub.f32 %v481_v8, %v510_v9 }
  0x17   : > { %v512_v2 = vpop.eup %511 }
  0x18   : > { %v304_v3 = vmul.f32 %v512_v2, %v302_v1  ;;  %vm310_vm1 = vweird.f32 %v512_v2 }
  0x19   : > { %vm311_vm2 = vmor %vm309_vm0, %vm310_vm1 }
  0x1a   : > { %v305_v4 = vmul.f32 %v512_v2, %v304_v3 }
  0x1c   : > { %v306_v6 = vmul.f32 0.5, %v305_v4 }
  0x1e   : > { %v307_v10 = vsub.f32 1.5, %v306_v6 }
  0x20   : > { %v308_v11 = vmul.f32 %v512_v2, %v307_v10 }
  0x22   : > { %v312_v15 = vsel %vm311_vm2, %v512_v2, %v308_v11 }
  0x23   : > { %v324_v16 = vperm.slane %v312_v15, 0 }
  0x25   : > { %v326_v19 = vmul.f32 %v324_v16, %v321_v13  ;;  %v327_v20 = vmul.f32 %v324_v16, %v322_v14 }
  0x27   : > { %v332_v21 = vadd.f32 %v484_v17, %v326_v19  ;;  %v333_v22 = vadd.f32 %v485_v18, %v327_v20 }
  0x29   : > { %v334_v23 = vpack.c.bf16 %v332_v21, %v332_v21  ;;  %v335_v24 = vpack.c.bf16 %v333_v22, %v333_v22 }
  0x2b   : > { %337 = vst.msk [vmem:[%s299_s8] sm:$0xf] %vm336_vm3, %v334_v23 }
  0x2c   : > { %338 = vst.msk [vmem:[%s299_s8 + $0x4] sm:$0xf] %vm336_vm3, %v335_v24 }
  0x2d PF: > { %s14_s17 = sadd.s32 1, %s535_s17   ;;  %s609_s15 = smov %s531_s16 }
  0x2e   : > { %p11_p5 = scmp.ge.s32.totalorder %s14_s17, 4   ;;  %s610_s16 = smov %s612_s18 }
  0x30   :  { %13 = sbr.rel (!%p11_p5) target bundleno = 2 (0x2), region = 75 }

// kernel: generator_forward.33
= control target key start
LH: loop header
LB: loop body
LE: loop exit
PB: predicated region body
PF: predicated region fallthrough
CT: control target
= control target key end

     0   :  { %s1173_s18 = smov 0   ;;  %s1175_s19 = smov 0   ;;  %s1367_s0 = inlined_call_operand.vmem [shape: bf16[2,64,384], index: 0, kind: input, shape index: {}]   ;;  %s1368_s1 = inlined_call_operand.vmem [shape: bf16[384,16], index: 1, kind: input, shape index: {}]   ;;  %s1369_s2 = inlined_call_operand.vmem [shape: f32[1,16], index: 2, kind: input, shape index: {}]   ;;  %s1370_s3 = inlined_call_operand.vmem [shape: bf16[2,64,16], index: 3, kind: output, shape index: {0}]   ;;  %s1371_s4 = inlined_call_operand.vmem [shape: f32[2,1,1,16], index: 4, kind: output, shape index: {1}]   ;;  %s1372_s5 = inlined_call_operand.vmem [shape: f32[2,1,1,16], index: 5, kind: output, shape index: {2}]  }
   0x1   :  { %s1177_s20 = smov 0  }
   0x2 LB: > { %s28_s21 = sadd.s32 1, %s1137_s19  ;;  %p898_p0 = scmp.ge.s32.totalorder %s1141_s20, 1  ;;  %s1141_s20 = sphi %s1177_s20, %s16_s20   ;;  %s1137_s19 = sphi %s1175_s19, %s1374_s19   ;;  %s1133_s18 = sphi %s1173_s18, %s1373_s18  }
   0x3   : > { %p30_p1 = scmp.ge.s32.totalorder %s28_s21, 2  ;;  %p218_p2 = scmp.lt.s32.totalorder %s1141_s20, 3 }
   0x5   : > { %s1376_s21 = smov (%p30_p1, %s28_s21), 0  ;;  %p219_p3 = pnand %p898_p0, %p218_p2 }
   0x6   : > { %p268_p4 = scmp.lt.s32.totalorder (!%p219_p3), %s1133_s18, 1 }
   0x7   : > { %222 = sbr.rel (%p219_p3) target bundleno = 254 (0xfe), region = 32 }
   0xc   : > { %v1068_v0 = vld [vmem:[%s1368_s1 + $0x38] sm:$0xff]  ;;  %v1067_v3 = vld [vmem:[%s1368_s1 + $0x30] sm:$0xff]  ;;  %v1066_v6 = vld [vmem:[%s1368_s1 + $0x28] sm:$0xff]  ;;  %s1378_s18 = smov (!%p268_p4, %s1133_s18), 1  ;;  %vm671_vm0 = vcmask 125952   ;;  %vm680_vm1 = vcmask 130048  }
   0xd   : > { %v1076_v1 = vld [vmem:[%s1368_s1 + $0x78] sm:$0xff]  ;;  %576 = vmatpush.bf16.msra.mxu0 %v1068_v0  ;;  %v1075_v4 = vld [vmem:[%s1368_s1 + $0x70] sm:$0xff]  ;;  %1085 = vmatpush.bf16.msra.mxu3 %v1068_v0  ;;  %v1074_v7 = vld [vmem:[%s1368_s1 + $0x68] sm:$0xff]  ;;  %s1093_s10 = smul.u32 96, %s1378_s18  ;;  %s1048_s9 = sshll.u32 %s1378_s18, 5  ;;  %vm702_vm2 = vcmask 122880  }
   0xe   : > { %v1084_v2 = vld [vmem:[%s1368_s1 + $0xb8] sm:$0xff]  ;;  %605 = vmatpush.bf16.msra.mxu1 %v1076_v1  ;;  %v1083_v5 = vld [vmem:[%s1368_s1 + $0xb0] sm:$0xff]  ;;  %v1082_v8 = vld [vmem:[%s1368_s1 + $0xa8] sm:$0xff]  ;;  %s1309_s12 = scalar_lea.vmem %s1370_s3, %s1048_s9  ;;  %s293_s15 = scalar_lea.vmem %s1371_s4, %s1378_s18 }
   0xf   : > { %634 = vmatpush.bf16.msra.mxu2 %v1084_v2  ;;  %v1065_v9 = vld [vmem:[%s1368_s1 + $0x20] sm:$0xff]  ;;  %v1064_v12 = vld [vmem:[%s1368_s1 + $0x18] sm:$0xff]  ;;  %v1063_v15 = vld [vmem:[%s1368_s1 + $0x10] sm:$0xff]  ;;  %s1261_s23 = scalar_lea.vmem %s1367_s0, %s1093_s10  ;;  %s299_s22 = scalar_lea.vmem %s1372_s5, %s1378_s18 }
  0x10   : > { %v1073_v10 = vld [vmem:[%s1368_s1 + $0x60] sm:$0xff]  ;;  %v1072_v13 = vld [vmem:[%s1368_s1 + $0x58] sm:$0xff]  ;;  %v1071_v16 = vld [vmem:[%s1368_s1 + $0x50] sm:$0xff] }
  0x11   : > { %577 = vmatpush.bf16.msra.mxu0 %v1067_v3  ;;  %1086 = vmatpush.bf16.msra.mxu3 %v1067_v3  ;;  %v1081_v11 = vld [vmem:[%s1368_s1 + $0xa0] sm:$0xff]  ;;  %v1080_v14 = vld [vmem:[%s1368_s1 + $0x98] sm:$0xff]  ;;  %v1079_v17 = vld [vmem:[%s1368_s1 + $0x90] sm:$0xff] }
  0x12   : > { %606 = vmatpush.bf16.msra.mxu1 %v1075_v4  ;;  %v1062_v18 = vld [vmem:[%s1368_s1 + $0x8] sm:$0xff]  ;;  %v1061_v21 = vld [vmem:[%s1368_s1] sm:$0xff]  ;;  %v906_v27 = vld [vmem:[%s1261_s23 + $0xc] sm:$0xf0] }
  0x13   : > { %635 = vmatpush.bf16.msra.mxu2 %v1083_v5  ;;  %v1070_v19 = vld [vmem:[%s1368_s1 + $0x48] sm:$0xff]  ;;  %v1069_v22 = vld [vmem:[%s1368_s1 + $0x40] sm:$0xff]  ;;  %v1051_v29 = vld [vmem:[%s1261_s23 + $0x10] sm:$0xf0] }
  0x14   : > { %v1078_v20 = vld [vmem:[%s1368_s1 + $0x88] sm:$0xff]  ;;  %v1077_v23 = vld [vmem:[%s1368_s1 + $0x80] sm:$0xff]  ;;  %v916_v30 = vld [vmem:[%s1261_s23 + $0x18] sm:$0xf] }
  0x15   : > { %578 = vmatpush.bf16.msra.mxu0 %v1066_v6  ;;  %1087 = vmatpush.bf16.msra.mxu3 %v1066_v6  ;;  %v904_v24 = vld [vmem:[%s1261_s23] sm:$0xf]  ;;  %v1050_v25 = vld [vmem:[%s1261_s23 + $0x8] sm:$0xf0]  ;;  %v1049_v26 = vld [vmem:[%s1261_s23 + $0x4] sm:$0xf] }
  0x16   : > { %607 = vmatpush.bf16.msra.mxu1 %v1074_v7  ;;  %v912_v28 = vld [vmem:[%s1261_s23 + $0x8] sm:$0xf]  ;;  %v1053_v31 = vld [vmem:[%s1261_s23 + $0x20] sm:$0xf0]  ;;  %v905_v32 = vor.u32 %v1050_v25, %v904_v24  ;;  %v909_v33 = vor.u32 %v1049_v26, %v906_v27  ;;  %v1052_v36 = vld [vmem:[%s1261_s23 + $0x1c] sm:$0xf] }
  0x17   : > { %636 = vmatpush.bf16.msra.mxu2 %v1082_v8  ;;  %v913_v34 = vor.u32 %v1051_v29, %v912_v28  ;;  %v917_v35 = vor.u32 %v1053_v31, %v916_v30  ;;  %v918_v37 = vld [vmem:[%s1261_s23 + $0x24] sm:$0xf0]  ;;  %v924_v38 = vld [vmem:[%s1261_s23 + $0x20] sm:$0xf]  ;;  %v1054_v39 = vld [vmem:[%s1261_s23 + $0x28] sm:$0xf0] }
  0x18   : > { %v928_v40 = vld [vmem:[%s1261_s23 + $0x30] sm:$0xf]  ;;  %v1056_v41 = vld [vmem:[%s1261_s23 + $0x38] sm:$0xf0]  ;;  %v921_v42 = vor.u32 %v1052_v36, %v918_v37  ;;  %v925_v43 = vor.u32 %v1054_v39, %v924_v38  ;;  %v1055_v45 = vld [vmem:[%s1261_s23 + $0x34] sm:$0xf] }
  0x19   : > { %579 = vmatpush.bf16.msra.mxu0 %v1065_v9  ;;  %1088 = vmatpush.bf16.msra.mxu3 %v1065_v9  ;;  %v929_v44 = vor.u32 %v1056_v41, %v928_v40  ;;  %v930_v46 = vld [vmem:[%s1261_s23 + $0x3c] sm:$0xf0]  ;;  %v936_v47 = vld [vmem:[%s1261_s23 + $0x38] sm:$0xf]  ;;  %v1057_v48 = vld [vmem:[%s1261_s23 + $0x40] sm:$0xf0] }
  0x1a   : > { %608 = vmatpush.bf16.msra.mxu1 %v1073_v10  ;;  %v940_v49 = vld [vmem:[%s1261_s23 + $0x48] sm:$0xf]  ;;  %v1059_v50 = vld [vmem:[%s1261_s23 + $0x50] sm:$0xf0]  ;;  %v933_v51 = vor.u32 %v1055_v45, %v930_v46  ;;  %v937_v52 = vor.u32 %v1057_v48, %v936_v47  ;;  %v1058_v54 = vld [vmem:[%s1261_s23 + $0x4c] sm:$0xf] }
  0x1b   : > { %637 = vmatpush.bf16.msra.mxu2 %v1081_v11  ;;  %v941_v53 = vor.u32 %v1059_v50, %v940_v49  ;;  %v942_v55 = vld [vmem:[%s1261_s23 + $0x54] sm:$0xf0]  ;;  %v948_v56 = vld [vmem:[%s1261_s23 + $0x50] sm:$0xf]  ;;  %v1060_v57 = vld [vmem:[%s1261_s23 + $0x58] sm:$0xf0] }
  0x1c   : > { %v945_v58 = vor.u32 %v1058_v54, %v942_v55  ;;  %v949_v59 = vor.u32 %v1060_v57, %v948_v56  ;;  %v1302_v60 = vld [vmem:[%s1369_s2] ss:$0 sm:$0xff] }
  0x1d   : > { %580 = vmatpush.bf16.msra.mxu0 %v1064_v12  ;;  %1089 = vmatpush.bf16.msra.mxu3 %v1064_v12 }
  0x1e   : > { %609 = vmatpush.bf16.msra.mxu1 %v1072_v13 }
  0x1f   : > { %638 = vmatpush.bf16.msra.mxu2 %v1080_v14 }
  0x21   : > { %581 = vmatpush.bf16.msra.mxu0 %v1063_v15  ;;  %1090 = vmatpush.bf16.msra.mxu3 %v1063_v15 }
  0x22   : > { %610 = vmatpush.bf16.msra.mxu1 %v1071_v16 }
  0x23   : > { %639 = vmatpush.bf16.msra.mxu2 %v1079_v17 }
  0x25   : > { %582 = vmatpush.bf16.msra.mxu0 %v1062_v18  ;;  %1091 = vmatpush.bf16.msra.mxu3 %v1062_v18 }
  0x26   : > { %611 = vmatpush.bf16.msra.mxu1 %v1070_v19 }
  0x27   : > { %640 = vmatpush.bf16.msra.mxu2 %v1078_v20 }
  0x29   : > { %583 = vmatpush.bf16.msra.mxu0 %v1061_v21  ;;  %1092 = vmatpush.bf16.msra.mxu3 %v1061_v21 }
  0x2a   : > { %612 = vmatpush.bf16.msra.mxu1 %v1069_v22 }
  0x2b   : > { %641 = vmatpush.bf16.msra.mxu2 %v1077_v23 }
  0x2c   : > { %584 = vmatmul.bf16.vlgmr.msra.gmra.mxu0 %v905_v32  ;;  %589 = vmatmul.bf16.vlgmr.msra.gmra.mxu3 %v917_v35 }
  0x2d   : > { %613 = vmatmul.bf16.vlgmr.msra.gmra.mxu1 %v909_v33 }
  0x2e   : > { %642 = vmatmul.bf16.vlgmr.msra.gmra.mxu2 %v913_v34 }
  0x3c   : > { %594 = vmatmul.bf16.gmra.mxu3 %v929_v44 }
  0x3d   : > { %618 = vmatmul.bf16.gmra.mxu1 %v921_v42 }
  0x3e   : > { %647 = vmatmul.bf16.gmra.mxu2 %v925_v43 }
  0x4c   : > { %599 = vmatmul.bf16.gmra.mxu3 %v941_v53 }
  0x4d   : > { %623 = vmatmul.bf16.gmra.mxu1 %v933_v51 }
  0x4e   : > { %652 = vmatmul.bf16.gmra.mxu2 %v937_v52 }
  0x5d   : > { %628 = vmatmul.bf16.gmra.mxu1 %v945_v58 }
  0x5e   : > { %657 = vmatmul.bf16.gmra.mxu2 %v949_v59 }
  0xa9   : > { %v585_v61 = vpop.f32.mrf.mxu0 }
  0xaa   : > { %v614_v62 = vpop.f32.mrf.mxu1  ;;  %v586_v63 = vadd.f32 %v1302_v60, %v585_v61 }
  0xac   : > { %v615_v0 = vadd.f32 %v614_v62, %v586_v63 }
  0xaf   : > { %v590_v2 = vpop.f32.mrf.mxu3 }
  0xb0   : > { %v591_v10 = vadd.f32 %v1302_v60, %v590_v2 }
  0xb1   : > { %v643_v1 = vpop.f32.mrf.mxu2  ;;  %v587_v4 = vpop.f32.mrf.mxu0 }
  0xb2   : > { %v644_v3 = vadd.f32 %v643_v1, %v615_v0  ;;  %v616_v5 = vpop.f32.mrf.mxu1  ;;  %v588_v7 = vadd.f32 %v1302_v60, %v587_v4 }
  0xb4   : > { %v663_v6 = vpack.c.bf16 %v644_v3, %v644_v3  ;;  %v617_v8 = vadd.f32 %v616_v5, %v588_v7  ;;  %v704_v43 = vmul.f32 %v644_v3, %v644_v3  ;;  %v681_v47 = vsel %vm680_vm1, %v644_v3, 0.0 }
  0xb6   : > { %672 = vst.msk [vmem:[%s1309_s12] sm:$0xf] %vm671_vm0, %v663_v6  ;;  %v712_v51 = vsel %vm680_vm1, %v704_v43, 0.0 }
  0xb7   : > { %v592_v13 = vpop.f32.mrf.mxu3 }
  0xb8   : > { %v593_v21 = vadd.f32 %v1302_v60, %v592_v13 }
  0xb9   : > { %v645_v9 = vpop.f32.mrf.mxu2 }
  0xba   : > { %v646_v11 = vadd.f32 %v645_v9, %v617_v8  ;;  %v619_v12 = vpop.f32.mrf.mxu1 }
  0xbb   : > { %v620_v15 = vadd.f32 %v619_v12, %v591_v10 }
  0xbc   : > { %v664_v14 = vpack.c.bf16 %v646_v11, %v646_v11  ;;  %v705_v41 = vmul.f32 %v646_v11, %v646_v11  ;;  %v682_v44 = vsel %vm680_vm1, %v646_v11, 0.0 }
  0xbd   : > { %v683_v52 = vadd.f32 %v682_v44, %v681_v47 }
  0xbe   : > { %673 = vst.msk [vmem:[%s1309_s12 + $0x4] sm:$0xf] %vm671_vm0, %v664_v14  ;;  %v713_v48 = vsel %vm680_vm1, %v705_v41, 0.0 }
  0xbf   : > { %v595_v20 = vpop.f32.mrf.mxu3  ;;  %v714_v58 = vadd.f32 %v713_v48, %v712_v51 }
  0xc0   : > { %v596_v24 = vadd.f32 %v1302_v60, %v595_v20 }
  0xc1   : > { %v648_v16 = vpop.f32.mrf.mxu2 }
  0xc2   : > { %v649_v17 = vadd.f32 %v648_v16, %v620_v15  ;;  %v621_v18 = vpop.f32.mrf.mxu1 }
  0xc3   : > { %v622_v22 = vadd.f32 %v621_v18, %v593_v21 }
  0xc4   : > { %v665_v19 = vpack.c.bf16 %v649_v17, %v649_v17  ;;  %v706_v45 = vmul.f32 %v649_v17, %v649_v17  ;;  %v684_v49 = vsel %vm680_vm1, %v649_v17, 0.0 }
  0xc5   : > { %v685_v59 = vadd.f32 %v684_v49, %v683_v52 }
  0xc6   : > { %674 = vst.msk [vmem:[%s1309_s12 + $0x8] sm:$0xf] %vm671_vm0, %v665_v19  ;;  %v715_v54 = vsel %vm680_vm1, %v706_v45, 0.0 }
  0xc7   : > { %v597_v29 = vpop.f32.mrf.mxu3  ;;  %v716_v2 = vadd.f32 %v715_v54, %v714_v58 }
  0xc8   : > { %v598_v34 = vadd.f32 %v1302_v60, %v597_v29 }
  0xc9   : > { %v650_v23 = vpop.f32.mrf.mxu2 }
  0xca   : > { %v651_v25 = vadd.f32 %v650_v23, %v622_v22  ;;  %v624_v26 = vpop.f32.mrf.mxu1 }
  0xcb   : > { %v625_v28 = vadd.f32 %v624_v26, %v596_v24 }
  0xcc   : > { %v666_v27 = vpack.c.bf16 %v651_v25, %v651_v25  ;;  %v707_v50 = vmul.f32 %v651_v25, %v651_v25  ;;  %v686_v55 = vsel %vm680_vm1, %v651_v25, 0.0 }
  0xcd   : > { %v687_v3 = vadd.f32 %v686_v55, %v685_v59 }
  0xce   : > { %675 = vst.msk [vmem:[%s1309_s12 + $0xc] sm:$0xf] %vm671_vm0, %v666_v27  ;;  %v717_v62 = vsel %vm680_vm1, %v707_v50, 0.0 }
  0xcf   : > { %v600_v36 = vpop.f32.mrf.mxu3  ;;  %v718_v9 = vadd.f32 %v717_v62, %v716_v2 }
  0xd0   : > { %v601_v38 = vadd.f32 %v1302_v60, %v600_v36 }
  0xd1   : > { %v653_v30 = vpop.f32.mrf.mxu2 }
  0xd2   : > { %v654_v31 = vadd.f32 %v653_v30, %v625_v28  ;;  %v626_v32 = vpop.f32.mrf.mxu1 }
  0xd3   : > { %v627_v35 = vadd.f32 %v626_v32, %v598_v34 }
  0xd4   : > { %v667_v33 = vpack.c.bf16 %v654_v31, %v654_v31  ;;  %v708_v56 = vmul.f32 %v654_v31, %v654_v31  ;;  %v688_v63 = vsel %vm680_vm1, %v654_v31, 0.0 }
  0xd5   : > { %v689_v10 = vadd.f32 %v688_v63, %v687_v3 }
  0xd6   : > { %676 = vst.msk [vmem:[%s1309_s12 + $0x10] sm:$0xf] %vm671_vm0, %v667_v33  ;;  %v719_v5 = vsel %vm680_vm1, %v708_v56, 0.0 }
  0xd7   : > { %v602_v61 = vpop.f32.mrf.mxu3  ;;  %v720_v14 = vadd.f32 %v719_v5, %v718_v9 }
  0xd8   : > { %v603_v7 = vadd.f32 %v1302_v60, %v602_v61 }
  0xd9   : > { %v655_v37 = vpop.f32.mrf.mxu2 }
  0xda   : > { %v656_v39 = vadd.f32 %v655_v37, %v627_v35  ;;  %v629_v40 = vpop.f32.mrf.mxu1 }
  0xdb   : > { %v630_v46 = vadd.f32 %v629_v40, %v601_v38 }
  0xdc   : > { %v668_v42 = vpack.c.bf16 %v656_v39, %v656_v39  ;;  %v709_v0 = vmul.f32 %v656_v39, %v656_v39  ;;  %v690_v6 = vsel %vm680_vm1, %v656_v39, 0.0 }
  0xdd   : > { %v691_v15 = vadd.f32 %v690_v6, %v689_v10 }
  0xde   : > { %677 = vst.msk [vmem:[%s1309_s12 + $0x14] sm:$0xf] %vm671_vm0, %v668_v42  ;;  %v721_v11 = vsel %vm680_vm1, %v709_v0, 0.0 }
  0xdf   : > { %v722_v19 = vadd.f32 %v721_v11, %v720_v14 }
  0xe1   : > { %v658_v53 = vpop.f32.mrf.mxu2 }
  0xe2   : > { %v659_v57 = vadd.f32 %v658_v53, %v630_v46  ;;  %v631_v4 = vpop.f32.mrf.mxu1 }
  0xe3   : > { %v632_v13 = vadd.f32 %v631_v4, %v603_v7 }
  0xe4   : > { %v669_v1 = vpack.c.bf16 %v659_v57, %v659_v57  ;;  %v710_v8 = vmul.f32 %v659_v57, %v659_v57  ;;  %v692_v12 = vsel %vm680_vm1, %v659_v57, 0.0 }
  0xe5   : > { %v693_v20 = vadd.f32 %v692_v12, %v691_v15 }
  0xe6   : > { %678 = vst.msk [vmem:[%s1309_s12 + $0x18] sm:$0xf] %vm671_vm0, %v669_v1  ;;  %v723_v17 = vsel %vm680_vm1, %v710_v8, 0.0 }
  0xe7   : > { %v724_v23 = vadd.f32 %v723_v17, %v722_v19 }
  0xe9   : > { %v660_v16 = vpop.f32.mrf.mxu2 }
  0xea   : > { %v661_v18 = vadd.f32 %v660_v16, %v632_v13 }
  0xec   : > { %v670_v60 = vpack.c.bf16 %v661_v18, %v661_v18  ;;  %v694_v21 = vsel %vm680_vm1, %v661_v18, 0.0  ;;  %v711_v22 = vmul.f32 %v661_v18, %v661_v18 }
  0xed   : > { %v695_v24 = vadd.f32 %v694_v21, %v693_v20 }
  0xee   : > { %679 = vst.msk [vmem:[%s1309_s12 + $0x1c] sm:$0xf] %vm671_vm0, %v670_v60  ;;  %v725_v25 = vsel %vm680_vm1, %v711_v22, 0.0 }
  0xef   : > { %v696_v26 = vrot.slane %v695_v24, 4  ;;  %v726_v27 = vadd.f32 %v725_v25, %v724_v23 }
  0xf1   : > { %v697_v28 = vadd.f32 %v696_v26, %v695_v24  ;;  %v727_v29 = vrot.slane %v726_v27, 4 }
  0xf3   : > { %v698_v30 = vrot.slane %v697_v28, 2  ;;  %v728_v31 = vadd.f32 %v727_v29, %v726_v27 }
  0xf5   : > { %v699_v32 = vadd.f32 %v698_v30, %v697_v28  ;;  %v729_v33 = vrot.slane %v728_v31, 2 }
  0xf7   : > { %v700_v34 = vrot.slane %v699_v32, 1  ;;  %v730_v35 = vadd.f32 %v729_v33, %v728_v31 }
  0xf9   : > { %v701_v36 = vadd.f32 %v700_v34, %v699_v32  ;;  %v731_v37 = vrot.slane %v730_v35, 1 }
  0xfb   : > { %703 = vst.msk [vmem:[%s293_s15] sm:$0x1] %vm702_vm2, %v701_v36  ;;  %v732_v38 = vadd.f32 %v731_v37, %v730_v35 }
  0xfd   : > { %733 = vst.msk [vmem:[%s299_s22] sm:$0x1] %vm702_vm2, %v732_v38 }
  0xfe PF: > { %s16_s20 = sadd.s32 1, %s1141_s20   ;;  %s1373_s18 = smov %s1137_s19 }
  0xff   : > { %p13_p5 = scmp.ge.s32.totalorder %s16_s20, 4   ;;  %s1374_s19 = smov %s1376_s21 }
 0x101   :  { %15 = sbr.rel (!%p13_p5) target bundleno = 2 (0x2), region = 86 }

// kernel: generator_forward.37
= control target key start
LH: loop header
LB: loop body
LE: loop exit
PB: predicated region body
PF: predicated region fallthrough
CT: control target
= control target key end

     0   :  { %s1993_s12 = smov 0   ;;  %s1995_s13 = smov 0   ;;  %s2331_s0 = inlined_call_operand.vmem [shape: bf16[2,256,512], index: 0, kind: input, shape index: {}]   ;;  %s2332_s1 = inlined_call_operand.vmem [shape: bf16[512,128], index: 1, kind: input, shape index: {}]   ;;  %s2333_s2 = inlined_call_operand.vmem [shape: f32[1,128], index: 2, kind: input, shape index: {}]   ;;  %s2334_s3 = inlined_call_operand.vmem [shape: f32[2,256,128], index: 3, kind: output, shape index: {}]  }
   0x1   :  { %s1997_s14 = smov 0  }
   0x2 LB: > { %s25_s15 = sadd.s32 1, %s1967_s13  ;;  %p1371_p0 = scmp.ge.s32.totalorder %s1971_s14, 1  ;;  %s1971_s14 = sphi %s1997_s14, %s13_s14   ;;  %s1967_s13 = sphi %s1995_s13, %s2336_s13   ;;  %s1963_s12 = sphi %s1993_s12, %s2335_s12  }
   0x3   : > { %p27_p1 = scmp.ge.s32.totalorder %s25_s15, 2  ;;  %p159_p2 = scmp.lt.s32.totalorder %s1971_s14, 3 }
   0x5   : > { %s2338_s15 = smov (%p27_p1, %s25_s15), 0  ;;  %p160_p3 = pnand %p1371_p0, %p159_p2 }
   0x6   : > { %p193_p4 = scmp.lt.s32.totalorder (!%p160_p3), %s1963_s12, 1 }
   0x7   : > { %163 = sbr.rel (%p160_p3) target bundleno = 438 (0x1b6), region = 32 }
   0xc   : > { %v1835_v0 = vld [vmem:[%s2332_s1 + $0x38] sm:$0xff]  ;;  %v1834_v4 = vld [vmem:[%s2332_s1 + $0x30] sm:$0xff]  ;;  %v1833_v8 = vld [vmem:[%s2332_s1 + $0x28] sm:$0xff]  ;;  %s2340_s12 = smov (!%p193_p4, %s1963_s12), 1 }
   0xd   : > { %v1843_v1 = vld [vmem:[%s2332_s1 + $0x78] sm:$0xff]  ;;  %857 = vmatpush.bf16.msra.mxu0 %v1835_v0  ;;  %v1842_v5 = vld [vmem:[%s2332_s1 + $0x70] sm:$0xff]  ;;  %v1841_v9 = vld [vmem:[%s2332_s1 + $0x68] sm:$0xff]  ;;  %s1762_s18 = sshll.u32 %s2340_s12, 9  ;;  %s1763_s17 = sshll.u32 %s2340_s12, 8 }
   0xe   : > { %v1851_v2 = vld [vmem:[%s2332_s1 + $0xb8] sm:$0xff]  ;;  %946 = vmatpush.bf16.msra.mxu1 %v1843_v1  ;;  %v1850_v6 = vld [vmem:[%s2332_s1 + $0xb0] sm:$0xff]  ;;  %v1849_v10 = vld [vmem:[%s2332_s1 + $0xa8] sm:$0xff]  ;;  %s2099_s25 = scalar_lea.vmem %s2331_s0, %s1762_s18  ;;  %s2210_s20 = scalar_lea.vmem %s2334_s3, %s1763_s17 }
   0xf   : > { %v1859_v3 = vld [vmem:[%s2332_s1 + $0xf8] sm:$0xff]  ;;  %1035 = vmatpush.bf16.msra.mxu2 %v1851_v2  ;;  %v1858_v7 = vld [vmem:[%s2332_s1 + $0xf0] sm:$0xff]  ;;  %v1857_v11 = vld [vmem:[%s2332_s1 + $0xe8] sm:$0xff] }
  0x10   : > { %1124 = vmatpush.bf16.msra.mxu3 %v1859_v3  ;;  %v1832_v12 = vld [vmem:[%s2332_s1 + $0x20] sm:$0xff]  ;;  %v1831_v16 = vld [vmem:[%s2332_s1 + $0x18] sm:$0xff]  ;;  %v1830_v20 = vld [vmem:[%s2332_s1 + $0x10] sm:$0xff] }
  0x11   : > { %858 = vmatpush.bf16.msra.mxu0 %v1834_v4  ;;  %v1840_v13 = vld [vmem:[%s2332_s1 + $0x60] sm:$0xff]  ;;  %v1839_v17 = vld [vmem:[%s2332_s1 + $0x58] sm:$0xff]  ;;  %v1838_v21 = vld [vmem:[%s2332_s1 + $0x50] sm:$0xff] }
  0x12   : > { %947 = vmatpush.bf16.msra.mxu1 %v1842_v5  ;;  %v1848_v14 = vld [vmem:[%s2332_s1 + $0xa0] sm:$0xff]  ;;  %v1847_v18 = vld [vmem:[%s2332_s1 + $0x98] sm:$0xff]  ;;  %v1846_v22 = vld [vmem:[%s2332_s1 + $0x90] sm:$0xff] }
  0x13   : > { %1036 = vmatpush.bf16.msra.mxu2 %v1850_v6  ;;  %v1856_v15 = vld [vmem:[%s2332_s1 + $0xe0] sm:$0xff]  ;;  %v1855_v19 = vld [vmem:[%s2332_s1 + $0xd8] sm:$0xff]  ;;  %v1854_v23 = vld [vmem:[%s2332_s1 + $0xd0] sm:$0xff] }
  0x14   : > { %1125 = vmatpush.bf16.msra.mxu3 %v1858_v7  ;;  %v1829_v24 = vld [vmem:[%s2332_s1 + $0x8] sm:$0xff]  ;;  %v1828_v28 = vld [vmem:[%s2332_s1] sm:$0xff]  ;;  %v1766_v33 = vld [vmem:[%s2099_s25 + $0xc] sm:$0xf0] }
  0x15   : > { %859 = vmatpush.bf16.msra.mxu0 %v1833_v8  ;;  %v1837_v25 = vld [vmem:[%s2332_s1 + $0x48] sm:$0xff]  ;;  %v1836_v29 = vld [vmem:[%s2332_s1 + $0x40] sm:$0xff]  ;;  %v1380_v35 = vld [vmem:[%s2099_s25 + $0x10] sm:$0xf0] }
  0x16   : > { %948 = vmatpush.bf16.msra.mxu1 %v1841_v9  ;;  %v1845_v26 = vld [vmem:[%s2332_s1 + $0x88] sm:$0xff]  ;;  %v1844_v30 = vld [vmem:[%s2332_s1 + $0x80] sm:$0xff]  ;;  %v1767_v37 = vld [vmem:[%s2099_s25 + $0x14] sm:$0xf0] }
  0x17   : > { %1037 = vmatpush.bf16.msra.mxu2 %v1849_v10  ;;  %v1853_v27 = vld [vmem:[%s2332_s1 + $0xc8] sm:$0xff]  ;;  %v1852_v31 = vld [vmem:[%s2332_s1 + $0xc0] sm:$0xff]  ;;  %v1388_v39 = vld [vmem:[%s2099_s25 + $0x18] sm:$0xf0] }
  0x18   : > { %1126 = vmatpush.bf16.msra.mxu3 %v1857_v11  ;;  %v1378_v32 = vld [vmem:[%s2099_s25] sm:$0xf]  ;;  %v1764_v34 = vld [vmem:[%s2099_s25 + $0x4] sm:$0xf]  ;;  %v1386_v36 = vld [vmem:[%s2099_s25 + $0x8] sm:$0xf] }
  0x19   : > { %860 = vmatpush.bf16.msra.mxu0 %v1832_v12  ;;  %v1765_v38 = vld [vmem:[%s2099_s25 + $0xc] sm:$0xf]  ;;  %v1379_v40 = vor.u32 %v1766_v33, %v1378_v32  ;;  %v1383_v41 = vor.u32 %v1764_v34, %v1380_v35  ;;  %v1387_v42 = vor.u32 %v1767_v37, %v1386_v36  ;;  %v1394_v44 = vld [vmem:[%s2099_s25 + $0x20] sm:$0xf]  ;;  %v1770_v45 = vld [vmem:[%s2099_s25 + $0x2c] sm:$0xf0] }
  0x1a   : > { %949 = vmatpush.bf16.msra.mxu1 %v1840_v13  ;;  %v1391_v43 = vor.u32 %v1765_v38, %v1388_v39  ;;  %v1768_v46 = vld [vmem:[%s2099_s25 + $0x24] sm:$0xf]  ;;  %v1396_v47 = vld [vmem:[%s2099_s25 + $0x30] sm:$0xf0]  ;;  %v1402_v48 = vld [vmem:[%s2099_s25 + $0x28] sm:$0xf]  ;;  %v1395_v52 = vor.u32 %v1770_v45, %v1394_v44 }
  0x1b   : > { %1038 = vmatpush.bf16.msra.mxu2 %v1848_v14  ;;  %v1771_v49 = vld [vmem:[%s2099_s25 + $0x34] sm:$0xf0]  ;;  %v1769_v50 = vld [vmem:[%s2099_s25 + $0x2c] sm:$0xf]  ;;  %v1404_v51 = vld [vmem:[%s2099_s25 + $0x38] sm:$0xf0]  ;;  %v1399_v53 = vor.u32 %v1768_v46, %v1396_v47 }
  0x1c   : > { %1127 = vmatpush.bf16.msra.mxu3 %v1856_v15  ;;  %v1403_v54 = vor.u32 %v1771_v49, %v1402_v48  ;;  %v1407_v55 = vor.u32 %v1769_v50, %v1404_v51  ;;  %v1410_v56 = vld [vmem:[%s2099_s25 + $0x40] sm:$0xf]  ;;  %v1774_v57 = vld [vmem:[%s2099_s25 + $0x4c] sm:$0xf0]  ;;  %v1772_v58 = vld [vmem:[%s2099_s25 + $0x44] sm:$0xf] }
  0x1d   : > { %861 = vmatpush.bf16.msra.mxu0 %v1831_v16  ;;  %v1412_v59 = vld [vmem:[%s2099_s25 + $0x50] sm:$0xf0]  ;;  %v1418_v60 = vld [vmem:[%s2099_s25 + $0x48] sm:$0xf]  ;;  %v1775_v61 = vld [vmem:[%s2099_s25 + $0x54] sm:$0xf0]  ;;  %v1411_v0 = vor.u32 %v1774_v57, %v1410_v56 }
  0x1e   : > { %950 = vmatpush.bf16.msra.mxu1 %v1839_v17  ;;  %v1773_v62 = vld [vmem:[%s2099_s25 + $0x4c] sm:$0xf]  ;;  %v1420_v63 = vld [vmem:[%s2099_s25 + $0x58] sm:$0xf0]  ;;  %v1415_v1 = vor.u32 %v1772_v58, %v1412_v59  ;;  %v1419_v2 = vor.u32 %v1775_v61, %v1418_v60  ;;  %v1426_v4 = vld [vmem:[%s2099_s25 + $0x60] sm:$0xf] }
  0x1f   : > { %1039 = vmatpush.bf16.msra.mxu2 %v1847_v18  ;;  %v1423_v3 = vor.u32 %v1773_v62, %v1420_v63  ;;  %v1778_v5 = vld [vmem:[%s2099_s25 + $0x6c] sm:$0xf0]  ;;  %v1776_v6 = vld [vmem:[%s2099_s25 + $0x64] sm:$0xf]  ;;  %v1428_v7 = vld [vmem:[%s2099_s25 + $0x70] sm:$0xf0] }
  0x20   : > { %1128 = vmatpush.bf16.msra.mxu3 %v1855_v19  ;;  %v1434_v8 = vld [vmem:[%s2099_s25 + $0x68] sm:$0xf]  ;;  %v1779_v9 = vld [vmem:[%s2099_s25 + $0x74] sm:$0xf0]  ;;  %v1777_v10 = vld [vmem:[%s2099_s25 + $0x6c] sm:$0xf]  ;;  %v1427_v12 = vor.u32 %v1778_v5, %v1426_v4  ;;  %v1431_v13 = vor.u32 %v1776_v6, %v1428_v7 }
  0x21   : > { %862 = vmatpush.bf16.msra.mxu0 %v1830_v20  ;;  %v1436_v11 = vld [vmem:[%s2099_s25 + $0x78] sm:$0xf0]  ;;  %v1435_v14 = vor.u32 %v1779_v9, %v1434_v8  ;;  %v1442_v16 = vld [vmem:[%s2099_s25 + $0x80] sm:$0xf]  ;;  %v1782_v17 = vld [vmem:[%s2099_s25 + $0x8c] sm:$0xf0] }
  0x22   : > { %951 = vmatpush.bf16.msra.mxu1 %v1838_v21  ;;  %v1439_v15 = vor.u32 %v1777_v10, %v1436_v11  ;;  %v1780_v18 = vld [vmem:[%s2099_s25 + $0x84] sm:$0xf]  ;;  %v1444_v19 = vld [vmem:[%s2099_s25 + $0x90] sm:$0xf0]  ;;  %v1450_v20 = vld [vmem:[%s2099_s25 + $0x88] sm:$0xf] }
  0x23   : > { %1040 = vmatpush.bf16.msra.mxu2 %v1846_v22  ;;  %v1783_v21 = vld [vmem:[%s2099_s25 + $0x94] sm:$0xf0]  ;;  %v1781_v22 = vld [vmem:[%s2099_s25 + $0x8c] sm:$0xf]  ;;  %v1466_v32 = vld [vmem:[%s2099_s25 + $0xa8] sm:$0xf] }
  0x24   : > { %1129 = vmatpush.bf16.msra.mxu3 %v1854_v23  ;;  %v1452_v23 = vld [vmem:[%s2099_s25 + $0x98] sm:$0xf0]  ;;  %v1787_v33 = vld [vmem:[%s2099_s25 + $0xb4] sm:$0xf0]  ;;  %v1785_v34 = vld [vmem:[%s2099_s25 + $0xac] sm:$0xf] }
  0x25   : > { %863 = vmatpush.bf16.msra.mxu0 %v1829_v24  ;;  %v1443_v24 = vor.u32 %v1782_v17, %v1442_v16  ;;  %v1468_v35 = vld [vmem:[%s2099_s25 + $0xb8] sm:$0xf0]  ;;  %v1467_v38 = vor.u32 %v1787_v33, %v1466_v32  ;;  %v1482_v44 = vld [vmem:[%s2099_s25 + $0xc8] sm:$0xf]  ;;  %v1791_v45 = vld [vmem:[%s2099_s25 + $0xd4] sm:$0xf0] }
  0x26   : > { %952 = vmatpush.bf16.msra.mxu1 %v1837_v25  ;;  %v1447_v25 = vor.u32 %v1780_v18, %v1444_v19  ;;  %v1471_v39 = vor.u32 %v1785_v34, %v1468_v35  ;;  %v1789_v46 = vld [vmem:[%s2099_s25 + $0xcc] sm:$0xf]  ;;  %v1484_v47 = vld [vmem:[%s2099_s25 + $0xd8] sm:$0xf0]  ;;  %v1483_v50 = vor.u32 %v1791_v45, %v1482_v44  ;;  %v1498_v56 = vld [vmem:[%s2099_s25 + $0xe8] sm:$0xf] }
  0x27   : > { %1041 = vmatpush.bf16.msra.mxu2 %v1845_v26  ;;  %v1451_v26 = vor.u32 %v1783_v21, %v1450_v20  ;;  %v1487_v51 = vor.u32 %v1789_v46, %v1484_v47  ;;  %v1795_v57 = vld [vmem:[%s2099_s25 + $0xf4] sm:$0xf0]  ;;  %v1793_v58 = vld [vmem:[%s2099_s25 + $0xec] sm:$0xf]  ;;  %v1500_v59 = vld [vmem:[%s2099_s25 + $0xf8] sm:$0xf0] }
  0x28   : > { %1130 = vmatpush.bf16.msra.mxu3 %v1853_v27  ;;  %v1455_v27 = vor.u32 %v1781_v22, %v1452_v23  ;;  %v1499_v62 = vor.u32 %v1795_v57, %v1498_v56  ;;  %v1503_v63 = vor.u32 %v1793_v58, %v1500_v59  ;;  %v1508_v4 = vld [vmem:[%s2099_s25 + $0x110] sm:$0xf0]  ;;  %v1514_v5 = vld [vmem:[%s2099_s25 + $0x108] sm:$0xf]  ;;  %v1799_v6 = vld [vmem:[%s2099_s25 + $0x114] sm:$0xf0] }
  0x29   : > { %864 = vmatpush.bf16.msra.mxu0 %v1828_v28  ;;  %v1458_v28 = vld [vmem:[%s2099_s25 + $0xa0] sm:$0xf]  ;;  %v1797_v7 = vld [vmem:[%s2099_s25 + $0x10c] sm:$0xf]  ;;  %v1516_v8 = vld [vmem:[%s2099_s25 + $0x118] sm:$0xf0] }
  0x2a   : > { %953 = vmatpush.bf16.msra.mxu1 %v1836_v29  ;;  %v1786_v29 = vld [vmem:[%s2099_s25 + $0xac] sm:$0xf0]  ;;  %v1804_v56 = vld [vmem:[%s2099_s25 + $0x144] sm:$0xf]  ;;  %v1540_v57 = vld [vmem:[%s2099_s25 + $0x150] sm:$0xf0] }
  0x2b   : > { %1042 = vmatpush.bf16.msra.mxu2 %v1844_v30  ;;  %v1784_v30 = vld [vmem:[%s2099_s25 + $0xa4] sm:$0xf]  ;;  %v1459_v36 = vor.u32 %v1786_v29, %v1458_v28  ;;  %v1530_v28 = vld [vmem:[%s2099_s25 + $0x128] sm:$0xf]  ;;  %v1803_v29 = vld [vmem:[%s2099_s25 + $0x134] sm:$0xf0] }
  0x2c   : > { %1131 = vmatpush.bf16.msra.mxu3 %v1852_v31  ;;  %865 = vmatmul.bf16.vlgmr.msra.gmra.mxu0 %v1379_v40  ;;  %v1460_v31 = vld [vmem:[%s2099_s25 + $0xb0] sm:$0xf0]  ;;  %v1474_v40 = vld [vmem:[%s2099_s25 + $0xc0] sm:$0xf]  ;;  %v1546_v58 = vld [vmem:[%s2099_s25 + $0x148] sm:$0xf] }
  0x2d   : > { %954 = vmatmul.bf16.vlgmr.msra.gmra.mxu1 %v1383_v41  ;;  %v1463_v37 = vor.u32 %v1784_v30, %v1460_v31  ;;  %v1790_v41 = vld [vmem:[%s2099_s25 + $0xcc] sm:$0xf0]  ;;  %v1801_v30 = vld [vmem:[%s2099_s25 + $0x12c] sm:$0xf]  ;;  %v1532_v31 = vld [vmem:[%s2099_s25 + $0x138] sm:$0xf0] }
  0x2e   : > { %1043 = vmatmul.bf16.vlgmr.msra.gmra.mxu2 %v1387_v42  ;;  %v1788_v42 = vld [vmem:[%s2099_s25 + $0xc4] sm:$0xf]  ;;  %v1475_v48 = vor.u32 %v1790_v41, %v1474_v40  ;;  %v1531_v40 = vor.u32 %v1803_v29, %v1530_v28  ;;  %v1535_v41 = vor.u32 %v1801_v30, %v1532_v31  ;;  %v1807_v59 = vld [vmem:[%s2099_s25 + $0x154] sm:$0xf0]  ;;  %v1564_v28 = vld [vmem:[%s2099_s25 + $0x178] sm:$0xf0] }
  0x2f   : > { %1132 = vmatmul.bf16.vlgmr.msra.gmra.mxu3 %v1391_v43  ;;  %v1476_v43 = vld [vmem:[%s2099_s25 + $0xd0] sm:$0xf0] }
  0x30   : > { %v1479_v49 = vor.u32 %v1788_v42, %v1476_v43 }
  0x3c   : > { %870 = vmatmul.bf16.gmra.mxu0 %v1395_v52  ;;  %v1490_v52 = vld [vmem:[%s2099_s25 + $0xe0] sm:$0xf] }
  0x3d   : > { %959 = vmatmul.bf16.gmra.mxu1 %v1399_v53  ;;  %v1794_v53 = vld [vmem:[%s2099_s25 + $0xec] sm:$0xf0] }
  0x3e   : > { %1048 = vmatmul.bf16.gmra.mxu2 %v1403_v54  ;;  %v1792_v54 = vld [vmem:[%s2099_s25 + $0xe4] sm:$0xf]  ;;  %v1491_v60 = vor.u32 %v1794_v53, %v1490_v52 }
  0x3f   : > { %1137 = vmatmul.bf16.gmra.mxu3 %v1407_v55  ;;  %v1492_v55 = vld [vmem:[%s2099_s25 + $0xf0] sm:$0xf0] }
  0x40   : > { %v1495_v61 = vor.u32 %v1792_v54, %v1492_v55  ;;  %v1538_v54 = vld [vmem:[%s2099_s25 + $0x140] sm:$0xf]  ;;  %v1806_v55 = vld [vmem:[%s2099_s25 + $0x14c] sm:$0xf0] }
  0x4c   : > { %875 = vmatmul.bf16.gmra.mxu0 %v1411_v0  ;;  %v2186_v0 = vld [vmem:[%s2333_s2] ss:$0 sm:$0xff] }
  0x4d   : > { %964 = vmatmul.bf16.gmra.mxu1 %v1415_v1  ;;  %v1506_v1 = vld [vmem:[%s2099_s25 + $0x100] sm:$0xf] }
  0x4e   : > { %1053 = vmatmul.bf16.gmra.mxu2 %v1419_v2  ;;  %v1798_v2 = vld [vmem:[%s2099_s25 + $0x10c] sm:$0xf0] }
  0x4f   : > { %1142 = vmatmul.bf16.gmra.mxu3 %v1423_v3  ;;  %v1796_v3 = vld [vmem:[%s2099_s25 + $0x104] sm:$0xf]  ;;  %v1507_v9 = vor.u32 %v1798_v2, %v1506_v1  ;;  %v1539_v2 = vor.u32 %v1806_v55, %v1538_v54  ;;  %v1572_v54 = vld [vmem:[%s2099_s25 + $0x190] sm:$0xf0]  ;;  %v1578_v55 = vld [vmem:[%s2099_s25 + $0x188] sm:$0xf] }
  0x50   : > { %v1511_v10 = vor.u32 %v1796_v3, %v1508_v4  ;;  %v1543_v3 = vor.u32 %v1804_v56, %v1540_v57  ;;  %v1815_v56 = vld [vmem:[%s2099_s25 + $0x194] sm:$0xf0]  ;;  %v1813_v57 = vld [vmem:[%s2099_s25 + $0x18c] sm:$0xf] }
  0x5c   : > { %880 = vmatmul.bf16.gmra.mxu0 %v1427_v12 }
  0x5d   : > { %969 = vmatmul.bf16.gmra.mxu1 %v1431_v13  ;;  %v1515_v13 = vor.u32 %v1799_v6, %v1514_v5 }
  0x5e   : > { %1058 = vmatmul.bf16.gmra.mxu2 %v1435_v14  ;;  %v1519_v14 = vor.u32 %v1797_v7, %v1516_v8  ;;  %v1547_v7 = vor.u32 %v1807_v59, %v1546_v58  ;;  %v1580_v58 = vld [vmem:[%s2099_s25 + $0x198] sm:$0xf0] }
  0x5f   : > { %1147 = vmatmul.bf16.gmra.mxu3 %v1439_v15 }
  0x6c   : > { %885 = vmatmul.bf16.gmra.mxu0 %v1443_v24  ;;  %v1522_v24 = vld [vmem:[%s2099_s25 + $0x120] sm:$0xf] }
  0x6d   : > { %974 = vmatmul.bf16.gmra.mxu1 %v1447_v25  ;;  %v1802_v25 = vld [vmem:[%s2099_s25 + $0x12c] sm:$0xf0] }
  0x6e   : > { %1063 = vmatmul.bf16.gmra.mxu2 %v1451_v26  ;;  %v1800_v26 = vld [vmem:[%s2099_s25 + $0x124] sm:$0xf]  ;;  %v1523_v35 = vor.u32 %v1802_v25, %v1522_v24  ;;  %v1556_v24 = vld [vmem:[%s2099_s25 + $0x170] sm:$0xf0]  ;;  %v1562_v25 = vld [vmem:[%s2099_s25 + $0x168] sm:$0xf] }
  0x6f   : > { %1152 = vmatmul.bf16.gmra.mxu3 %v1455_v27  ;;  %v1524_v27 = vld [vmem:[%s2099_s25 + $0x130] sm:$0xf0] }
  0x7c   : > { %890 = vmatmul.bf16.gmra.mxu0 %v1459_v36  ;;  %v1527_v36 = vor.u32 %v1800_v26, %v1524_v27  ;;  %v1811_v26 = vld [vmem:[%s2099_s25 + $0x174] sm:$0xf0]  ;;  %v1809_v27 = vld [vmem:[%s2099_s25 + $0x16c] sm:$0xf] }
  0x7d   : > { %979 = vmatmul.bf16.gmra.mxu1 %v1463_v37 }
  0x7e   : > { %1068 = vmatmul.bf16.gmra.mxu2 %v1467_v38 }
  0x7f   : > { %1157 = vmatmul.bf16.gmra.mxu3 %v1471_v39 }
  0x8c   : > { %895 = vmatmul.bf16.gmra.mxu0 %v1475_v48 }
  0x8d   : > { %984 = vmatmul.bf16.gmra.mxu1 %v1479_v49 }
  0x8e   : > { %1073 = vmatmul.bf16.gmra.mxu2 %v1483_v50 }
  0x8f   : > { %1162 = vmatmul.bf16.gmra.mxu3 %v1487_v51 }
  0x9c   : > { %900 = vmatmul.bf16.gmra.mxu0 %v1491_v60  ;;  %v1805_v60 = vld [vmem:[%s2099_s25 + $0x14c] sm:$0xf] }
  0x9d   : > { %989 = vmatmul.bf16.gmra.mxu1 %v1495_v61  ;;  %v1548_v61 = vld [vmem:[%s2099_s25 + $0x158] sm:$0xf0] }
  0x9e   : > { %1078 = vmatmul.bf16.gmra.mxu2 %v1499_v62  ;;  %v1551_v8 = vor.u32 %v1805_v60, %v1548_v61 }
  0x9f   : > { %1167 = vmatmul.bf16.gmra.mxu3 %v1503_v63 }
  0xa9   : > { %v866_v11 = vpop.f32.mrf.mxu0 }
  0xaa   : > { %v955_v12 = vpop.f32.mrf.mxu1  ;;  %v867_v15 = vadd.f32 %v2186_v0, %v866_v11 }
  0xac   : > { %905 = vmatmul.bf16.gmra.mxu0 %v1507_v9  ;;  %v956_v16 = vadd.f32 %v955_v12, %v867_v15 }
  0xad   : > { %994 = vmatmul.bf16.gmra.mxu1 %v1511_v10 }
  0xae   : > { %1083 = vmatmul.bf16.gmra.mxu2 %v1515_v13 }
  0xaf   : > { %1172 = vmatmul.bf16.gmra.mxu3 %v1519_v14 }
  0xb1   : > { %v1044_v17 = vpop.f32.mrf.mxu2  ;;  %v868_v20 = vpop.f32.mrf.mxu0 }
  0xb2   : > { %v1133_v18 = vpop.f32.mrf.mxu3  ;;  %v1045_v19 = vadd.f32 %v1044_v17, %v956_v16  ;;  %v957_v21 = vpop.f32.mrf.mxu1  ;;  %v869_v23 = vadd.f32 %v2186_v0, %v868_v20 }
  0xb4   : > { %v1134_v22 = vadd.f32 %v1133_v18, %v1045_v19  ;;  %v958_v32 = vadd.f32 %v957_v21, %v869_v23  ;;  %v1554_v21 = vld [vmem:[%s2099_s25 + $0x160] sm:$0xf]  ;;  %v1808_v23 = vld [vmem:[%s2099_s25 + $0x164] sm:$0xf] }
  0xb6   : > { %1885 = vtanh.f32 %v1134_v22  ;;  %v1810_v22 = vld [vmem:[%s2099_s25 + $0x16c] sm:$0xf0] }
  0xb9   : > { %v1046_v33 = vpop.f32.mrf.mxu2  ;;  %v871_v38 = vpop.f32.mrf.mxu0 }
  0xba   : > { %v1135_v34 = vpop.f32.mrf.mxu3  ;;  %v1047_v37 = vadd.f32 %v1046_v33, %v958_v32  ;;  %v960_v39 = vpop.f32.mrf.mxu1  ;;  %v872_v42 = vadd.f32 %v2186_v0, %v871_v38  ;;  %v1555_v32 = vor.u32 %v1810_v22, %v1554_v21  ;;  %v1559_v33 = vor.u32 %v1808_v23, %v1556_v24  ;;  %v1588_v21 = vld [vmem:[%s2099_s25 + $0x1b0] sm:$0xf0]  ;;  %v1594_v22 = vld [vmem:[%s2099_s25 + $0x1a8] sm:$0xf]  ;;  %v1819_v23 = vld [vmem:[%s2099_s25 + $0x1b4] sm:$0xf0] }
  0xbb   : > { %v1567_v38 = vor.u32 %v1809_v27, %v1564_v28  ;;  %v1817_v24 = vld [vmem:[%s2099_s25 + $0x1ac] sm:$0xf] }
  0xbc   : > { %v1886_v43 = vpop.eup %1885  ;;  %v1136_v44 = vadd.f32 %v1135_v34, %v1047_v37  ;;  %910 = vmatmul.bf16.gmra.mxu0 %v1523_v35  ;;  %v961_v45 = vadd.f32 %v960_v39, %v872_v42  ;;  %v1563_v37 = vor.u32 %v1811_v26, %v1562_v25  ;;  %v1596_v25 = vld [vmem:[%s2099_s25 + $0x1b8] sm:$0xf0] }
  0xbd   : > { %1245 = vst [vmem:[%s2210_s20] sm:$0xff] %v1886_v43  ;;  %999 = vmatmul.bf16.gmra.mxu1 %v1527_v36 }
  0xbe   : > { %1887 = vtanh.f32 %v1136_v44  ;;  %1088 = vmatmul.bf16.gmra.mxu2 %v1531_v40 }
  0xbf   : > { %1177 = vmatmul.bf16.gmra.mxu3 %v1535_v41 }
  0xc1   : > { %v1049_v46 = vpop.f32.mrf.mxu2  ;;  %v873_v49 = vpop.f32.mrf.mxu0 }
  0xc2   : > { %v1138_v47 = vpop.f32.mrf.mxu3  ;;  %v1050_v48 = vadd.f32 %v1049_v46, %v961_v45  ;;  %v962_v50 = vpop.f32.mrf.mxu1  ;;  %v874_v53 = vadd.f32 %v2186_v0, %v873_v49 }
  0xc4   : > { %v1888_v51 = vpop.eup %1887  ;;  %v1139_v52 = vadd.f32 %v1138_v47, %v1050_v48  ;;  %v963_v62 = vadd.f32 %v962_v50, %v874_v53  ;;  %v1812_v53 = vld [vmem:[%s2099_s25 + $0x184] sm:$0xf] }
  0xc5   : > { %1246 = vst [vmem:[%s2210_s20 + $0x8] sm:$0xff] %v1888_v51  ;;  %v1570_v51 = vld [vmem:[%s2099_s25 + $0x180] sm:$0xf] }
  0xc6   : > { %1889 = vtanh.f32 %v1139_v52  ;;  %v1814_v52 = vld [vmem:[%s2099_s25 + $0x18c] sm:$0xf0] }
  0xc9   : > { %v1051_v63 = vpop.f32.mrf.mxu2  ;;  %v876_v5 = vpop.f32.mrf.mxu0 }
  0xca   : > { %v1140_v1 = vpop.f32.mrf.mxu3  ;;  %v1052_v4 = vadd.f32 %v1051_v63, %v963_v62  ;;  %v965_v6 = vpop.f32.mrf.mxu1  ;;  %v877_v9 = vadd.f32 %v2186_v0, %v876_v5  ;;  %v1571_v62 = vor.u32 %v1814_v52, %v1570_v51  ;;  %v1575_v63 = vor.u32 %v1812_v53, %v1572_v54  ;;  %v1604_v51 = vld [vmem:[%s2099_s25 + $0x1d0] sm:$0xf0]  ;;  %v1610_v52 = vld [vmem:[%s2099_s25 + $0x1c8] sm:$0xf]  ;;  %v1823_v53 = vld [vmem:[%s2099_s25 + $0x1d4] sm:$0xf0] }
  0xcb   : > { %v1583_v5 = vor.u32 %v1813_v57, %v1580_v58  ;;  %v1821_v54 = vld [vmem:[%s2099_s25 + $0x1cc] sm:$0xf] }
  0xcc   : > { %v1890_v10 = vpop.eup %1889  ;;  %v1141_v11 = vadd.f32 %v1140_v1, %v1052_v4  ;;  %915 = vmatmul.bf16.gmra.mxu0 %v1539_v2  ;;  %v966_v12 = vadd.f32 %v965_v6, %v877_v9  ;;  %v1579_v4 = vor.u32 %v1815_v56, %v1578_v55  ;;  %v1612_v55 = vld [vmem:[%s2099_s25 + $0x1d8] sm:$0xf0] }
  0xcd   : > { %1247 = vst [vmem:[%s2210_s20 + $0x10] sm:$0xff] %v1890_v10  ;;  %1004 = vmatmul.bf16.gmra.mxu1 %v1543_v3 }
  0xce   : > { %1891 = vtanh.f32 %v1141_v11  ;;  %1093 = vmatmul.bf16.gmra.mxu2 %v1547_v7 }
  0xcf   : > { %1182 = vmatmul.bf16.gmra.mxu3 %v1551_v8 }
  0xd1   : > { %v1054_v13 = vpop.f32.mrf.mxu2  ;;  %v878_v16 = vpop.f32.mrf.mxu0 }
  0xd2   : > { %v1143_v14 = vpop.f32.mrf.mxu3  ;;  %v1055_v15 = vadd.f32 %v1054_v13, %v966_v12  ;;  %v967_v17 = vpop.f32.mrf.mxu1  ;;  %v879_v20 = vadd.f32 %v2186_v0, %v878_v16 }
  0xd4   : > { %v1892_v18 = vpop.eup %1891  ;;  %v1144_v19 = vadd.f32 %v1143_v14, %v1055_v15  ;;  %v968_v29 = vadd.f32 %v967_v17, %v879_v20  ;;  %v1816_v20 = vld [vmem:[%s2099_s25 + $0x1a4] sm:$0xf] }
  0xd5   : > { %1248 = vst [vmem:[%s2210_s20 + $0x18] sm:$0xff] %v1892_v18  ;;  %v1586_v18 = vld [vmem:[%s2099_s25 + $0x1a0] sm:$0xf] }
  0xd6   : > { %1893 = vtanh.f32 %v1144_v19  ;;  %v1818_v19 = vld [vmem:[%s2099_s25 + $0x1ac] sm:$0xf0] }
  0xd9   : > { %v1056_v30 = vpop.f32.mrf.mxu2  ;;  %v881_v35 = vpop.f32.mrf.mxu0 }
  0xda   : > { %v1145_v31 = vpop.f32.mrf.mxu3  ;;  %v1057_v34 = vadd.f32 %v1056_v30, %v968_v29  ;;  %v970_v36 = vpop.f32.mrf.mxu1  ;;  %v882_v39 = vadd.f32 %v2186_v0, %v881_v35  ;;  %v1587_v29 = vor.u32 %v1818_v19, %v1586_v18  ;;  %v1591_v30 = vor.u32 %v1816_v20, %v1588_v21  ;;  %v1620_v18 = vld [vmem:[%s2099_s25 + $0x1f0] sm:$0xf0]  ;;  %v1626_v19 = vld [vmem:[%s2099_s25 + $0x1e8] sm:$0xf]  ;;  %v1827_v20 = vld [vmem:[%s2099_s25 + $0x1f4] sm:$0xf0] }
  0xdb   : > { %v1599_v35 = vor.u32 %v1817_v24, %v1596_v25  ;;  %v1825_v21 = vld [vmem:[%s2099_s25 + $0x1ec] sm:$0xf] }
  0xdc   : > { %v1894_v40 = vpop.eup %1893  ;;  %v1146_v41 = vadd.f32 %v1145_v31, %v1057_v34  ;;  %920 = vmatmul.bf16.gmra.mxu0 %v1555_v32  ;;  %v971_v42 = vadd.f32 %v970_v36, %v882_v39  ;;  %v1595_v34 = vor.u32 %v1819_v23, %v1594_v22  ;;  %v1628_v22 = vld [vmem:[%s2099_s25 + $0x1f8] sm:$0xf0] }
  0xdd   : > { %1249 = vst [vmem:[%s2210_s20 + $0x20] sm:$0xff] %v1894_v40  ;;  %1009 = vmatmul.bf16.gmra.mxu1 %v1559_v33 }
  0xde   : > { %1895 = vtanh.f32 %v1146_v41  ;;  %1098 = vmatmul.bf16.gmra.mxu2 %v1563_v37 }
  0xdf   : > { %1187 = vmatmul.bf16.gmra.mxu3 %v1567_v38 }
  0xe1   : > { %v1059_v43 = vpop.f32.mrf.mxu2  ;;  %v883_v46 = vpop.f32.mrf.mxu0 }
  0xe2   : > { %v1148_v44 = vpop.f32.mrf.mxu3  ;;  %v1060_v45 = vadd.f32 %v1059_v43, %v971_v42  ;;  %v972_v47 = vpop.f32.mrf.mxu1  ;;  %v884_v50 = vadd.f32 %v2186_v0, %v883_v46 }
  0xe4   : > { %v1896_v48 = vpop.eup %1895  ;;  %v1149_v49 = vadd.f32 %v1148_v44, %v1060_v45  ;;  %v973_v59 = vadd.f32 %v972_v47, %v884_v50  ;;  %v1820_v50 = vld [vmem:[%s2099_s25 + $0x1c4] sm:$0xf] }
  0xe5   : > { %1250 = vst [vmem:[%s2210_s20 + $0x28] sm:$0xff] %v1896_v48  ;;  %v1602_v48 = vld [vmem:[%s2099_s25 + $0x1c0] sm:$0xf] }
  0xe6   : > { %1897 = vtanh.f32 %v1149_v49  ;;  %v1822_v49 = vld [vmem:[%s2099_s25 + $0x1cc] sm:$0xf0] }
  0xe9   : > { %v1061_v60 = vpop.f32.mrf.mxu2  ;;  %v886_v2 = vpop.f32.mrf.mxu0 }
  0xea   : > { %v1150_v61 = vpop.f32.mrf.mxu3  ;;  %v1062_v1 = vadd.f32 %v1061_v60, %v973_v59  ;;  %v975_v3 = vpop.f32.mrf.mxu1  ;;  %v887_v6 = vadd.f32 %v2186_v0, %v886_v2  ;;  %v1603_v59 = vor.u32 %v1822_v49, %v1602_v48  ;;  %v1607_v60 = vor.u32 %v1820_v50, %v1604_v51 }
  0xeb   : > { %v1615_v2 = vor.u32 %v1821_v54, %v1612_v55 }
  0xec   : > { %v1898_v7 = vpop.eup %1897  ;;  %v1151_v8 = vadd.f32 %v1150_v61, %v1062_v1  ;;  %925 = vmatmul.bf16.gmra.mxu0 %v1571_v62  ;;  %v976_v9 = vadd.f32 %v975_v3, %v887_v6  ;;  %v1611_v1 = vor.u32 %v1823_v53, %v1610_v52 }
  0xed   : > { %1251 = vst [vmem:[%s2210_s20 + $0x30] sm:$0xff] %v1898_v7  ;;  %1014 = vmatmul.bf16.gmra.mxu1 %v1575_v63 }
  0xee   : > { %1899 = vtanh.f32 %v1151_v8  ;;  %1103 = vmatmul.bf16.gmra.mxu2 %v1579_v4 }
  0xef   : > { %1192 = vmatmul.bf16.gmra.mxu3 %v1583_v5 }
  0xf1   : > { %v1064_v10 = vpop.f32.mrf.mxu2  ;;  %v888_v13 = vpop.f32.mrf.mxu0 }
  0xf2   : > { %v1153_v11 = vpop.f32.mrf.mxu3  ;;  %v1065_v12 = vadd.f32 %v1064_v10, %v976_v9  ;;  %v977_v14 = vpop.f32.mrf.mxu1  ;;  %v889_v17 = vadd.f32 %v2186_v0, %v888_v13 }
  0xf4   : > { %v1900_v15 = vpop.eup %1899  ;;  %v1154_v16 = vadd.f32 %v1153_v11, %v1065_v12  ;;  %v978_v26 = vadd.f32 %v977_v14, %v889_v17  ;;  %v1824_v17 = vld [vmem:[%s2099_s25 + $0x1e4] sm:$0xf] }
  0xf5   : > { %1252 = vst [vmem:[%s2210_s20 + $0x38] sm:$0xff] %v1900_v15  ;;  %v1618_v15 = vld [vmem:[%s2099_s25 + $0x1e0] sm:$0xf] }
  0xf6   : > { %1901 = vtanh.f32 %v1154_v16  ;;  %v1826_v16 = vld [vmem:[%s2099_s25 + $0x1ec] sm:$0xf0] }
  0xf9   : > { %v1066_v27 = vpop.f32.mrf.mxu2  ;;  %v891_v32 = vpop.f32.mrf.mxu0 }
  0xfa   : > { %v1155_v28 = vpop.f32.mrf.mxu3  ;;  %v1067_v31 = vadd.f32 %v1066_v27, %v978_v26  ;;  %v980_v33 = vpop.f32.mrf.mxu1  ;;  %v892_v36 = vadd.f32 %v2186_v0, %v891_v32  ;;  %v1619_v26 = vor.u32 %v1826_v16, %v1618_v15  ;;  %v1623_v27 = vor.u32 %v1824_v17, %v1620_v18 }
  0xfb   : > { %v1631_v32 = vor.u32 %v1825_v21, %v1628_v22 }
  0xfc   : > { %v1902_v37 = vpop.eup %1901  ;;  %v1156_v38 = vadd.f32 %v1155_v28, %v1067_v31  ;;  %930 = vmatmul.bf16.gmra.mxu0 %v1587_v29  ;;  %v981_v39 = vadd.f32 %v980_v33, %v892_v36  ;;  %v1627_v31 = vor.u32 %v1827_v20, %v1626_v19 }
  0xfd   : > { %1253 = vst [vmem:[%s2210_s20 + $0x40] sm:$0xff] %v1902_v37  ;;  %1019 = vmatmul.bf16.gmra.mxu1 %v1591_v30 }
  0xfe   : > { %1903 = vtanh.f32 %v1156_v38  ;;  %1108 = vmatmul.bf16.gmra.mxu2 %v1595_v34 }
  0xff   : > { %1197 = vmatmul.bf16.gmra.mxu3 %v1599_v35 }
 0x101   : > { %v1069_v40 = vpop.f32.mrf.mxu2  ;;  %v893_v43 = vpop.f32.mrf.mxu0 }
 0x102   : > { %v1158_v41 = vpop.f32.mrf.mxu3  ;;  %v1070_v42 = vadd.f32 %v1069_v40, %v981_v39  ;;  %v982_v44 = vpop.f32.mrf.mxu1  ;;  %v894_v47 = vadd.f32 %v2186_v0, %v893_v43 }
 0x104   : > { %v1904_v45 = vpop.eup %1903  ;;  %v1159_v46 = vadd.f32 %v1158_v41, %v1070_v42  ;;  %v983_v56 = vadd.f32 %v982_v44, %v894_v47 }
 0x105   : > { %1254 = vst [vmem:[%s2210_s20 + $0x48] sm:$0xff] %v1904_v45 }
 0x106   : > { %1905 = vtanh.f32 %v1159_v46 }
 0x109   : > { %v1071_v57 = vpop.f32.mrf.mxu2  ;;  %v896_v62 = vpop.f32.mrf.mxu0 }
 0x10a   : > { %v1160_v58 = vpop.f32.mrf.mxu3  ;;  %v1072_v61 = vadd.f32 %v1071_v57, %v983_v56  ;;  %v985_v63 = vpop.f32.mrf.mxu1  ;;  %v897_v3 = vadd.f32 %v2186_v0, %v896_v62 }
 0x10c   : > { %v1906_v4 = vpop.eup %1905  ;;  %v1161_v5 = vadd.f32 %v1160_v58, %v1072_v61  ;;  %935 = vmatmul.bf16.gmra.mxu0 %v1603_v59  ;;  %v986_v6 = vadd.f32 %v985_v63, %v897_v3 }
 0x10d   : > { %1255 = vst [vmem:[%s2210_s20 + $0x50] sm:$0xff] %v1906_v4  ;;  %1024 = vmatmul.bf16.gmra.mxu1 %v1607_v60 }
 0x10e   : > { %1907 = vtanh.f32 %v1161_v5  ;;  %1113 = vmatmul.bf16.gmra.mxu2 %v1611_v1 }
 0x10f   : > { %1202 = vmatmul.bf16.gmra.mxu3 %v1615_v2 }
 0x111   : > { %v1074_v7 = vpop.f32.mrf.mxu2  ;;  %v898_v10 = vpop.f32.mrf.mxu0 }
 0x112   : > { %v1163_v8 = vpop.f32.mrf.mxu3  ;;  %v1075_v9 = vadd.f32 %v1074_v7, %v986_v6  ;;  %v987_v11 = vpop.f32.mrf.mxu1  ;;  %v899_v14 = vadd.f32 %v2186_v0, %v898_v10 }
 0x114   : > { %v1908_v12 = vpop.eup %1907  ;;  %v1164_v13 = vadd.f32 %v1163_v8, %v1075_v9  ;;  %v988_v23 = vadd.f32 %v987_v11, %v899_v14 }
 0x115   : > { %1256 = vst [vmem:[%s2210_s20 + $0x58] sm:$0xff] %v1908_v12 }
 0x116   : > { %1909 = vtanh.f32 %v1164_v13 }
 0x119   : > { %v1076_v24 = vpop.f32.mrf.mxu2  ;;  %v901_v29 = vpop.f32.mrf.mxu0 }
 0x11a   : > { %v1165_v25 = vpop.f32.mrf.mxu3  ;;  %v1077_v28 = vadd.f32 %v1076_v24, %v988_v23  ;;  %v990_v30 = vpop.f32.mrf.mxu1  ;;  %v902_v33 = vadd.f32 %v2186_v0, %v901_v29 }
 0x11c   : > { %v1910_v34 = vpop.eup %1909  ;;  %v1166_v35 = vadd.f32 %v1165_v25, %v1077_v28  ;;  %940 = vmatmul.bf16.gmra.mxu0 %v1619_v26  ;;  %v991_v36 = vadd.f32 %v990_v30, %v902_v33 }
 0x11d   : > { %1257 = vst [vmem:[%s2210_s20 + $0x60] sm:$0xff] %v1910_v34  ;;  %1029 = vmatmul.bf16.gmra.mxu1 %v1623_v27 }
 0x11e   : > { %1911 = vtanh.f32 %v1166_v35  ;;  %1118 = vmatmul.bf16.gmra.mxu2 %v1627_v31 }
 0x11f   : > { %1207 = vmatmul.bf16.gmra.mxu3 %v1631_v32 }
 0x121   : > { %v1079_v37 = vpop.f32.mrf.mxu2  ;;  %v903_v40 = vpop.f32.mrf.mxu0 }
 0x122   : > { %v1168_v38 = vpop.f32.mrf.mxu3  ;;  %v1080_v39 = vadd.f32 %v1079_v37, %v991_v36  ;;  %v992_v41 = vpop.f32.mrf.mxu1  ;;  %v904_v44 = vadd.f32 %v2186_v0, %v903_v40 }
 0x124   : > { %v1912_v42 = vpop.eup %1911  ;;  %v1169_v43 = vadd.f32 %v1168_v38, %v1080_v39  ;;  %v993_v45 = vadd.f32 %v992_v41, %v904_v44 }
 0x125   : > { %1258 = vst [vmem:[%s2210_s20 + $0x68] sm:$0xff] %v1912_v42 }
 0x126   : > { %1913 = vtanh.f32 %v1169_v43 }
 0x129   : > { %v1081_v46 = vpop.f32.mrf.mxu2  ;;  %v906_v49 = vpop.f32.mrf.mxu0 }
 0x12a   : > { %v1170_v47 = vpop.f32.mrf.mxu3  ;;  %v1082_v48 = vadd.f32 %v1081_v46, %v993_v45  ;;  %v995_v50 = vpop.f32.mrf.mxu1  ;;  %v907_v51 = vadd.f32 %v2186_v0, %v906_v49 }
 0x12c   : > { %v1914_v52 = vpop.eup %1913  ;;  %v1171_v53 = vadd.f32 %v1170_v47, %v1082_v48  ;;  %v996_v54 = vadd.f32 %v995_v50, %v907_v51 }
 0x12d   : > { %1259 = vst [vmem:[%s2210_s20 + $0x70] sm:$0xff] %v1914_v52 }
 0x12e   : > { %1915 = vtanh.f32 %v1171_v53 }
 0x131   : > { %v1084_v55 = vpop.f32.mrf.mxu2  ;;  %v908_v58 = vpop.f32.mrf.mxu0 }
 0x132   : > { %v1173_v56 = vpop.f32.mrf.mxu3  ;;  %v1085_v57 = vadd.f32 %v1084_v55, %v996_v54  ;;  %v997_v59 = vpop.f32.mrf.mxu1  ;;  %v909_v62 = vadd.f32 %v2186_v0, %v908_v58 }
 0x134   : > { %v1916_v60 = vpop.eup %1915  ;;  %v1174_v61 = vadd.f32 %v1173_v56, %v1085_v57  ;;  %v998_v63 = vadd.f32 %v997_v59, %v909_v62 }
 0x135   : > { %1260 = vst [vmem:[%s2210_s20 + $0x78] sm:$0xff] %v1916_v60 }
 0x136   : > { %1917 = vtanh.f32 %v1174_v61 }
 0x139   : > { %v1086_v1 = vpop.f32.mrf.mxu2  ;;  %v911_v4 = vpop.f32.mrf.mxu0 }
 0x13a   : > { %v1175_v2 = vpop.f32.mrf.mxu3  ;;  %v1087_v3 = vadd.f32 %v1086_v1, %v998_v63  ;;  %v1000_v5 = vpop.f32.mrf.mxu1  ;;  %v912_v6 = vadd.f32 %v2186_v0, %v911_v4 }
 0x13c   : > { %v1918_v7 = vpop.eup %1917  ;;  %v1176_v8 = vadd.f32 %v1175_v2, %v1087_v3  ;;  %v1001_v9 = vadd.f32 %v1000_v5, %v912_v6 }
 0x13d   : > { %1261 = vst [vmem:[%s2210_s20 + $0x80] sm:$0xff] %v1918_v7 }
 0x13e   : > { %1919 = vtanh.f32 %v1176_v8 }
 0x141   : > { %v1089_v10 = vpop.f32.mrf.mxu2  ;;  %v913_v13 = vpop.f32.mrf.mxu0 }
 0x142   : > { %v1178_v11 = vpop.f32.mrf.mxu3  ;;  %v1090_v12 = vadd.f32 %v1089_v10, %v1001_v9  ;;  %v1002_v14 = vpop.f32.mrf.mxu1  ;;  %v914_v17 = vadd.f32 %v2186_v0, %v913_v13 }
 0x144   : > { %v1920_v15 = vpop.eup %1919  ;;  %v1179_v16 = vadd.f32 %v1178_v11, %v1090_v12  ;;  %v1003_v18 = vadd.f32 %v1002_v14, %v914_v17 }
 0x145   : > { %1262 = vst [vmem:[%s2210_s20 + $0x88] sm:$0xff] %v1920_v15 }
 0x146   : > { %1921 = vtanh.f32 %v1179_v16 }
 0x149   : > { %v1091_v19 = vpop.f32.mrf.mxu2  ;;  %v916_v22 = vpop.f32.mrf.mxu0 }
 0x14a   : > { %v1180_v20 = vpop.f32.mrf.mxu3  ;;  %v1092_v21 = vadd.f32 %v1091_v19, %v1003_v18  ;;  %v1005_v23 = vpop.f32.mrf.mxu1  ;;  %v917_v24 = vadd.f32 %v2186_v0, %v916_v22 }
 0x14c   : > { %v1922_v25 = vpop.eup %1921  ;;  %v1181_v26 = vadd.f32 %v1180_v20, %v1092_v21  ;;  %v1006_v27 = vadd.f32 %v1005_v23, %v917_v24 }
 0x14d   : > { %1263 = vst [vmem:[%s2210_s20 + $0x90] sm:$0xff] %v1922_v25 }
 0x14e   : > { %1923 = vtanh.f32 %v1181_v26 }
 0x151   : > { %v1094_v28 = vpop.f32.mrf.mxu2  ;;  %v918_v31 = vpop.f32.mrf.mxu0 }
 0x152   : > { %v1183_v29 = vpop.f32.mrf.mxu3  ;;  %v1095_v30 = vadd.f32 %v1094_v28, %v1006_v27  ;;  %v1007_v32 = vpop.f32.mrf.mxu1  ;;  %v919_v35 = vadd.f32 %v2186_v0, %v918_v31 }
 0x154   : > { %v1924_v33 = vpop.eup %1923  ;;  %v1184_v34 = vadd.f32 %v1183_v29, %v1095_v30  ;;  %v1008_v36 = vadd.f32 %v1007_v32, %v919_v35 }
 0x155   : > { %1264 = vst [vmem:[%s2210_s20 + $0x98] sm:$0xff] %v1924_v33 }
 0x156   : > { %1925 = vtanh.f32 %v1184_v34 }
 0x159   : > { %v1096_v37 = vpop.f32.mrf.mxu2  ;;  %v921_v40 = vpop.f32.mrf.mxu0 }
 0x15a   : > { %v1185_v38 = vpop.f32.mrf.mxu3  ;;  %v1097_v39 = vadd.f32 %v1096_v37, %v1008_v36  ;;  %v1010_v41 = vpop.f32.mrf.mxu1  ;;  %v922_v42 = vadd.f32 %v2186_v0, %v921_v40 }
 0x15c   : > { %v1926_v43 = vpop.eup %1925  ;;  %v1186_v44 = vadd.f32 %v1185_v38, %v1097_v39  ;;  %v1011_v45 = vadd.f32 %v1010_v41, %v922_v42 }
 0x15d   : > { %1265 = vst [vmem:[%s2210_s20 + $0xa0] sm:$0xff] %v1926_v43 }
 0x15e   : > { %1927 = vtanh.f32 %v1186_v44 }
 0x161   : > { %v1099_v46 = vpop.f32.mrf.mxu2  ;;  %v923_v49 = vpop.f32.mrf.mxu0 }
 0x162   : > { %v1188_v47 = vpop.f32.mrf.mxu3  ;;  %v1100_v48 = vadd.f32 %v1099_v46, %v1011_v45  ;;  %v1012_v50 = vpop.f32.mrf.mxu1  ;;  %v924_v53 = vadd.f32 %v2186_v0, %v923_v49 }
 0x164   : > { %v1928_v51 = vpop.eup %1927  ;;  %v1189_v52 = vadd.f32 %v1188_v47, %v1100_v48  ;;  %v1013_v54 = vadd.f32 %v1012_v50, %v924_v53 }
 0x165   : > { %1266 = vst [vmem:[%s2210_s20 + $0xa8] sm:$0xff] %v1928_v51 }
 0x166   : > { %1929 = vtanh.f32 %v1189_v52 }
 0x169   : > { %v1101_v55 = vpop.f32.mrf.mxu2  ;;  %v926_v58 = vpop.f32.mrf.mxu0 }
 0x16a   : > { %v1190_v56 = vpop.f32.mrf.mxu3  ;;  %v1102_v57 = vadd.f32 %v1101_v55, %v1013_v54  ;;  %v1015_v59 = vpop.f32.mrf.mxu1  ;;  %v927_v60 = vadd.f32 %v2186_v0, %v926_v58 }
 0x16c   : > { %v1930_v61 = vpop.eup %1929  ;;  %v1191_v62 = vadd.f32 %v1190_v56, %v1102_v57  ;;  %v1016_v63 = vadd.f32 %v1015_v59, %v927_v60 }
 0x16d   : > { %1267 = vst [vmem:[%s2210_s20 + $0xb0] sm:$0xff] %v1930_v61 }
 0x16e   : > { %1931 = vtanh.f32 %v1191_v62 }
 0x171   : > { %v1104_v1 = vpop.f32.mrf.mxu2  ;;  %v928_v4 = vpop.f32.mrf.mxu0 }
 0x172   : > { %v1193_v2 = vpop.f32.mrf.mxu3  ;;  %v1105_v3 = vadd.f32 %v1104_v1, %v1016_v63  ;;  %v1017_v5 = vpop.f32.mrf.mxu1  ;;  %v929_v8 = vadd.f32 %v2186_v0, %v928_v4 }
 0x174   : > { %v1932_v6 = vpop.eup %1931  ;;  %v1194_v7 = vadd.f32 %v1193_v2, %v1105_v3  ;;  %v1018_v9 = vadd.f32 %v1017_v5, %v929_v8 }
 0x175   : > { %1268 = vst [vmem:[%s2210_s20 + $0xb8] sm:$0xff] %v1932_v6 }
 0x176   : > { %1933 = vtanh.f32 %v1194_v7 }
 0x179   : > { %v1106_v10 = vpop.f32.mrf.mxu2  ;;  %v931_v13 = vpop.f32.mrf.mxu0 }
 0x17a   : > { %v1195_v11 = vpop.f32.mrf.mxu3  ;;  %v1107_v12 = vadd.f32 %v1106_v10, %v1018_v9  ;;  %v1020_v14 = vpop.f32.mrf.mxu1  ;;  %v932_v15 = vadd.f32 %v2186_v0, %v931_v13 }
 0x17c   : > { %v1934_v16 = vpop.eup %1933  ;;  %v1196_v17 = vadd.f32 %v1195_v11, %v1107_v12  ;;  %v1021_v18 = vadd.f32 %v1020_v14, %v932_v15 }
 0x17d   : > { %1269 = vst [vmem:[%s2210_s20 + $0xc0] sm:$0xff] %v1934_v16 }
 0x17e   : > { %1935 = vtanh.f32 %v1196_v17 }
 0x181   : > { %v1109_v19 = vpop.f32.mrf.mxu2  ;;  %v933_v22 = vpop.f32.mrf.mxu0 }
 0x182   : > { %v1198_v20 = vpop.f32.mrf.mxu3  ;;  %v1110_v21 = vadd.f32 %v1109_v19, %v1021_v18  ;;  %v1022_v23 = vpop.f32.mrf.mxu1  ;;  %v934_v26 = vadd.f32 %v2186_v0, %v933_v22 }
 0x184   : > { %v1936_v24 = vpop.eup %1935  ;;  %v1199_v25 = vadd.f32 %v1198_v20, %v1110_v21  ;;  %v1023_v27 = vadd.f32 %v1022_v23, %v934_v26 }
 0x185   : > { %1270 = vst [vmem:[%s2210_s20 + $0xc8] sm:$0xff] %v1936_v24 }
 0x186   : > { %1937 = vtanh.f32 %v1199_v25 }
 0x189   : > { %v1111_v28 = vpop.f32.mrf.mxu2  ;;  %v936_v31 = vpop.f32.mrf.mxu0 }
 0x18a   : > { %v1200_v29 = vpop.f32.mrf.mxu3  ;;  %v1112_v30 = vadd.f32 %v1111_v28, %v1023_v27  ;;  %v1025_v32 = vpop.f32.mrf.mxu1  ;;  %v937_v33 = vadd.f32 %v2186_v0, %v936_v31 }
 0x18c   : > { %v1938_v34 = vpop.eup %1937  ;;  %v1201_v35 = vadd.f32 %v1200_v29, %v1112_v30  ;;  %v1026_v36 = vadd.f32 %v1025_v32, %v937_v33 }
 0x18d   : > { %1271 = vst [vmem:[%s2210_s20 + $0xd0] sm:$0xff] %v1938_v34 }
 0x18e   : > { %1939 = vtanh.f32 %v1201_v35 }
 0x191   : > { %v1114_v37 = vpop.f32.mrf.mxu2  ;;  %v938_v40 = vpop.f32.mrf.mxu0 }
 0x192   : > { %v1203_v38 = vpop.f32.mrf.mxu3  ;;  %v1115_v39 = vadd.f32 %v1114_v37, %v1026_v36  ;;  %v1027_v41 = vpop.f32.mrf.mxu1  ;;  %v939_v44 = vadd.f32 %v2186_v0, %v938_v40 }
 0x194   : > { %v1940_v42 = vpop.eup %1939  ;;  %v1204_v43 = vadd.f32 %v1203_v38, %v1115_v39  ;;  %v1028_v45 = vadd.f32 %v1027_v41, %v939_v44 }
 0x195   : > { %1272 = vst [vmem:[%s2210_s20 + $0xd8] sm:$0xff] %v1940_v42 }
 0x196   : > { %1941 = vtanh.f32 %v1204_v43 }
 0x199   : > { %v1116_v46 = vpop.f32.mrf.mxu2  ;;  %v941_v49 = vpop.f32.mrf.mxu0 }
 0x19a   : > { %v1205_v47 = vpop.f32.mrf.mxu3  ;;  %v1117_v48 = vadd.f32 %v1116_v46, %v1028_v45  ;;  %v942_v50 = vadd.f32 %v2186_v0, %v941_v49  ;;  %v1030_v53 = vpop.f32.mrf.mxu1 }
 0x19c   : > { %v1942_v51 = vpop.eup %1941  ;;  %v1206_v52 = vadd.f32 %v1205_v47, %v1117_v48  ;;  %v1031_v54 = vadd.f32 %v1030_v53, %v942_v50 }
 0x19d   : > { %1273 = vst [vmem:[%s2210_s20 + $0xe0] sm:$0xff] %v1942_v51 }
 0x19e   : > { %1943 = vtanh.f32 %v1206_v52 }
 0x1a1   : > { %v1119_v55 = vpop.f32.mrf.mxu2  ;;  %v943_v58 = vpop.f32.mrf.mxu0 }
 0x1a2   : > { %v1208_v56 = vpop.f32.mrf.mxu3  ;;  %v1120_v57 = vadd.f32 %v1119_v55, %v1031_v54  ;;  %v944_v61 = vadd.f32 %v2186_v0, %v943_v58  ;;  %v1032_v62 = vpop.f32.mrf.mxu1 }
 0x1a4   : > { %v1944_v59 = vpop.eup %1943  ;;  %v1209_v60 = vadd.f32 %v1208_v56, %v1120_v57  ;;  %v1033_v63 = vadd.f32 %v1032_v62, %v944_v61 }
 0x1a5   : > { %1274 = vst [vmem:[%s2210_s20 + $0xe8] sm:$0xff] %v1944_v59 }
 0x1a6   : > { %1945 = vtanh.f32 %v1209_v60 }
 0x1a9   : > { %v1121_v1 = vpop.f32.mrf.mxu2 }
 0x1aa   : > { %v1122_v2 = vadd.f32 %v1121_v1, %v1033_v63  ;;  %v1210_v3 = vpop.f32.mrf.mxu3 }
 0x1ac   : > { %v1946_v4 = vpop.eup %1945  ;;  %v1211_v5 = vadd.f32 %v1210_v3, %v1122_v2 }
 0x1ad   : > { %1275 = vst [vmem:[%s2210_s20 + $0xf0] sm:$0xff] %v1946_v4 }
 0x1ae   : > { %1947 = vtanh.f32 %v1211_v5 }
 0x1b4   : > { %v1948_v6 = vpop.eup %1947 }
 0x1b5   : > { %1276 = vst [vmem:[%s2210_s20 + $0xf8] sm:$0xff] %v1948_v6 }
 0x1b6 PF: > { %s13_s14 = sadd.s32 1, %s1971_s14   ;;  %s2335_s12 = smov %s1967_s13 }
 0x1b7   : > { %p10_p5 = scmp.ge.s32.totalorder %s13_s14, 4   ;;  %s2336_s13 = smov %s2338_s15 }
 0x1b9   :  { %12 = sbr.rel (!%p10_p5) target bundleno = 2 (0x2), region = 62 }

</bundles_post_ra>
